<compile_context>
chip_gen: v5e
topology: v5e:2x2
jax: 0.10.0
libtpu: 0.0.40
codegen_flags: <defaults>
</compile_context>

<pallas_src>
import jax
import jax.numpy as jnp
import numpy as np
from jax import lax
from jax.experimental import pallas as pl
from jax.experimental.pallas import tpu as pltpu


def _merged_tap_weights(w):
    """Fold nearest-2x upsample + 3x3 conv into 9 per-shift weights (Cin, 4*Cout).

    Output sub-pixel (a, b) in {0,1}^2 of the upsampled image sees an effective
    2x2 conv on the original image whose taps are merged 3x3 taps:
        rows:    a=0 -> [w0, w1+w2]      a=1 -> [w0+w1, w2]
        columns: b=0 -> [c0, c1+c2]      b=1 -> [c0+c1, c2]
    All four sub-pixels are stacked along the output-channel axis
    (channel index = (2*a + b) * Cout + cout), giving one (Cin, 4*Cout) weight per
    shift (r, c) in {0,1,2}^2 of the 1-px halo-padded original image.
    """
    Cin, Cout = w.shape[2], w.shape[3]
    zero = jnp.zeros((Cin, Cout), w.dtype)
    row_m = {0: (w[0], w[1] + w[2]), 1: (w[0] + w[1], w[2])}   # row_m[a][u]: (3,Cin,Cout)
    taps = [[[None] * 4 for _ in range(3)] for _ in range(3)]  # taps[r][c][s]
    for a in range(2):
        for b in range(2):
            s = 2 * a + b
            for u in range(2):
                wr = row_m[a][u]
                col_m = (wr[0], wr[1] + wr[2]) if b == 0 else (wr[0] + wr[1], wr[2])
                for v in range(2):
                    taps[a + u][b + v][s] = col_m[v]           # (Cin, Cout)
    rows = []
    for r in range(3):
        cols = []
        for c in range(3):
            blocks = [t if t is not None else zero for t in taps[r][c]]
            cols.append(jnp.concatenate(blocks, axis=1))       # (Cin, 4*Cout)
        rows.append(jnp.stack(cols, axis=0))
    return jnp.stack(rows, axis=0)                             # (3, 3, Cin, 4*Cout)


def _make_fused_kernel(N, H, W, Cin, Cout, eps):
    HW = H * W
    C4 = 4 * Cout
    inv_count = 1.0 / float(N * 4 * HW)                        # 1 / (N * 2H * 2W)

    def kernel(x_ref, w_ref, gamma_ref, beta_ref, o_ref, sum_ref, ssq_ref):
        n = pl.program_id(0)

        @pl.when(n == 0)
        def _init():
            sum_ref[...] = jnp.zeros_like(sum_ref)
            ssq_ref[...] = jnp.zeros_like(ssq_ref)

        # 9 shifted (HW, Cin) views of the halo-padded ORIGINAL-resolution image,
        # each hitting the MXU once against its merged (Cin, 4*Cout) tap weight.
        # (W % 8 == 0 makes the (H, W, Cin) -> (HW, Cin) reshape a free retile.)
        y = None
        for r in range(3):
            for c in range(3):
                xs = x_ref[0, r:r + H, c:c + W, :].reshape(HW, Cin)
                t = jnp.dot(xs, w_ref[r, c], preferred_element_type=jnp.float32)
                y = t if y is None else y + t

        o_ref[n] = y                                           # VMEM-resident until finalize

        sum_ref[...] += jnp.sum(y, axis=0, keepdims=True)      # (1, 4*Cout)
        ssq_ref[...] += jnp.sum(y * y, axis=0, keepdims=True)

        # Last batch element: statistics are complete -> BN + ReLU in place on the
        # VMEM-resident conv output (single HBM writeback, no re-read of y).
        @pl.when(n == pl.num_programs(0) - 1)
        def _finalize():
            s = sum_ref[...]
            q = ssq_ref[...]
            # Fold the 4 sub-pixel groups into true per-channel batch statistics.
            tot = (s[:, 0:Cout] + s[:, Cout:2 * Cout]
                   + s[:, 2 * Cout:3 * Cout] + s[:, 3 * Cout:4 * Cout])
            totq = (q[:, 0:Cout] + q[:, Cout:2 * Cout]
                    + q[:, 2 * Cout:3 * Cout] + q[:, 3 * Cout:4 * Cout])
            mean = tot * inv_count
            var = totq * inv_count - mean * mean               # biased (training BN)
            scale = gamma_ref[...] * lax.rsqrt(var + eps)      # (1, Cout)
            shift = beta_ref[...] - mean * scale
            scale4 = jnp.concatenate([scale, scale, scale, scale], axis=1)  # (1, 4*Cout)
            shift4 = jnp.concatenate([shift, shift, shift, shift], axis=1)
            for nn in range(N):                                # static unroll over batch
                o_ref[nn] = jnp.maximum(o_ref[nn] * scale4 + shift4, 0.0)

    return kernel


def up_conv_forward(x_nchw, params, *, eps=1e-5):
    w = params["w"]                                            # (3, 3, Cin, Cout) HWIO
    gamma, beta = params["gamma"], params["beta"]
    # params["b"] (conv bias) cancels exactly under training-mode BatchNorm and is
    # intentionally not used in the kernel.
    N, Cin, H, W = x_nchw.shape
    Cout = w.shape[3]
    C4 = 4 * Cout
    HW = H * W

    x = jnp.transpose(x_nchw, (0, 2, 3, 1))                    # NCHW -> NHWC
    x_pad = jnp.pad(x, ((0, 0), (1, 1), (1, 1), (0, 0)))       # 1-px halo at ORIGINAL res
    w_tap = _merged_tap_weights(w)                             # (3, 3, Cin, 4*Cout)

    out_k = pl.pallas_call(
        _make_fused_kernel(N, H, W, Cin, Cout, eps),
        grid=(N,),
        in_specs=[
            pl.BlockSpec((1, H + 2, W + 2, Cin), lambda n: (n, 0, 0, 0)),
            pl.BlockSpec((3, 3, Cin, C4), lambda n: (0, 0, 0, 0)),
            pl.BlockSpec((1, Cout), lambda n: (0, 0)),
            pl.BlockSpec((1, Cout), lambda n: (0, 0)),
        ],
        # Constant index_map -> whole output stays resident in VMEM across the
        # batch grid; written back to HBM once after the final step.
        out_specs=pl.BlockSpec((N, HW, C4), lambda n: (0, 0, 0)),
        out_shape=jax.ShapeDtypeStruct((N, HW, C4), jnp.float32),
        scratch_shapes=[pltpu.VMEM((1, C4), jnp.float32),      # sum(y)   per subpix-channel
                        pltpu.VMEM((1, C4), jnp.float32)],     # sum(y*y) per subpix-channel
        compiler_params=pltpu.CompilerParams(dimension_semantics=("arbitrary",)),
    )(x_pad, w_tap, gamma.reshape(1, Cout), beta.reshape(1, Cout))

    # Sub-pixel untangle fused into the single NHWC->NCHW transpose (layout glue).
    out = out_k.reshape(N, H, W, 2, 2, Cout)                   # (n, i, j, a, b, c)
    out = jnp.transpose(out, (0, 5, 1, 3, 2, 4))               # (n, c, i, a, j, b)
    return out.reshape(N, Cout, 2 * H, 2 * W)


def _reference(x_nchw, params, eps=1e-5):
    """Pure-JAX reference of the PyTorch forward (training-mode BatchNorm, with bias)."""
    x = jnp.transpose(x_nchw, (0, 2, 3, 1))
    x_up = jnp.repeat(jnp.repeat(x, 2, axis=1), 2, axis=2)
    y = lax.conv_general_dilated(
        x_up, params["w"], window_strides=(1, 1), padding=((1, 1), (1, 1)),
        dimension_numbers=("NHWC", "HWIO", "NHWC"))
    y = y + params["b"]
    mean = jnp.mean(y, axis=(0, 1, 2))
    var = jnp.mean((y - mean) ** 2, axis=(0, 1, 2))            # biased variance
    y = (y - mean) * lax.rsqrt(var + eps) * params["gamma"] + params["beta"]
    y = jnp.maximum(y, 0.0)
    return jnp.transpose(y, (0, 3, 1, 2))


if __name__ == "__main__":
    key = jax.random.PRNGKey(0)
    k1, k2, k3, k4, k5 = jax.random.split(key, 5)

    N, Cin, Cout, H, W = 2, 4, 8, 16, 16
    x = jax.random.normal(k1, (N, Cin, H, W), jnp.float32)

    # Deterministic synthetic parameters (shapes per nn.Conv2d / nn.BatchNorm2d).
    params = {
        "w": 0.1 * jax.random.normal(k2, (3, 3, Cin, Cout), jnp.float32),  # HWIO
        "b": 0.1 * jax.random.normal(k3, (Cout,), jnp.float32),
        "gamma": 1.0 + 0.1 * jax.random.normal(k4, (Cout,), jnp.float32),
        "beta": 0.1 * jax.random.normal(k5, (Cout,), jnp.float32),
    }

    out = jax.block_until_ready(up_conv_forward(x, params))
    assert out.shape == (N, Cout, 2 * H, 2 * W), out.shape

    ref = _reference(x, params)
    np.testing.assert_allclose(np.asarray(out), np.asarray(ref),
                               rtol=1e-3, atol=1e-3)
    print("KERNEL_OK")
</pallas_src>

<mosaic_0001>
module attributes {stable_mosaic.version = 11 : i64} {
  func.func @kernel(%arg0: i32, %arg1: memref<1x18x18x4xf32, #tpu.memory_space<vmem>>, %arg2: memref<3x3x4x32xf32, #tpu.memory_space<vmem>>, %arg3: memref<1x8xf32, #tpu.memory_space<vmem>>, %arg4: memref<1x8xf32, #tpu.memory_space<vmem>>, %arg5: memref<2x256x32xf32, #tpu.memory_space<vmem>>, %arg6: memref<1x32xf32, #tpu.memory_space<vmem>>, %arg7: memref<1x32xf32, #tpu.memory_space<vmem>>) attributes {dimension_semantics = [#tpu.dimension_semantics<arbitrary>], iteration_bounds = array<i64: 2>, scalar_prefetch = 0 : i64, scratch_operands = 2 : i64, tpu.core_type = #tpu.core_type<tc>, window_params = [{transform_indices = @transform_0, window_bounds = array<i64: 1, 18, 18, 4>}, {pipeline_mode = #tpu.pipeline_mode<synchronous>, transform_indices = @transform_1, window_bounds = array<i64: 3, 3, 4, 32>}, {pipeline_mode = #tpu.pipeline_mode<synchronous>, transform_indices = @transform_2, window_bounds = array<i64: 1, 8>}, {pipeline_mode = #tpu.pipeline_mode<synchronous>, transform_indices = @transform_3, window_bounds = array<i64: 1, 8>}, {pipeline_mode = #tpu.pipeline_mode<synchronous>, transform_indices = @transform_4, window_bounds = array<i64: 2, 256, 32>}]} {
    %c0_i32 = arith.constant 0 : i32
    %0 = arith.cmpi eq, %arg0, %c0_i32 : i32
    %1 = arith.extui %0 : i1 to i32
    %c0_i32_0 = arith.constant 0 : i32
    %2 = arith.cmpi ne, %1, %c0_i32_0 : i32
    scf.if %2 {
      %cst_91 = arith.constant 0.000000e+00 : f32
      %83 = vector.broadcast %cst_91 : f32 to vector<1x32xf32>
      %c0_92 = arith.constant 0 : index
      %c0_93 = arith.constant 0 : index
      %84 = vector.load %arg6[%c0_92, %c0_93] : memref<1x32xf32, #tpu.memory_space<vmem>>, vector<1x32xf32>
      tpu.vector_store %arg6[%c0_92, %c0_93], %83 {strides = array<i32>} : memref<1x32xf32, #tpu.memory_space<vmem>>, vector<1x32xf32>,
      %cst_94 = arith.constant 0.000000e+00 : f32
      %85 = vector.broadcast %cst_94 : f32 to vector<1x32xf32>
      %c0_95 = arith.constant 0 : index
      %c0_96 = arith.constant 0 : index
      %86 = vector.load %arg7[%c0_95, %c0_96] : memref<1x32xf32, #tpu.memory_space<vmem>>, vector<1x32xf32>
      tpu.vector_store %arg7[%c0_95, %c0_96], %85 {strides = array<i32>} : memref<1x32xf32, #tpu.memory_space<vmem>>, vector<1x32xf32>,
    } else {
    }
    %c0 = arith.constant 0 : index
    %c0_1 = arith.constant 0 : index
    %c0_2 = arith.constant 0 : index
    %c0_3 = arith.constant 0 : index
    %3 = vector.load %arg1[%c0, %c0_1, %c0_2, %c0_3] : memref<1x18x18x4xf32, #tpu.memory_space<vmem>>, vector<1x16x16x4xf32>
    %4 = vector.shape_cast %3 : vector<1x16x16x4xf32> to vector<16x16x4xf32>
    %5 = vector.shape_cast %4 : vector<16x16x4xf32> to vector<256x4xf32>
    %c0_4 = arith.constant 0 : index
    %c0_5 = arith.constant 0 : index
    %c0_6 = arith.constant 0 : index
    %c0_7 = arith.constant 0 : index
    %6 = vector.load %arg2[%c0_4, %c0_5, %c0_6, %c0_7] : memref<3x3x4x32xf32, #tpu.memory_space<vmem>>, vector<1x1x4x32xf32>
    %7 = vector.shape_cast %6 : vector<1x1x4x32xf32> to vector<4x32xf32>
    %cst = arith.constant dense<0.000000e+00> : vector<256x32xf32>
    %8 = tpu.matmul %5, %7, %cst {dimension_numbers = #tpu.dot_dimension_numbers<[1], [0], [0], [1], [0, 0, 1, 1], [], []>} : vector<256x4xf32>, vector<4x32xf32>, vector<256x32xf32> -> vector<256x32xf32>
    %c0_8 = arith.constant 0 : index
    %c0_9 = arith.constant 0 : index
    %c1 = arith.constant 1 : index
    %c0_10 = arith.constant 0 : index
    %9 = vector.load %arg1[%c0_8, %c0_9, %c1, %c0_10] : memref<1x18x18x4xf32, #tpu.memory_space<vmem>>, vector<1x16x16x4xf32>
    %10 = vector.shape_cast %9 : vector<1x16x16x4xf32> to vector<16x16x4xf32>
    %11 = vector.shape_cast %10 : vector<16x16x4xf32> to vector<256x4xf32>
    %c0_11 = arith.constant 0 : index
    %c1_12 = arith.constant 1 : index
    %c0_13 = arith.constant 0 : index
    %c0_14 = arith.constant 0 : index
    %12 = vector.load %arg2[%c0_11, %c1_12, %c0_13, %c0_14] : memref<3x3x4x32xf32, #tpu.memory_space<vmem>>, vector<1x1x4x32xf32>
    %13 = vector.shape_cast %12 : vector<1x1x4x32xf32> to vector<4x32xf32>
    %cst_15 = arith.constant dense<0.000000e+00> : vector<256x32xf32>
    %14 = tpu.matmul %11, %13, %cst_15 {dimension_numbers = #tpu.dot_dimension_numbers<[1], [0], [0], [1], [0, 0, 1, 1], [], []>} : vector<256x4xf32>, vector<4x32xf32>, vector<256x32xf32> -> vector<256x32xf32>
    %15 = arith.addf %8, %14 : vector<256x32xf32>
    %c0_16 = arith.constant 0 : index
    %c0_17 = arith.constant 0 : index
    %c2 = arith.constant 2 : index
    %c0_18 = arith.constant 0 : index
    %16 = vector.load %arg1[%c0_16, %c0_17, %c2, %c0_18] : memref<1x18x18x4xf32, #tpu.memory_space<vmem>>, vector<1x16x16x4xf32>
    %17 = vector.shape_cast %16 : vector<1x16x16x4xf32> to vector<16x16x4xf32>
    %18 = vector.shape_cast %17 : vector<16x16x4xf32> to vector<256x4xf32>
    %c0_19 = arith.constant 0 : index
    %c2_20 = arith.constant 2 : index
    %c0_21 = arith.constant 0 : index
    %c0_22 = arith.constant 0 : index
    %19 = vector.load %arg2[%c0_19, %c2_20, %c0_21, %c0_22] : memref<3x3x4x32xf32, #tpu.memory_space<vmem>>, vector<1x1x4x32xf32>
    %20 = vector.shape_cast %19 : vector<1x1x4x32xf32> to vector<4x32xf32>
    %cst_23 = arith.constant dense<0.000000e+00> : vector<256x32xf32>
    %21 = tpu.matmul %18, %20, %cst_23 {dimension_numbers = #tpu.dot_dimension_numbers<[1], [0], [0], [1], [0, 0, 1, 1], [], []>} : vector<256x4xf32>, vector<4x32xf32>, vector<256x32xf32> -> vector<256x32xf32>
    %22 = arith.addf %15, %21 : vector<256x32xf32>
    %c0_24 = arith.constant 0 : index
    %c1_25 = arith.constant 1 : index
    %c0_26 = arith.constant 0 : index
    %c0_27 = arith.constant 0 : index
    %23 = vector.load %arg1[%c0_24, %c1_25, %c0_26, %c0_27] : memref<1x18x18x4xf32, #tpu.memory_space<vmem>>, vector<1x16x16x4xf32>
    %24 = vector.shape_cast %23 : vector<1x16x16x4xf32> to vector<16x16x4xf32>
    %25 = vector.shape_cast %24 : vector<16x16x4xf32> to vector<256x4xf32>
    %c1_28 = arith.constant 1 : index
    %c0_29 = arith.constant 0 : index
    %c0_30 = arith.constant 0 : index
    %c0_31 = arith.constant 0 : index
    %26 = vector.load %arg2[%c1_28, %c0_29, %c0_30, %c0_31] : memref<3x3x4x32xf32, #tpu.memory_space<vmem>>, vector<1x1x4x32xf32>
    %27 = vector.shape_cast %26 : vector<1x1x4x32xf32> to vector<4x32xf32>
    %cst_32 = arith.constant dense<0.000000e+00> : vector<256x32xf32>
    %28 = tpu.matmul %25, %27, %cst_32 {dimension_numbers = #tpu.dot_dimension_numbers<[1], [0], [0], [1], [0, 0, 1, 1], [], []>} : vector<256x4xf32>, vector<4x32xf32>, vector<256x32xf32> -> vector<256x32xf32>
    %29 = arith.addf %22, %28 : vector<256x32xf32>
    %c0_33 = arith.constant 0 : index
    %c1_34 = arith.constant 1 : index
    %c1_35 = arith.constant 1 : index
    %c0_36 = arith.constant 0 : index
    %30 = vector.load %arg1[%c0_33, %c1_34, %c1_35, %c0_36] : memref<1x18x18x4xf32, #tpu.memory_space<vmem>>, vector<1x16x16x4xf32>
    %31 = vector.shape_cast %30 : vector<1x16x16x4xf32> to vector<16x16x4xf32>
    %32 = vector.shape_cast %31 : vector<16x16x4xf32> to vector<256x4xf32>
    %c1_37 = arith.constant 1 : index
    %c1_38 = arith.constant 1 : index
    %c0_39 = arith.constant 0 : index
    %c0_40 = arith.constant 0 : index
    %33 = vector.load %arg2[%c1_37, %c1_38, %c0_39, %c0_40] : memref<3x3x4x32xf32, #tpu.memory_space<vmem>>, vector<1x1x4x32xf32>
    %34 = vector.shape_cast %33 : vector<1x1x4x32xf32> to vector<4x32xf32>
    %cst_41 = arith.constant dense<0.000000e+00> : vector<256x32xf32>
    %35 = tpu.matmul %32, %34, %cst_41 {dimension_numbers = #tpu.dot_dimension_numbers<[1], [0], [0], [1], [0, 0, 1, 1], [], []>} : vector<256x4xf32>, vector<4x32xf32>, vector<256x32xf32> -> vector<256x32xf32>
    %36 = arith.addf %29, %35 : vector<256x32xf32>
    %c0_42 = arith.constant 0 : index
    %c1_43 = arith.constant 1 : index
    %c2_44 = arith.constant 2 : index
    %c0_45 = arith.constant 0 : index
    %37 = vector.load %arg1[%c0_42, %c1_43, %c2_44, %c0_45] : memref<1x18x18x4xf32, #tpu.memory_space<vmem>>, vector<1x16x16x4xf32>
    %38 = vector.shape_cast %37 : vector<1x16x16x4xf32> to vector<16x16x4xf32>
    %39 = vector.shape_cast %38 : vector<16x16x4xf32> to vector<256x4xf32>
    %c1_46 = arith.constant 1 : index
    %c2_47 = arith.constant 2 : index
    %c0_48 = arith.constant 0 : index
    %c0_49 = arith.constant 0 : index
    %40 = vector.load %arg2[%c1_46, %c2_47, %c0_48, %c0_49] : memref<3x3x4x32xf32, #tpu.memory_space<vmem>>, vector<1x1x4x32xf32>
    %41 = vector.shape_cast %40 : vector<1x1x4x32xf32> to vector<4x32xf32>
    %cst_50 = arith.constant dense<0.000000e+00> : vector<256x32xf32>
    %42 = tpu.matmul %39, %41, %cst_50 {dimension_numbers = #tpu.dot_dimension_numbers<[1], [0], [0], [1], [0, 0, 1, 1], [], []>} : vector<256x4xf32>, vector<4x32xf32>, vector<256x32xf32> -> vector<256x32xf32>
    %43 = arith.addf %36, %42 : vector<256x32xf32>
    %c0_51 = arith.constant 0 : index
    %c2_52 = arith.constant 2 : index
    %c0_53 = arith.constant 0 : index
    %c0_54 = arith.constant 0 : index
    %44 = vector.load %arg1[%c0_51, %c2_52, %c0_53, %c0_54] : memref<1x18x18x4xf32, #tpu.memory_space<vmem>>, vector<1x16x16x4xf32>
    %45 = vector.shape_cast %44 : vector<1x16x16x4xf32> to vector<16x16x4xf32>
    %46 = vector.shape_cast %45 : vector<16x16x4xf32> to vector<256x4xf32>
    %c2_55 = arith.constant 2 : index
    %c0_56 = arith.constant 0 : index
    %c0_57 = arith.constant 0 : index
    %c0_58 = arith.constant 0 : index
    %47 = vector.load %arg2[%c2_55, %c0_56, %c0_57, %c0_58] : memref<3x3x4x32xf32, #tpu.memory_space<vmem>>, vector<1x1x4x32xf32>
    %48 = vector.shape_cast %47 : vector<1x1x4x32xf32> to vector<4x32xf32>
    %cst_59 = arith.constant dense<0.000000e+00> : vector<256x32xf32>
    %49 = tpu.matmul %46, %48, %cst_59 {dimension_numbers = #tpu.dot_dimension_numbers<[1], [0], [0], [1], [0, 0, 1, 1], [], []>} : vector<256x4xf32>, vector<4x32xf32>, vector<256x32xf32> -> vector<256x32xf32>
    %50 = arith.addf %43, %49 : vector<256x32xf32>
    %c0_60 = arith.constant 0 : index
    %c2_61 = arith.constant 2 : index
    %c1_62 = arith.constant 1 : index
    %c0_63 = arith.constant 0 : index
    %51 = vector.load %arg1[%c0_60, %c2_61, %c1_62, %c0_63] : memref<1x18x18x4xf32, #tpu.memory_space<vmem>>, vector<1x16x16x4xf32>
    %52 = vector.shape_cast %51 : vector<1x16x16x4xf32> to vector<16x16x4xf32>
    %53 = vector.shape_cast %52 : vector<16x16x4xf32> to vector<256x4xf32>
    %c2_64 = arith.constant 2 : index
    %c1_65 = arith.constant 1 : index
    %c0_66 = arith.constant 0 : index
    %c0_67 = arith.constant 0 : index
    %54 = vector.load %arg2[%c2_64, %c1_65, %c0_66, %c0_67] : memref<3x3x4x32xf32, #tpu.memory_space<vmem>>, vector<1x1x4x32xf32>
    %55 = vector.shape_cast %54 : vector<1x1x4x32xf32> to vector<4x32xf32>
    %cst_68 = arith.constant dense<0.000000e+00> : vector<256x32xf32>
    %56 = tpu.matmul %53, %55, %cst_68 {dimension_numbers = #tpu.dot_dimension_numbers<[1], [0], [0], [1], [0, 0, 1, 1], [], []>} : vector<256x4xf32>, vector<4x32xf32>, vector<256x32xf32> -> vector<256x32xf32>
    %57 = arith.addf %50, %56 : vector<256x32xf32>
    %c0_69 = arith.constant 0 : index
    %c2_70 = arith.constant 2 : index
    %c2_71 = arith.constant 2 : index
    %c0_72 = arith.constant 0 : index
    %58 = vector.load %arg1[%c0_69, %c2_70, %c2_71, %c0_72] : memref<1x18x18x4xf32, #tpu.memory_space<vmem>>, vector<1x16x16x4xf32>
    %59 = vector.shape_cast %58 : vector<1x16x16x4xf32> to vector<16x16x4xf32>
    %60 = vector.shape_cast %59 : vector<16x16x4xf32> to vector<256x4xf32>
    %c2_73 = arith.constant 2 : index
    %c2_74 = arith.constant 2 : index
    %c0_75 = arith.constant 0 : index
    %c0_76 = arith.constant 0 : index
    %61 = vector.load %arg2[%c2_73, %c2_74, %c0_75, %c0_76] : memref<3x3x4x32xf32, #tpu.memory_space<vmem>>, vector<1x1x4x32xf32>
    %62 = vector.shape_cast %61 : vector<1x1x4x32xf32> to vector<4x32xf32>
    %cst_77 = arith.constant dense<0.000000e+00> : vector<256x32xf32>
    %63 = tpu.matmul %60, %62, %cst_77 {dimension_numbers = #tpu.dot_dimension_numbers<[1], [0], [0], [1], [0, 0, 1, 1], [], []>} : vector<256x4xf32>, vector<4x32xf32>, vector<256x32xf32> -> vector<256x32xf32>
    %64 = arith.addf %57, %63 : vector<256x32xf32>
    %65 = arith.index_cast %arg0 : i32 to index
    %c0_78 = arith.constant 0 : index
    %c0_79 = arith.constant 0 : index
    %66 = vector.load %arg5[%65, %c0_78, %c0_79] : memref<2x256x32xf32, #tpu.memory_space<vmem>>, vector<1x256x32xf32>
    %67 = vector.shape_cast %66 : vector<1x256x32xf32> to vector<256x32xf32>
    %68 = vector.shape_cast %64 : vector<256x32xf32> to vector<1x256x32xf32>
    tpu.vector_store %arg5[%65, %c0_78, %c0_79], %68 {strides = array<i32>} : memref<2x256x32xf32, #tpu.memory_space<vmem>>, vector<1x256x32xf32>,
    %c0_80 = arith.constant 0 : index
    %c0_81 = arith.constant 0 : index
    %69 = vector.load %arg6[%c0_80, %c0_81] : memref<1x32xf32, #tpu.memory_space<vmem>>, vector<1x32xf32>
    %cst_82 = arith.constant dense<0.000000e+00> : vector<32xf32>
    %70 = vector.multi_reduction <add>, %64, %cst_82 [0] : vector<256x32xf32> to vector<32xf32>
    %71 = vector.shape_cast %70 : vector<32xf32> to vector<1x32xf32>
    %72 = arith.addf %69, %71 : vector<1x32xf32>
    %c0_83 = arith.constant 0 : index
    %c0_84 = arith.constant 0 : index
    %73 = vector.load %arg6[%c0_83, %c0_84] : memref<1x32xf32, #tpu.memory_space<vmem>>, vector<1x32xf32>
    tpu.vector_store %arg6[%c0_83, %c0_84], %72 {strides = array<i32>} : memref<1x32xf32, #tpu.memory_space<vmem>>, vector<1x32xf32>,
    %c0_85 = arith.constant 0 : index
    %c0_86 = arith.constant 0 : index
    %74 = vector.load %arg7[%c0_85, %c0_86] : memref<1x32xf32, #tpu.memory_space<vmem>>, vector<1x32xf32>
    %75 = arith.mulf %64, %64 : vector<256x32xf32>
    %cst_87 = arith.constant dense<0.000000e+00> : vector<32xf32>
    %76 = vector.multi_reduction <add>, %75, %cst_87 [0] : vector<256x32xf32> to vector<32xf32>
    %77 = vector.shape_cast %76 : vector<32xf32> to vector<1x32xf32>
    %78 = arith.addf %74, %77 : vector<1x32xf32>
    %c0_88 = arith.constant 0 : index
    %c0_89 = arith.constant 0 : index
    %79 = vector.load %arg7[%c0_88, %c0_89] : memref<1x32xf32, #tpu.memory_space<vmem>>, vector<1x32xf32>
    tpu.vector_store %arg7[%c0_88, %c0_89], %78 {strides = array<i32>} : memref<1x32xf32, #tpu.memory_space<vmem>>, vector<1x32xf32>,
    %c1_i32 = arith.constant 1 : i32
    %80 = arith.cmpi eq, %arg0, %c1_i32 : i32
    %81 = arith.extui %80 : i1 to i32
    %c0_i32_90 = arith.constant 0 : i32
    %82 = arith.cmpi ne, %81, %c0_i32_90 : i32
    scf.if %82 {
      %c0_91 = arith.constant 0 : index
      %c0_92 = arith.constant 0 : index
      %83 = vector.load %arg6[%c0_91, %c0_92] : memref<1x32xf32, #tpu.memory_space<vmem>>, vector<1x32xf32>
      %c0_93 = arith.constant 0 : index
      %c0_94 = arith.constant 0 : index
      %84 = vector.load %arg7[%c0_93, %c0_94] : memref<1x32xf32, #tpu.memory_space<vmem>>, vector<1x32xf32>
      %85 = vector.extract_strided_slice %83 {offsets = [0, 0], sizes = [1, 8], strides = [1, 1]} : vector<1x32xf32> to vector<1x8xf32>
      %86 = vector.extract_strided_slice %83 {offsets = [0, 8], sizes = [1, 8], strides = [1, 1]} : vector<1x32xf32> to vector<1x8xf32>
      %87 = arith.addf %85, %86 : vector<1x8xf32>
      %88 = vector.extract_strided_slice %83 {offsets = [0, 16], sizes = [1, 8], strides = [1, 1]} : vector<1x32xf32> to vector<1x8xf32>
      %89 = arith.addf %87, %88 : vector<1x8xf32>
      %90 = vector.extract_strided_slice %83 {offsets = [0, 24], sizes = [1, 8], strides = [1, 1]} : vector<1x32xf32> to vector<1x8xf32>
      %91 = arith.addf %89, %90 : vector<1x8xf32>
      %92 = vector.extract_strided_slice %84 {offsets = [0, 0], sizes = [1, 8], strides = [1, 1]} : vector<1x32xf32> to vector<1x8xf32>
      %93 = vector.extract_strided_slice %84 {offsets = [0, 8], sizes = [1, 8], strides = [1, 1]} : vector<1x32xf32> to vector<1x8xf32>
      %94 = arith.addf %92, %93 : vector<1x8xf32>
      %95 = vector.extract_strided_slice %84 {offsets = [0, 16], sizes = [1, 8], strides = [1, 1]} : vector<1x32xf32> to vector<1x8xf32>
      %96 = arith.addf %94, %95 : vector<1x8xf32>
      %97 = vector.extract_strided_slice %84 {offsets = [0, 24], sizes = [1, 8], strides = [1, 1]} : vector<1x32xf32> to vector<1x8xf32>
      %98 = arith.addf %96, %97 : vector<1x8xf32>
      %cst_95 = arith.constant 4.8828125E-4 : f32
      %99 = vector.broadcast %cst_95 : f32 to vector<1x8xf32>
      %100 = arith.mulf %91, %99 : vector<1x8xf32>
      %cst_96 = arith.constant 4.8828125E-4 : f32
      %101 = vector.broadcast %cst_96 : f32 to vector<1x8xf32>
      %102 = arith.mulf %98, %101 : vector<1x8xf32>
      %103 = arith.mulf %100, %100 : vector<1x8xf32>
      %104 = arith.subf %102, %103 : vector<1x8xf32>
      %c0_97 = arith.constant 0 : index
      %c0_98 = arith.constant 0 : index
      %105 = vector.load %arg3[%c0_97, %c0_98] : memref<1x8xf32, #tpu.memory_space<vmem>>, vector<1x8xf32>
      %cst_99 = arith.constant 9.99999974E-6 : f32
      %106 = vector.broadcast %cst_99 : f32 to vector<1x8xf32>
      %107 = arith.addf %104, %106 : vector<1x8xf32>
      %108 = math.rsqrt %107 : vector<1x8xf32>
      %109 = arith.mulf %105, %108 : vector<1x8xf32>
      %c0_100 = arith.constant 0 : index
      %c0_101 = arith.constant 0 : index
      %110 = vector.load %arg4[%c0_100, %c0_101] : memref<1x8xf32, #tpu.memory_space<vmem>>, vector<1x8xf32>
      %111 = arith.mulf %100, %109 : vector<1x8xf32>
      %112 = arith.subf %110, %111 : vector<1x8xf32>
      %113 = tpu.concatenate %109, %109, %109, %109 in 1 : vector<1x8xf32>, vector<1x8xf32>, vector<1x8xf32>, vector<1x8xf32> -> vector<1x32xf32>
      %114 = tpu.concatenate %112, %112, %112, %112 in 1 : vector<1x8xf32>, vector<1x8xf32>, vector<1x8xf32>, vector<1x8xf32> -> vector<1x32xf32>
      %c0_102 = arith.constant 0 : index
      %c0_103 = arith.constant 0 : index
      %c0_104 = arith.constant 0 : index
      %115 = vector.load %arg5[%c0_102, %c0_103, %c0_104] : memref<2x256x32xf32, #tpu.memory_space<vmem>>, vector<1x256x32xf32>
      %116 = vector.shape_cast %115 : vector<1x256x32xf32> to vector<256x32xf32>
      %117 = vector.broadcast %113 : vector<1x32xf32> to vector<256x32xf32>
      %118 = arith.mulf %116, %117 : vector<256x32xf32>
      %119 = vector.broadcast %114 : vector<1x32xf32> to vector<256x32xf32>
      %120 = arith.addf %118, %119 : vector<256x32xf32>
      %cst_105 = arith.constant 0.000000e+00 : f32
      %121 = vector.broadcast %cst_105 : f32 to vector<256x32xf32>
      %122 = arith.maximumf %120, %121 : vector<256x32xf32>
      %c0_106 = arith.constant 0 : index
      %c0_107 = arith.constant 0 : index
      %c0_108 = arith.constant 0 : index
      %123 = vector.load %arg5[%c0_106, %c0_107, %c0_108] : memref<2x256x32xf32, #tpu.memory_space<vmem>>, vector<1x256x32xf32>
      %124 = vector.shape_cast %123 : vector<1x256x32xf32> to vector<256x32xf32>
      %125 = vector.shape_cast %122 : vector<256x32xf32> to vector<1x256x32xf32>
      tpu.vector_store %arg5[%c0_106, %c0_107, %c0_108], %125 {strides = array<i32>} : memref<2x256x32xf32, #tpu.memory_space<vmem>>, vector<1x256x32xf32>,
      %c1_109 = arith.constant 1 : index
      %c0_110 = arith.constant 0 : index
      %c0_111 = arith.constant 0 : index
      %126 = vector.load %arg5[%c1_109, %c0_110, %c0_111] : memref<2x256x32xf32, #tpu.memory_space<vmem>>, vector<1x256x32xf32>
      %127 = vector.shape_cast %126 : vector<1x256x32xf32> to vector<256x32xf32>
      %128 = vector.broadcast %113 : vector<1x32xf32> to vector<256x32xf32>
      %129 = arith.mulf %127, %128 : vector<256x32xf32>
      %130 = vector.broadcast %114 : vector<1x32xf32> to vector<256x32xf32>
      %131 = arith.addf %129, %130 : vector<256x32xf32>
      %cst_112 = arith.constant 0.000000e+00 : f32
      %132 = vector.broadcast %cst_112 : f32 to vector<256x32xf32>
      %133 = arith.maximumf %131, %132 : vector<256x32xf32>
      %c1_113 = arith.constant 1 : index
      %c0_114 = arith.constant 0 : index
      %c0_115 = arith.constant 0 : index
      %134 = vector.load %arg5[%c1_113, %c0_114, %c0_115] : memref<2x256x32xf32, #tpu.memory_space<vmem>>, vector<1x256x32xf32>
      %135 = vector.shape_cast %134 : vector<1x256x32xf32> to vector<256x32xf32>
      %136 = vector.shape_cast %133 : vector<256x32xf32> to vector<1x256x32xf32>
      tpu.vector_store %arg5[%c1_113, %c0_114, %c0_115], %136 {strides = array<i32>} : memref<2x256x32xf32, #tpu.memory_space<vmem>>, vector<1x256x32xf32>,
    } else {
    }
    return
  }
  func.func @transform_0(%arg0: i32) -> (i32, i32, i32, i32) {
    %c0_i32 = arith.constant 0 : i32
    %c0_i32_0 = arith.constant 0 : i32
    %c0_i32_1 = arith.constant 0 : i32
    %c0_i32_2 = arith.constant 0 : i32
    return %arg0, %c0_i32, %c0_i32_0, %c0_i32_1 : i32, i32, i32, i32
  }
  func.func @transform_1(%arg0: i32) -> (i32, i32, i32, i32) {
    %c0_i32 = arith.constant 0 : i32
    %c0_i32_0 = arith.constant 0 : i32
    %c0_i32_1 = arith.constant 0 : i32
    %c0_i32_2 = arith.constant 0 : i32
    %c0_i32_3 = arith.constant 0 : i32
    return %c0_i32, %c0_i32_0, %c0_i32_1, %c0_i32_2 : i32, i32, i32, i32
  }
  func.func @transform_2(%arg0: i32) -> (i32, i32) {
    %c0_i32 = arith.constant 0 : i32
    %c0_i32_0 = arith.constant 0 : i32
    %c0_i32_1 = arith.constant 0 : i32
    return %c0_i32, %c0_i32_0 : i32, i32
  }
  func.func @transform_3(%arg0: i32) -> (i32, i32) {
    %c0_i32 = arith.constant 0 : i32
    %c0_i32_0 = arith.constant 0 : i32
    %c0_i32_1 = arith.constant 0 : i32
    return %c0_i32, %c0_i32_0 : i32, i32
  }
  func.func @transform_4(%arg0: i32) -> (i32, i32, i32) {
    %c0_i32 = arith.constant 0 : i32
    %c0_i32_0 = arith.constant 0 : i32
    %c0_i32_1 = arith.constant 0 : i32
    %c0_i32_2 = arith.constant 0 : i32
    return %c0_i32, %c0_i32_0, %c0_i32_1 : i32, i32, i32
  }
}

</mosaic_0001>

<bundles_post_ra>
// kernel: tpu_custom_call.1
= control target key start
LH: loop header
LB: loop body
LE: loop exit
PB: predicated region body
PF: predicated region fallthrough
CT: control target
= control target key end

     0   :  { %s3911_s15 = smov 0   ;;  %s5671_s0 = inlined_call_operand.vmem [shape: f32[2,18,18,4], index: 0, kind: input, shape index: {}]   ;;  %s5672_s1 = inlined_call_operand.vmem [shape: f32[3,3,4,32], index: 1, kind: input, shape index: {}]   ;;  %s5673_s2 = inlined_call_operand.vmem [shape: f32[1,8], index: 2, kind: input, shape index: {}]   ;;  %s5674_s3 = inlined_call_operand.vmem [shape: f32[1,8], index: 3, kind: input, shape index: {}]   ;;  %s5675_s4 = inlined_call_operand.vmem [shape: f32[2,256,32], index: 4, kind: output, shape index: {}]  }
   0x1 LB: > { %s3917_s16 = sadd.s32 4294967295, %s3877_s15   ;;  %p3282_p0 = scmp.ge.s32.totalorder %s3877_s15, 1  ;;  %s3877_s15 = sphi %s3911_s15, %s14_s15  }
   0x2   : > { %p157_p1 = scmp.lt.s32.totalorder %s3877_s15, 3 }
   0x4   : > { %p158_p2 = pnand %p3282_p0, %p157_p1 }
   0x6   : > { %161 = sbr.rel (%p158_p2) target bundleno = 1110 (0x456), region = 36 }
   0xb   : > { %p178_p3 = scmp.lt.s32.totalorder %s3917_s16, 1  ;;  %p3284_p4 = scmp.ne.s32.totalorder %s3917_s16, 0 }
   0xd   : > { %s179_s17 = scalar_select %p178_p3, %s3917_s16, 1 }
   0xe   : > { %186 = sbr.rel (%p3284_p4) target bundleno = 22 (0x16), region = 40 }
   0xf   : > { %s3853_s18 = smul.u32 432, %s179_s17 }
  0x11   : > { %s3926_s21 = scalar_lea.vmem %s5671_s0, %s3853_s18 }
  0x13   : > { %vm187_vm0 = vcmask 253952   ;;  %v3879_v0 = vmov 0.0  }
  0x14   : > { %188 = vst.msk [vmem:[#allocation2] sm:$0x1] %vm187_vm0, %v3879_v0 }
  0x15   : > { %189 = vst.msk [vmem:[#allocation3] sm:$0x1] %vm187_vm0, %v3879_v0 }
  0x16 PF: > { %v3285_v1 = vld [vmem:[%s5672_s1 + $0x4] sm:$0xf]  ;;  %vm354_vm1 = vcmask 1043456   ;;  %vm257_vm2 = vcmask 31744   ;;  %v3352_v4 = vld [vmem:[%s5672_s1 + $0x8] sm:$0xf] }
  0x17   : > { %v3933_v2 = vld [vmem:[%s3926_s21 + $0x61] sm:$0xff]  ;;  %3850 = vmatpush.msk.msra.mxu1 %vm354_vm1, %v3285_v1  ;;  %3851 = vmatpush.msk.msra.mxu2 %vm354_vm1, %v3285_v1  ;;  %v3418_v6 = vld [vmem:[%s5672_s1 + $0xc] sm:$0xf]  ;;  %v3484_v9 = vld [vmem:[%s5672_s1 + $0x10] sm:$0xf]  ;;  %s3782_s14 = sshll.u32 %s3917_s16, 8 }
  0x18   : > { %v3936_v3 = vld [vmem:[%s3926_s21 + $0xc1] sm:$0xff]  ;;  %3295 = vmatmul.msk.f32.vlgmr.msra.gmra.mxu1 %vm257_vm2, %v3933_v2  ;;  %3852 = vmatpush.msk.msra.mxu3 %vm354_vm1, %v3285_v1  ;;  %v3969_v10 = vld [vmem:[%s3926_s21 + $0x69] sm:$0xff]  ;;  %v3987_v14 = vld [vmem:[%s3926_s21 + $0x79] sm:$0xff]  ;;  %s4804_s19 = scalar_lea.vmem %s5675_s4, %s3782_s14  ;;  %vm2633_vm3 = vcmask 261120   ;;  %vm2737_vm4 = vcmask 253952   ;;  %p3783_p5 = scmp.ne.s32.totalorder %s3917_s16, 1 }
  0x19   : > { %v3944_v5 = vld [vmem:[%s3926_s21 + $0x121] sm:$0xff]  ;;  %3303 = vmatmul.msk.f32.vlgmr.msra.gmra.mxu2 %vm257_vm2, %v3936_v3  ;;  %3286 = vmatpush.msk.msra.mxu0 %vm354_vm1, %v3285_v1  ;;  %v3972_v11 = vld [vmem:[%s3926_s21 + $0xc9] sm:$0xff]  ;;  %v3990_v15 = vld [vmem:[%s3926_s21 + $0xd9] sm:$0xff]  ;;  %s3880_s20 = smov (!%p3783_p5), 120   ;;  %s3882_s22 = smov (!%p3783_p5), 104  }
  0x1a   : > { %v222_v7 = vld [vmem:[%s5672_s1] sm:$0xf]  ;;  %3353 = vmatpush.msk.msrb.mxu2 %vm354_vm1, %v3352_v4  ;;  %3311 = vmatmul.msk.f32.vlgmr.msra.gmra.mxu3 %vm257_vm2, %v3944_v5  ;;  %v3976_v12 = vld [vmem:[%s3926_s21 + $0x129] sm:$0xff]  ;;  %v4021_v22 = vld [vmem:[%s3926_s21 + $0x91] sm:$0xff]  ;;  %s3883_s26 = smov (!%p3783_p5), 24   ;;  %s3884_s27 = smov (!%p3783_p5), 16  }
  0x1b   : > { %v223_v8 = vld [vmem:[%s3926_s21 + $0x1] sm:$0xff]  ;;  %3319 = vmatpush.msk.msrb.mxu1 %vm354_vm1, %v222_v7  ;;  %3419 = vmatpush.msk.msrb.mxu3 %vm354_vm1, %v3418_v6  ;;  %v224_v13 = vld [vmem:[%s3926_s21 + $0x9] sm:$0xff]  ;;  %v3993_v16 = vld [vmem:[%s3926_s21 + $0x139] sm:$0xff]  ;;  %s3885_s28 = smov (!%p3783_p5), 8  }
  0x1c   : > { %3287 = vmatmul.msk.f32.vlgmr.msra.gmra.mxu0 %vm257_vm2, %v223_v8  ;;  %v225_v17 = vld [vmem:[%s3926_s21 + $0x19] sm:$0xff]  ;;  %v4004_v18 = vld [vmem:[%s3926_s21 + $0x81] sm:$0xff]  ;;  %v4024_v23 = vld [vmem:[%s3926_s21 + $0xf1] sm:$0xff] }
  0x1d   : > { %3485 = vmatpush.msk.msrb.mxu0 %vm354_vm1, %v3484_v9  ;;  %v4007_v19 = vld [vmem:[%s3926_s21 + $0xe1] sm:$0xff]  ;;  %v4027_v24 = vld [vmem:[%s3926_s21 + $0x151] sm:$0xff]  ;;  %v3682_v27 = vld [vmem:[%s5672_s1 + $0x1c] sm:$0xf] }
  0x1e   : > { %v4010_v20 = vld [vmem:[%s3926_s21 + $0x141] sm:$0xff]  ;;  %v3616_v25 = vld [vmem:[%s5672_s1 + $0x18] sm:$0xf]  ;;  %v3550_v28 = vld [vmem:[%s5672_s1 + $0x14] sm:$0xf]  ;;  %3683 = vmatpush.msk.msra.mxu3 %vm354_vm1, %v3682_v27 }
  0x1f   : > { %v226_v21 = vld [vmem:[%s3926_s21 + $0x21] sm:$0xff]  ;;  %v4037_v26 = vld [vmem:[%s3926_s21 + $0x31] sm:$0xff]  ;;  %3617 = vmatpush.msk.msra.mxu2 %vm354_vm1, %v3616_v25  ;;  %3551 = vmatpush.msk.msra.mxu1 %vm354_vm1, %v3550_v28  ;;  %v4053_v29 = vld [vmem:[%s3926_s21 + $0x99] sm:$0xff] }
  0x20   : > { %3296 = vmatmul.msk.f32.gmra.mxu1 %vm257_vm2, %v3969_v10  ;;  %v4056_v30 = vld [vmem:[%s3926_s21 + $0xf9] sm:$0xff]  ;;  %v4077_v34 = vld [vmem:[%s3926_s21 + $0xa9] sm:$0xff]  ;;  %v4097_v38 = vld [vmem:[%s3926_s21 + $0xb1] sm:$0xff] }
  0x21   : > { %3304 = vmatmul.msk.f32.gmra.mxu2 %vm257_vm2, %v3972_v11  ;;  %v4059_v31 = vld [vmem:[%s3926_s21 + $0x159] sm:$0xff]  ;;  %v4080_v35 = vld [vmem:[%s3926_s21 + $0x109] sm:$0xff]  ;;  %v4100_v39 = vld [vmem:[%s3926_s21 + $0x111] sm:$0xff] }
  0x22   : > { %3312 = vmatmul.msk.f32.gmra.mxu3 %vm257_vm2, %v3976_v12  ;;  %v4066_v32 = vld [vmem:[%s3926_s21 + $0x39] sm:$0xff]  ;;  %v4083_v36 = vld [vmem:[%s3926_s21 + $0x169] sm:$0xff]  ;;  %v4103_v40 = vld [vmem:[%s3926_s21 + $0x171] sm:$0xff] }
  0x23   : > { %v3748_v33 = vld [vmem:[%s5672_s1 + $0x20] sm:$0xf]  ;;  %v4090_v37 = vld [vmem:[%s3926_s21 + $0x49] sm:$0xff]  ;;  %v4110_v41 = vld [vmem:[%s3926_s21 + $0x51] sm:$0xff] }
  0x24   : > { %3288 = vmatmul.msk.f32.gmra.mxu0 %vm257_vm2, %v224_v13  ;;  %v190_v42 = vld [vmem:[%s3926_s21] sm:$0xff]  ;;  %v3386_v44 = vld [vmem:[%s3926_s21 + $0x18] sm:$0xff]  ;;  %v191_v45 = vld [vmem:[%s3926_s21 + $0x8] sm:$0xff] }
  0x25   : > { %3749 = vmatpush.msk.msra.mxu0 %vm354_vm1, %v3748_v33  ;;  %v683_v43 = vld [vmem:[%s3926_s21 + $0x2] sm:$0xff]  ;;  %v684_v46 = vld [vmem:[%s3926_s21 + $0xa] sm:$0xff]  ;;  %v4131_v48 = vld [vmem:[%s3926_s21 + $0x1a] sm:$0xff] }
  0x26   : > { %v3387_v47 = vld [vmem:[%s3926_s21 + $0x20] sm:$0xff]  ;;  %v4134_v49 = vld [vmem:[%s3926_s21 + $0x30] sm:$0xff]  ;;  %v4147_v51 = vld [vmem:[%s3926_s21 + $0x38] sm:$0xff] }
  0x27   : > { %v4144_v50 = vld [vmem:[%s3926_s21 + $0x22] sm:$0xff]  ;;  %v4157_v52 = vld [vmem:[%s3926_s21 + $0x32] sm:$0xff]  ;;  %v4171_v54 = vld [vmem:[%s3926_s21 + $0x3a] sm:$0xff] }
  0x28   : > { %3297 = vmatmul.msk.f32.gmra.mxu1 %vm257_vm2, %v3987_v14  ;;  %v4160_v53 = vld [vmem:[%s3926_s21 + $0x48] sm:$0xff]  ;;  %v4174_v55 = vld [vmem:[%s3926_s21 + $0x50] sm:$0xff]  ;;  %v4188_v57 = vld [vmem:[%s3926_s21 + $0x60] sm:$0xff] }
  0x29   : > { %3305 = vmatmul.msk.f32.gmra.mxu2 %vm257_vm2, %v3990_v15  ;;  %v4185_v56 = vld [vmem:[%s3926_s21 + $0x4a] sm:$0xff]  ;;  %v4199_v58 = vld [vmem:[%s3926_s21 + $0x52] sm:$0xff]  ;;  %v4215_v61 = vld [vmem:[%s3926_s21 + $0x62] sm:$0xff] }
  0x2a   : > { %3313 = vmatmul.msk.f32.gmra.mxu3 %vm257_vm2, %v3993_v16  ;;  %v4202_v59 = vld [vmem:[%s3926_s21 + $0x68] sm:$0xff]  ;;  %v4218_v62 = vld [vmem:[%s3926_s21 + $0x78] sm:$0xff]  ;;  %v4240_v6 = vld [vmem:[%s3926_s21 + $0x80] sm:$0xff] }
  0x2b   : > { %5700 = vst [vmem:[#allocation4_spill] sm:$0xff] %v4202_v59  ;;  %v4237_v4 = vld [vmem:[%s3926_s21 + $0x6a] sm:$0xff]  ;;  %v4259_v13 = vld [vmem:[%s3926_s21 + $0x7a] sm:$0xff]  ;;  %v4281_v27 = vld [vmem:[%s3926_s21 + $0x82] sm:$0xff] }
  0x2c   : > { %3289 = vmatmul.msk.f32.gmra.mxu0 %vm257_vm2, %v225_v17  ;;  %5701 = vst [vmem:[#allocation5_spill] sm:$0xff] %v4218_v62  ;;  %v4284_v28 = vld [vmem:[%s3926_s21 + $0x98] sm:$0xff] }
  0x2d   : > { %5703 = vst [vmem:[#allocation7_spill] sm:$0xff] %v4237_v4 }
  0x2e   : > { %5704 = vst [vmem:[#allocation8_spill] sm:$0xff] %v4240_v6 }
  0x2f   : > { %5706 = vst [vmem:[#allocation10_spill] sm:$0xff] %v4259_v13 }
  0x30   : > { %3298 = vmatmul.msk.f32.gmra.mxu1 %vm257_vm2, %v4004_v18  ;;  %5709 = vst [vmem:[#allocation13_spill] sm:$0xff] %v4281_v27 }
  0x31   : > { %3306 = vmatmul.msk.f32.gmra.mxu2 %vm257_vm2, %v4007_v19  ;;  %5710 = vst [vmem:[#allocation14_spill] sm:$0xff] %v4284_v28 }
  0x32   : > { %3314 = vmatmul.msk.f32.gmra.mxu3 %vm257_vm2, %v4010_v20 }
  0x34   : > { %3290 = vmatmul.msk.f32.gmra.mxu0 %vm257_vm2, %v226_v21 }
  0x38   : > { %3299 = vmatmul.msk.f32.gmra.mxu1 %vm257_vm2, %v4021_v22 }
  0x39   : > { %3307 = vmatmul.msk.f32.gmra.mxu2 %vm257_vm2, %v4024_v23 }
  0x3a   : > { %3315 = vmatmul.msk.f32.gmra.mxu3 %vm257_vm2, %v4027_v24 }
  0x3c   : > { %3291 = vmatmul.msk.f32.gmra.mxu0 %vm257_vm2, %v4037_v26 }
  0x40   : > { %3300 = vmatmul.msk.f32.gmra.mxu1 %vm257_vm2, %v4053_v29 }
  0x41   : > { %3308 = vmatmul.msk.f32.gmra.mxu2 %vm257_vm2, %v4056_v30 }
  0x42   : > { %3316 = vmatmul.msk.f32.gmra.mxu3 %vm257_vm2, %v4059_v31 }
  0x44   : > { %3292 = vmatmul.msk.f32.gmra.mxu0 %vm257_vm2, %v4066_v32 }
  0x48   : > { %3301 = vmatmul.msk.f32.gmra.mxu1 %vm257_vm2, %v4077_v34 }
  0x49   : > { %3309 = vmatmul.msk.f32.gmra.mxu2 %vm257_vm2, %v4080_v35 }
  0x4a   : > { %3317 = vmatmul.msk.f32.gmra.mxu3 %vm257_vm2, %v4083_v36 }
  0x4c   : > { %3293 = vmatmul.msk.f32.gmra.mxu0 %vm257_vm2, %v4090_v37 }
  0x50   : > { %3302 = vmatmul.msk.f32.gmra.mxu1 %vm257_vm2, %v4097_v38 }
  0x51   : > { %3310 = vmatmul.msk.f32.gmra.mxu2 %vm257_vm2, %v4100_v39 }
  0x52   : > { %3318 = vmatmul.msk.f32.gmra.mxu3 %vm257_vm2, %v4103_v40 }
  0x54   : > { %3294 = vmatmul.msk.f32.gmra.mxu0 %vm257_vm2, %v4110_v41 }
  0x58   : > { %3320 = vmatmul.msk.f32.vlgmr.msrb.gmra.mxu1 %vm257_vm2, %v190_v42 }
  0x59   : > { %3354 = vmatmul.msk.f32.vlgmr.msrb.gmra.mxu2 %vm257_vm2, %v683_v43 }
  0x5a   : > { %3420 = vmatmul.msk.f32.vlgmr.msrb.gmra.mxu3 %vm257_vm2, %v3386_v44 }
  0x5c   : > { %3486 = vmatmul.msk.f32.vlgmr.msrb.gmra.mxu0 %vm257_vm2, %v225_v17 }
  0x60   : > { %3321 = vmatmul.msk.f32.gmra.mxu1 %vm257_vm2, %v191_v45  ;;  %v4306_v45 = vld [vmem:[%s3926_s21 + $0xa8] sm:$0xff] }
  0x61   : > { %3355 = vmatmul.msk.f32.gmra.mxu2 %vm257_vm2, %v684_v46  ;;  %5713 = vst [vmem:[#allocation17_spill] sm:$0xff] %v4306_v45 }
  0x62   : > { %3421 = vmatmul.msk.f32.gmra.mxu3 %vm257_vm2, %v3387_v47 }
  0x64   : > { %3487 = vmatmul.msk.f32.gmra.mxu0 %vm257_vm2, %v226_v21 }
  0x68   : > { %3322 = vmatmul.msk.f32.gmra.mxu1 %vm257_vm2, %v3386_v44  ;;  %v4303_v44 = vld [vmem:[%s3926_s21 + $0x92] sm:$0xff] }
  0x69   : > { %3356 = vmatmul.msk.f32.gmra.mxu2 %vm257_vm2, %v4131_v48  ;;  %5712 = vst [vmem:[#allocation16_spill] sm:$0xff] %v4303_v44 }
  0x6a   : > { %3422 = vmatmul.msk.f32.gmra.mxu3 %vm257_vm2, %v4134_v49 }
  0x6c   : > { %3488 = vmatmul.msk.f32.gmra.mxu0 %vm257_vm2, %v4037_v26 }
  0x70   : > { %3323 = vmatmul.msk.f32.gmra.mxu1 %vm257_vm2, %v3387_v47 }
  0x71   : > { %3357 = vmatmul.msk.f32.gmra.mxu2 %vm257_vm2, %v4144_v50 }
  0x72   : > { %3423 = vmatmul.msk.f32.gmra.mxu3 %vm257_vm2, %v4147_v51 }
  0x74   : > { %3489 = vmatmul.msk.f32.gmra.mxu0 %vm257_vm2, %v4066_v32 }
  0x78   : > { %3324 = vmatmul.msk.f32.gmra.mxu1 %vm257_vm2, %v4134_v49 }
  0x79   : > { %3358 = vmatmul.msk.f32.gmra.mxu2 %vm257_vm2, %v4157_v52 }
  0x7a   : > { %3424 = vmatmul.msk.f32.gmra.mxu3 %vm257_vm2, %v4160_v53 }
  0x7c   : > { %3490 = vmatmul.msk.f32.gmra.mxu0 %vm257_vm2, %v4090_v37 }
  0x80   : > { %3325 = vmatmul.msk.f32.gmra.mxu1 %vm257_vm2, %v4147_v51 }
  0x81   : > { %3359 = vmatmul.msk.f32.gmra.mxu2 %vm257_vm2, %v4171_v54 }
  0x82   : > { %3425 = vmatmul.msk.f32.gmra.mxu3 %vm257_vm2, %v4174_v55 }
  0x84   : > { %3491 = vmatmul.msk.f32.gmra.mxu0 %vm257_vm2, %v4110_v41 }
  0x88   : > { %3326 = vmatmul.msk.f32.gmra.mxu1 %vm257_vm2, %v4160_v53 }
  0x89   : > { %3360 = vmatmul.msk.f32.gmra.mxu2 %vm257_vm2, %v4185_v56 }
  0x8a   : > { %3426 = vmatmul.msk.f32.gmra.mxu3 %vm257_vm2, %v4188_v57 }
  0x8c   : > { %3492 = vmatmul.msk.f32.gmra.mxu0 %vm257_vm2, %v3933_v2 }
  0x90   : > { %3327 = vmatmul.msk.f32.gmra.mxu1 %vm257_vm2, %v4174_v55 }
  0x91   : > { %3361 = vmatmul.msk.f32.gmra.mxu2 %vm257_vm2, %v4199_v58 }
  0x92   : > { %3427 = vmatmul.msk.f32.gmra.mxu3 %vm257_vm2, %v4202_v59 }
  0x94   : > { %3493 = vmatmul.msk.f32.gmra.mxu0 %vm257_vm2, %v3969_v10 }
  0x95   : > { %v4212_v60 = vpop.f32.mrf.mxu1 }
  0x98   : > { %3328 = vmatmul.msk.f32.gmra.mxu1 %vm257_vm2, %v4188_v57 }
  0x99   : > { %3362 = vmatmul.msk.f32.gmra.mxu2 %vm257_vm2, %v4215_v61  ;;  %v4224_v63 = vpop.f32.mrf.mxu0 }
  0x9a   : > { %3428 = vmatmul.msk.f32.gmra.mxu3 %vm257_vm2, %v4218_v62 }
  0x9c   : > { %v4228_v0 = vpop.f32.mrf.mxu2  ;;  %3494 = vmatmul.msk.f32.gmra.mxu0 %vm257_vm2, %v3987_v14  ;;  %v4262_v14 = vld [vmem:[%s3926_s21 + $0x90] sm:$0xff] }
  0x9d   : > { %v4232_v1 = vpop.f32.mrf.mxu1  ;;  %v4234_v2 = vpop.f32.mrf.mxu3  ;;  %5707 = vst [vmem:[#allocation11_spill] sm:$0xff] %v4262_v14 }
  0x9e   : > { %5702 = vst [vmem:[#allocation6_spill] sm:$0xff] %v4234_v2 }
  0xa0   : > { %3329 = vmatmul.msk.f32.gmra.mxu1 %vm257_vm2, %v4202_v59  ;;  %v4407_v59 = vld [vmem:[%s3926_s21 + $0xe0] sm:$0xff] }
  0xa1   : > { %3363 = vmatmul.msk.f32.gmra.mxu2 %vm257_vm2, %v4237_v4  ;;  %v4246_v7 = vpop.f32.mrf.mxu0 }
  0xa2   : > { %3429 = vmatmul.msk.f32.gmra.mxu3 %vm257_vm2, %v4240_v6 }
  0xa4   : > { %v4250_v8 = vpop.f32.mrf.mxu2  ;;  %3495 = vmatmul.msk.f32.gmra.mxu0 %vm257_vm2, %v4004_v18 }
  0xa5   : > { %v4254_v9 = vpop.f32.mrf.mxu1  ;;  %v4256_v10 = vpop.f32.mrf.mxu3 }
  0xa6   : > { %5705 = vst [vmem:[#allocation9_spill] sm:$0xff] %v4256_v10  ;;  %v4328_v10 = vld [vmem:[%s3926_s21 + $0xb0] sm:$0xff] }
  0xa7   : > { %5716 = vst [vmem:[#allocation20_spill] sm:$0xff] %v4328_v10 }
  0xa8   : > { %3330 = vmatmul.msk.f32.gmra.mxu1 %vm257_vm2, %v4218_v62 }
  0xa9   : > { %3364 = vmatmul.msk.f32.gmra.mxu2 %vm257_vm2, %v4259_v13  ;;  %v4268_v17 = vpop.f32.mrf.mxu0 }
  0xaa   : > { %3430 = vmatmul.msk.f32.gmra.mxu3 %vm257_vm2, %v4262_v14 }
  0xac   : > { %v4272_v18 = vpop.f32.mrf.mxu2  ;;  %3496 = vmatmul.msk.f32.gmra.mxu0 %vm257_vm2, %v4021_v22 }
  0xad   : > { %v4276_v21 = vpop.f32.mrf.mxu1  ;;  %v4278_v25 = vpop.f32.mrf.mxu3 }
  0xae   : > { %5708 = vst [vmem:[#allocation12_spill] sm:$0xff] %v4278_v25  ;;  %v4325_v25 = vld [vmem:[%s3926_s21 + $0x9a] sm:$0xff] }
  0xaf   : > { %5715 = vst [vmem:[#allocation19_spill] sm:$0xff] %v4325_v25 }
  0xb0   : > { %3331 = vmatmul.msk.f32.gmra.mxu1 %vm257_vm2, %v4240_v6  ;;  %v4372_v6 = vld [vmem:[%s3926_s21 + $0xc8] sm:$0xff] }
  0xb1   : > { %3365 = vmatmul.msk.f32.gmra.mxu2 %vm257_vm2, %v4281_v27  ;;  %v4290_v33 = vpop.f32.mrf.mxu0 }
  0xb2   : > { %3431 = vmatmul.msk.f32.gmra.mxu3 %vm257_vm2, %v4284_v28 }
  0xb4   : > { %v4294_v22 = vpop.f32.mrf.mxu2  ;;  %3497 = vmatmul.msk.f32.gmra.mxu0 %vm257_vm2, %v4053_v29 }
  0xb5   : > { %v4298_v42 = vpop.f32.mrf.mxu1  ;;  %v4300_v43 = vpop.f32.mrf.mxu3 }
  0xb6   : > { %5711 = vst [vmem:[#allocation15_spill] sm:$0xff] %v4300_v43 }
  0xb8   : > { %3332 = vmatmul.msk.f32.gmra.mxu1 %vm257_vm2, %v4262_v14  ;;  %v4350_v14 = vld [vmem:[%s3926_s21 + $0xc0] sm:$0xff] }
  0xb9   : > { %3366 = vmatmul.msk.f32.gmra.mxu2 %vm257_vm2, %v4303_v44  ;;  %v4312_v46 = vpop.f32.mrf.mxu0  ;;  %5720 = vst [vmem:[#allocation24_spill] sm:$0xff] %v4350_v14 }
  0xba   : > { %3432 = vmatmul.msk.f32.gmra.mxu3 %vm257_vm2, %v4306_v45 }
  0xbc   : > { %v4316_v29 = vpop.f32.mrf.mxu2  ;;  %3498 = vmatmul.msk.f32.gmra.mxu0 %vm257_vm2, %v4077_v34 }
  0xbd   : > { %v4320_v47 = vpop.f32.mrf.mxu1  ;;  %v4322_v43 = vpop.f32.mrf.mxu3 }
  0xbe   : > { %5714 = vst [vmem:[#allocation18_spill] sm:$0xff] %v4322_v43 }
  0xc0   : > { %3333 = vmatmul.msk.f32.gmra.mxu1 %vm257_vm2, %v4284_v28  ;;  %v4347_v28 = vld [vmem:[%s3926_s21 + $0xaa] sm:$0xff] }
  0xc1   : > { %3367 = vmatmul.msk.f32.gmra.mxu2 %vm257_vm2, %v4325_v25  ;;  %v4334_v44 = vpop.f32.mrf.mxu0  ;;  %5719 = vst [vmem:[#allocation23_spill] sm:$0xff] %v4347_v28 }
  0xc2   : > { %3433 = vmatmul.msk.f32.gmra.mxu3 %vm257_vm2, %v4328_v10 }
  0xc4   : > { %v4338_v34 = vpop.f32.mrf.mxu2  ;;  %3499 = vmatmul.msk.f32.gmra.mxu0 %vm257_vm2, %v4097_v38 }
  0xc5   : > { %5717 = vst [vmem:[#allocation21_spill] sm:$0xff] %v4338_v34  ;;  %v4342_v43 = vpop.f32.mrf.mxu1  ;;  %v4344_v2 = vpop.f32.mrf.mxu3  ;;  %v4404_v34 = vld [vmem:[%s3926_s21 + $0xca] sm:$0xff] }
  0xc6   : > { %5718 = vst [vmem:[#allocation22_spill] sm:$0xff] %v4344_v2 }
  0xc8   : > { %3334 = vmatmul.msk.f32.gmra.mxu1 %vm257_vm2, %v4306_v45  ;;  %v4369_v45 = vld [vmem:[%s3926_s21 + $0xb2] sm:$0xff] }
  0xc9   : > { %3368 = vmatmul.msk.f32.gmra.mxu2 %vm257_vm2, %v4347_v28  ;;  %v4356_v25 = vpop.f32.mrf.mxu0  ;;  %5723 = vst [vmem:[#allocation27_spill] sm:$0xff] %v4369_v45 }
  0xca   : > { %3434 = vmatmul.msk.f32.gmra.mxu3 %vm257_vm2, %v4350_v14 }
  0xcc   : > { %v4360_v38 = vpop.f32.mrf.mxu2  ;;  %3500 = vmatmul.msk.f32.gmra.mxu0 %vm257_vm2, %v3936_v3 }
  0xcd   : > { %5721 = vst [vmem:[#allocation25_spill] sm:$0xff] %v4360_v38  ;;  %v4364_v2 = vpop.f32.mrf.mxu1  ;;  %v4366_v27 = vpop.f32.mrf.mxu3  ;;  %v4389_v38 = vld [vmem:[%s3926_s21 + $0xc2] sm:$0xff] }
  0xce   : > { %5722 = vst [vmem:[#allocation26_spill] sm:$0xff] %v4366_v27 }
  0xcf   : > { %5726 = vst [vmem:[#allocation30_spill] sm:$0xff] %v4389_v38 }
  0xd0   : > { %3335 = vmatmul.msk.f32.gmra.mxu1 %vm257_vm2, %v4328_v10  ;;  %v4392_v10 = vld [vmem:[%s3926_s21 + $0xd8] sm:$0xff] }
  0xd1   : > { %3369 = vmatmul.msk.f32.gmra.mxu2 %vm257_vm2, %v4369_v45  ;;  %v4378_v28 = vpop.f32.mrf.mxu0 }
  0xd2   : > { %3435 = vmatmul.msk.f32.gmra.mxu3 %vm257_vm2, %v4372_v6 }
  0xd4   : > { %v4382_v3 = vpop.f32.mrf.mxu2  ;;  %3501 = vmatmul.msk.f32.gmra.mxu0 %vm257_vm2, %v3972_v11 }
  0xd5   : > { %5724 = vst [vmem:[#allocation28_spill] sm:$0xff] %v4382_v3  ;;  %v4386_v27 = vpop.f32.mrf.mxu3  ;;  %v587_v13 = vpop.f32.mrf.mxu1 }
  0xd6   : > { %5725 = vst [vmem:[#allocation29_spill] sm:$0xff] %v4386_v27  ;;  %v588_v3 = vadd.f32 %v587_v13, %v4224_v63 }
  0xd8   : > { %3336 = vmatmul.msk.f32.gmra.mxu1 %vm257_vm2, %v4350_v14 }
  0xd9   : > { %3370 = vmatmul.msk.f32.gmra.mxu2 %vm257_vm2, %v4389_v38  ;;  %v1390_v45 = vpop.f32.mrf.mxu0 }
  0xda   : > { %3436 = vmatmul.msk.f32.gmra.mxu3 %vm257_vm2, %v4392_v10 }
  0xdc   : > { %v833_v11 = vpop.f32.mrf.mxu2  ;;  %3502 = vmatmul.msk.f32.gmra.mxu0 %vm257_vm2, %v3990_v15 }
  0xdd   : > { %v929_v27 = vadd.f32 %v833_v11, %v588_v3  ;;  %v590_v62 = vpop.f32.mrf.mxu1  ;;  %v1112_v4 = vpop.f32.mrf.mxu3  ;;  %v4424_v11 = vld [vmem:[%s3926_s21 + $0xf0] sm:$0xff] }
  0xde   : > { %v591_v15 = vadd.f32 %v590_v62, %v4246_v7 }
  0xdf   : > { %v1208_v14 = vadd.f32 %v1112_v4, %v929_v27  ;;  %v4421_v27 = vld [vmem:[%s3926_s21 + $0xda] sm:$0xff] }
  0xe0   : > { %3337 = vmatmul.msk.f32.gmra.mxu1 %vm257_vm2, %v4372_v6 }
  0xe1   : > { %v4409_v38 = vadd.f32 %v1390_v45, %v1208_v14  ;;  %3371 = vmatmul.msk.f32.gmra.mxu2 %vm257_vm2, %v4404_v34  ;;  %v1393_v63 = vpop.f32.mrf.mxu0 }
  0xe2   : > { %3437 = vmatmul.msk.f32.gmra.mxu3 %vm257_vm2, %v4407_v59 }
  0xe3   : > { %5727 = vst [vmem:[#allocation31_spill] sm:$0xff] %v4409_v38 }
  0xe4   : > { %v836_v13 = vpop.f32.mrf.mxu2  ;;  %3503 = vmatmul.msk.f32.gmra.mxu0 %vm257_vm2, %v4007_v19 }
  0xe5   : > { %v930_v3 = vadd.f32 %v836_v13, %v591_v15  ;;  %v593_v4 = vpop.f32.mrf.mxu1  ;;  %v1115_v14 = vpop.f32.mrf.mxu3 }
  0xe6   : > { %v594_v19 = vadd.f32 %v593_v4, %v4268_v17 }
  0xe7   : > { %v1209_v45 = vadd.f32 %v1115_v14, %v930_v3  ;;  %v4438_v3 = vld [vmem:[%s3926_s21 + $0xe2] sm:$0xff] }
  0xe8   : > { %3338 = vmatmul.msk.f32.gmra.mxu1 %vm257_vm2, %v4392_v10 }
  0xe9   : > { %v4426_v38 = vadd.f32 %v1393_v63, %v1209_v45  ;;  %3372 = vmatmul.msk.f32.gmra.mxu2 %vm257_vm2, %v4421_v27  ;;  %v1396_v62 = vpop.f32.mrf.mxu0  ;;  %v4441_v45 = vld [vmem:[%s3926_s21 + $0xf8] sm:$0xff] }
  0xea   : > { %3438 = vmatmul.msk.f32.gmra.mxu3 %vm257_vm2, %v4424_v11 }
  0xeb   : > { %5728 = vst [vmem:[#allocation32_spill] sm:$0xff] %v4426_v38 }
  0xec   : > { %v839_v7 = vpop.f32.mrf.mxu2  ;;  %3504 = vmatmul.msk.f32.gmra.mxu0 %vm257_vm2, %v4024_v23 }
  0xed   : > { %v931_v15 = vadd.f32 %v839_v7, %v594_v19  ;;  %v596_v13 = vpop.f32.mrf.mxu1  ;;  %v1118_v63 = vpop.f32.mrf.mxu3 }
  0xee   : > { %v597_v23 = vadd.f32 %v596_v13, %v4290_v33 }
  0xef   : > { %v1210_v14 = vadd.f32 %v1118_v63, %v931_v15  ;;  %v4455_v15 = vld [vmem:[%s3926_s21 + $0xf2] sm:$0xff] }
  0xf0   : > { %3339 = vmatmul.msk.f32.gmra.mxu1 %vm257_vm2, %v4407_v59 }
  0xf1   : > { %v4443_v38 = vadd.f32 %v1396_v62, %v1210_v14  ;;  %3373 = vmatmul.msk.f32.gmra.mxu2 %vm257_vm2, %v4438_v3  ;;  %v1399_v17 = vpop.f32.mrf.mxu0  ;;  %v4458_v14 = vld [vmem:[%s3926_s21 + $0x108] sm:$0xff] }
  0xf2   : > { %3439 = vmatmul.msk.f32.gmra.mxu3 %vm257_vm2, %v4441_v45 }
  0xf3   : > { %5729 = vst [vmem:[#allocation33_spill] sm:$0xff] %v4443_v38 }
  0xf4   : > { %v842_v4 = vpop.f32.mrf.mxu2  ;;  %3505 = vmatmul.msk.f32.gmra.mxu0 %vm257_vm2, %v4056_v30 }
  0xf5   : > { %v932_v19 = vadd.f32 %v842_v4, %v597_v23  ;;  %v599_v7 = vpop.f32.mrf.mxu1  ;;  %v1121_v62 = vpop.f32.mrf.mxu3 }
  0xf6   : > { %v600_v30 = vadd.f32 %v599_v7, %v4312_v46 }
  0xf7   : > { %v1211_v63 = vadd.f32 %v1121_v62, %v932_v19  ;;  %v4472_v19 = vld [vmem:[%s3926_s21 + $0xfa] sm:$0xff] }
  0xf8   : > { %3340 = vmatmul.msk.f32.gmra.mxu1 %vm257_vm2, %v4424_v11 }
  0xf9   : > { %v4460_v38 = vadd.f32 %v1399_v17, %v1211_v63  ;;  %3374 = vmatmul.msk.f32.gmra.mxu2 %vm257_vm2, %v4455_v15  ;;  %v1402_v33 = vpop.f32.mrf.mxu0  ;;  %v4475_v63 = vld [vmem:[%s3926_s21 + $0x110] sm:$0xff] }
  0xfa   : > { %3440 = vmatmul.msk.f32.gmra.mxu3 %vm257_vm2, %v4458_v14 }
  0xfb   : > { %5730 = vst [vmem:[#allocation34_spill] sm:$0xff] %v4460_v38 }
  0xfc   : > { %v845_v13 = vpop.f32.mrf.mxu2  ;;  %3506 = vmatmul.msk.f32.gmra.mxu0 %vm257_vm2, %v4080_v35 }
  0xfd   : > { %v933_v23 = vadd.f32 %v845_v13, %v600_v30  ;;  %v602_v4 = vpop.f32.mrf.mxu1  ;;  %v1124_v17 = vpop.f32.mrf.mxu3 }
  0xfe   : > { %v603_v35 = vadd.f32 %v602_v4, %v4334_v44 }
  0xff   : > { %v1212_v62 = vadd.f32 %v1124_v17, %v933_v23  ;;  %v4489_v23 = vld [vmem:[%s3926_s21 + $0x10a] sm:$0xff] }
 0x100   : > { %3341 = vmatmul.msk.f32.gmra.mxu1 %vm257_vm2, %v4441_v45 }
 0x101   : > { %v4477_v38 = vadd.f32 %v1402_v33, %v1212_v62  ;;  %3375 = vmatmul.msk.f32.gmra.mxu2 %vm257_vm2, %v4472_v19  ;;  %v1405_v46 = vpop.f32.mrf.mxu0  ;;  %v4492_v62 = vld [vmem:[%s3926_s21 + $0x120] sm:$0xff] }
 0x102   : > { %3441 = vmatmul.msk.f32.gmra.mxu3 %vm257_vm2, %v4475_v63 }
 0x103   : > { %5731 = vst [vmem:[#allocation35_spill] sm:$0xff] %v4477_v38 }
 0x104   : > { %v848_v7 = vpop.f32.mrf.mxu2  ;;  %3507 = vmatmul.msk.f32.gmra.mxu0 %vm257_vm2, %v4100_v39 }
 0x105   : > { %v934_v30 = vadd.f32 %v848_v7, %v603_v35  ;;  %v605_v13 = vpop.f32.mrf.mxu1  ;;  %v1127_v33 = vpop.f32.mrf.mxu3 }
 0x106   : > { %v606_v39 = vadd.f32 %v605_v13, %v4356_v25 }
 0x107   : > { %v1213_v17 = vadd.f32 %v1127_v33, %v934_v30  ;;  %v4506_v30 = vld [vmem:[%s3926_s21 + $0x112] sm:$0xff] }
 0x108   : > { %3342 = vmatmul.msk.f32.gmra.mxu1 %vm257_vm2, %v4458_v14 }
 0x109   : > { %v4494_v38 = vadd.f32 %v1405_v46, %v1213_v17  ;;  %3376 = vmatmul.msk.f32.gmra.mxu2 %vm257_vm2, %v4489_v23  ;;  %v1408_v44 = vpop.f32.mrf.mxu0  ;;  %v4509_v17 = vld [vmem:[%s3926_s21 + $0x128] sm:$0xff] }
 0x10a   : > { %3442 = vmatmul.msk.f32.gmra.mxu3 %vm257_vm2, %v4492_v62 }
 0x10b   : > { %5732 = vst [vmem:[#allocation36_spill] sm:$0xff] %v4494_v38 }
 0x10c   : > { %v851_v4 = vpop.f32.mrf.mxu2  ;;  %3508 = vmatmul.msk.f32.gmra.mxu0 %vm257_vm2, %v3944_v5 }
 0x10d   : > { %v935_v35 = vadd.f32 %v851_v4, %v606_v39  ;;  %v608_v7 = vpop.f32.mrf.mxu1  ;;  %v1130_v46 = vpop.f32.mrf.mxu3 }
 0x10e   : > { %v609_v5 = vadd.f32 %v608_v7, %v4378_v28 }
 0x10f   : > { %v1214_v33 = vadd.f32 %v1130_v46, %v935_v35  ;;  %v4523_v35 = vld [vmem:[%s3926_s21 + $0x122] sm:$0xff] }
 0x110   : > { %3343 = vmatmul.msk.f32.gmra.mxu1 %vm257_vm2, %v4475_v63 }
 0x111   : > { %v4511_v38 = vadd.f32 %v1408_v44, %v1214_v33  ;;  %3377 = vmatmul.msk.f32.gmra.mxu2 %vm257_vm2, %v4506_v30  ;;  %v1411_v25 = vpop.f32.mrf.mxu0  ;;  %v3410_v33 = vld [vmem:[%s3926_s21 + $0x138] sm:$0xff] }
 0x112   : > { %3443 = vmatmul.msk.f32.gmra.mxu3 %vm257_vm2, %v4509_v17 }
 0x113   : > { %5733 = vst [vmem:[#allocation37_spill] sm:$0xff] %v4511_v38 }
 0x114   : > { %v854_v13 = vpop.f32.mrf.mxu2  ;;  %3509 = vmatmul.msk.f32.gmra.mxu0 %vm257_vm2, %v3976_v12 }
 0x115   : > { %v936_v39 = vadd.f32 %v854_v13, %v609_v5  ;;  %v611_v4 = vpop.f32.mrf.mxu1  ;;  %v1133_v44 = vpop.f32.mrf.mxu3 }
 0x116   : > { %v612_v7 = vadd.f32 %v611_v4, %v4212_v60 }
 0x117   : > { %v1215_v46 = vadd.f32 %v1133_v44, %v936_v39  ;;  %v4537_v39 = vld [vmem:[%s3926_s21 + $0x12a] sm:$0xff] }
 0x118   : > { %3344 = vmatmul.msk.f32.gmra.mxu1 %vm257_vm2, %v4492_v62 }
 0x119   : > { %v4526_v38 = vadd.f32 %v1411_v25, %v1215_v46  ;;  %3378 = vmatmul.msk.f32.gmra.mxu2 %vm257_vm2, %v4523_v35  ;;  %v1414_v28 = vpop.f32.mrf.mxu0  ;;  %v3411_v46 = vld [vmem:[%s3926_s21 + $0x140] sm:$0xff] }
 0x11a   : > { %3444 = vmatmul.msk.f32.gmra.mxu3 %vm257_vm2, %v3410_v33 }
 0x11b   : > { %5734 = vst [vmem:[#allocation38_spill] sm:$0xff] %v4526_v38 }
 0x11c   : > { %v857_v12 = vpop.f32.mrf.mxu2  ;;  %3510 = vmatmul.msk.f32.gmra.mxu0 %vm257_vm2, %v3993_v16 }
 0x11d   : > { %v937_v5 = vadd.f32 %v857_v12, %v612_v7  ;;  %v614_v13 = vpop.f32.mrf.mxu1  ;;  %v1136_v25 = vpop.f32.mrf.mxu3 }
 0x11e   : > { %v615_v4 = vadd.f32 %v614_v13, %v4232_v1 }
 0x11f   : > { %v1216_v44 = vadd.f32 %v1136_v25, %v937_v5  ;;  %v4551_v5 = vld [vmem:[%s3926_s21 + $0x13a] sm:$0xff] }
 0x120   : > { %3345 = vmatmul.msk.f32.gmra.mxu1 %vm257_vm2, %v4509_v17 }
 0x121   : > { %v4540_v38 = vadd.f32 %v1414_v28, %v1216_v44  ;;  %3379 = vmatmul.msk.f32.gmra.mxu2 %vm257_vm2, %v4537_v39  ;;  %v1417_v60 = vpop.f32.mrf.mxu0  ;;  %v3412_v44 = vld [vmem:[%s3926_s21 + $0x150] sm:$0xff] }
 0x122   : > { %3445 = vmatmul.msk.f32.gmra.mxu3 %vm257_vm2, %v3411_v46 }
 0x123   : > { %5735 = vst [vmem:[#allocation39_spill] sm:$0xff] %v4540_v38 }
 0x124   : > { %v860_v16 = vpop.f32.mrf.mxu2  ;;  %3511 = vmatmul.msk.f32.gmra.mxu0 %vm257_vm2, %v4010_v20 }
 0x125   : > { %v938_v7 = vadd.f32 %v860_v16, %v615_v4  ;;  %v617_v12 = vpop.f32.mrf.mxu1  ;;  %v1139_v28 = vpop.f32.mrf.mxu3 }
 0x126   : > { %v618_v13 = vadd.f32 %v617_v12, %v4254_v9 }
 0x127   : > { %v1217_v25 = vadd.f32 %v1139_v28, %v938_v7 }
 0x128   : > { %3346 = vmatmul.msk.f32.gmra.mxu1 %vm257_vm2, %v3410_v33  ;;  %v3413_v33 = vld [vmem:[%s3926_s21 + $0x158] sm:$0xff] }
 0x129   : > { %v4554_v38 = vadd.f32 %v1417_v60, %v1217_v25  ;;  %3380 = vmatmul.msk.f32.gmra.mxu2 %vm257_vm2, %v4551_v5  ;;  %v1420_v1 = vpop.f32.mrf.mxu0  ;;  %v710_v60 = vld [vmem:[%s3926_s21 + $0x142] sm:$0xff] }
 0x12a   : > { %3446 = vmatmul.msk.f32.gmra.mxu3 %vm257_vm2, %v3412_v44 }
 0x12c   : > { %v863_v20 = vpop.f32.mrf.mxu2  ;;  %3512 = vmatmul.msk.f32.gmra.mxu0 %vm257_vm2, %v4027_v24 }
 0x12d   : > { %v939_v4 = vadd.f32 %v863_v20, %v618_v13  ;;  %v620_v16 = vpop.f32.mrf.mxu1  ;;  %v1142_v7 = vpop.f32.mrf.mxu3 }
 0x12e   : > { %v621_v12 = vadd.f32 %v620_v16, %v4276_v21 }
 0x12f   : > { %v1218_v28 = vadd.f32 %v1142_v7, %v939_v4  ;;  %v711_v7 = vld [vmem:[%s3926_s21 + $0x152] sm:$0xff] }
 0x130   : > { %3347 = vmatmul.msk.f32.gmra.mxu1 %vm257_vm2, %v3411_v46 }
 0x131   : > { %v4565_v25 = vadd.f32 %v1420_v1, %v1218_v28  ;;  %3381 = vmatmul.msk.f32.gmra.mxu2 %vm257_vm2, %v710_v60  ;;  %v1423_v9 = vpop.f32.mrf.mxu0  ;;  %v3414_v28 = vld [vmem:[%s3926_s21 + $0x168] sm:$0xff] }
 0x132   : > { %3447 = vmatmul.msk.f32.gmra.mxu3 %vm257_vm2, %v3413_v33 }
 0x134   : > { %v866_v13 = vpop.f32.mrf.mxu2  ;;  %3513 = vmatmul.msk.f32.gmra.mxu0 %vm257_vm2, %v4059_v31 }
 0x135   : > { %v940_v24 = vadd.f32 %v866_v13, %v621_v12  ;;  %v623_v20 = vpop.f32.mrf.mxu1  ;;  %v1145_v4 = vpop.f32.mrf.mxu3 }
 0x136   : > { %v624_v16 = vadd.f32 %v623_v20, %v4298_v42 }
 0x137   : > { %v1219_v1 = vadd.f32 %v1145_v4, %v940_v24  ;;  %v712_v24 = vld [vmem:[%s3926_s21 + $0x15a] sm:$0xff]  ;;  %v3415_v4 = vld [vmem:[%s3926_s21 + $0x170] sm:$0xff] }
 0x138   : > { %3348 = vmatmul.msk.f32.gmra.mxu1 %vm257_vm2, %v3412_v44 }
 0x139   : > { %v4575_v46 = vadd.f32 %v1423_v9, %v1219_v1  ;;  %3382 = vmatmul.msk.f32.gmra.mxu2 %vm257_vm2, %v711_v7  ;;  %v1426_v21 = vpop.f32.mrf.mxu0 }
 0x13a   : > { %3448 = vmatmul.msk.f32.gmra.mxu3 %vm257_vm2, %v3414_v28 }
 0x13c   : > { %v869_v60 = vpop.f32.mrf.mxu2  ;;  %3514 = vmatmul.msk.f32.gmra.mxu0 %vm257_vm2, %v4083_v36 }
 0x13d   : > { %v941_v31 = vadd.f32 %v869_v60, %v624_v16  ;;  %v626_v12 = vpop.f32.mrf.mxu1  ;;  %v1148_v13 = vpop.f32.mrf.mxu3 }
 0x13e   : > { %v627_v20 = vadd.f32 %v626_v12, %v4320_v47  ;;  %v3482_v12 = vld [vmem:[%s3926_s21 + $0x181] sm:$0xff] }
 0x13f   : > { %v1220_v9 = vadd.f32 %v1148_v13, %v941_v31 }
 0x140   : > { %3349 = vmatmul.msk.f32.gmra.mxu1 %vm257_vm2, %v3413_v33  ;;  %v3416_v33 = vld [vmem:[%s3926_s21 + $0x180] sm:$0xff] }
 0x141   : > { %v4585_v44 = vadd.f32 %v1426_v21, %v1220_v9  ;;  %3383 = vmatmul.msk.f32.gmra.mxu2 %vm257_vm2, %v712_v24  ;;  %v1429_v42 = vpop.f32.mrf.mxu0  ;;  %v713_v21 = vld [vmem:[%s3926_s21 + $0x16a] sm:$0xff] }
 0x142   : > { %3449 = vmatmul.msk.f32.gmra.mxu3 %vm257_vm2, %v3415_v4 }
 0x144   : > { %v872_v36 = vpop.f32.mrf.mxu2  ;;  %3515 = vmatmul.msk.f32.gmra.mxu0 %vm257_vm2, %v4103_v40 }
 0x145   : > { %v942_v7 = vadd.f32 %v872_v36, %v627_v20  ;;  %v629_v1 = vpop.f32.mrf.mxu1  ;;  %v1151_v16 = vpop.f32.mrf.mxu3  ;;  %v714_v36 = vld [vmem:[%s3926_s21 + $0x172] sm:$0xff] }
 0x146   : > { %v630_v13 = vadd.f32 %v629_v1, %v4342_v43 }
 0x147   : > { %v1221_v60 = vadd.f32 %v1151_v16, %v942_v7  ;;  %v3417_v7 = vld [vmem:[%s3926_s21 + $0x188] sm:$0xff] }
 0x148   : > { %3350 = vmatmul.msk.f32.gmra.mxu1 %vm257_vm2, %v3414_v28 }
 0x149   : > { %v4595_v31 = vadd.f32 %v1429_v42, %v1221_v60  ;;  %3384 = vmatmul.msk.f32.gmra.mxu2 %vm257_vm2, %v713_v21  ;;  %v1432_v47 = vpop.f32.mrf.mxu0  ;;  %v3483_v21 = vld [vmem:[%s3926_s21 + $0x189] sm:$0xff] }
 0x14a   : > { %3450 = vmatmul.msk.f32.gmra.mxu3 %vm257_vm2, %v3416_v33 }
 0x14c   : > { %v875_v40 = vpop.f32.mrf.mxu2  ;;  %3516 = vmatmul.msk.f32.gmra.mxu0 %vm257_vm2, %v3482_v12 }
 0x14d   : > { %v943_v24 = vadd.f32 %v875_v40, %v630_v13  ;;  %v632_v9 = vpop.f32.mrf.mxu1  ;;  %v1154_v20 = vpop.f32.mrf.mxu3 }
 0x14e   : > { %v633_v43 = vadd.f32 %v632_v9, %v4364_v2 }
 0x14f   : > { %v1222_v42 = vadd.f32 %v1154_v20, %v943_v24 }
 0x150   : > { %3351 = vmatmul.msk.f32.gmra.mxu1 %vm257_vm2, %v3415_v4 }
 0x151   : > { %v4605_v16 = vadd.f32 %v1432_v47, %v1222_v42  ;;  %3385 = vmatmul.msk.f32.gmra.mxu2 %vm257_vm2, %v714_v36  ;;  %v1435_v28 = vpop.f32.mrf.mxu0 }
 0x152   : > { %3451 = vmatmul.msk.f32.gmra.mxu3 %vm257_vm2, %v3417_v7 }
 0x154   : > { %v878_v1 = vpop.f32.mrf.mxu2  ;;  %3517 = vmatmul.msk.f32.gmra.mxu0 %vm257_vm2, %v3483_v21 }
 0x155   : > { %v944_v60 = vadd.f32 %v878_v1, %v633_v43  ;;  %v635_v33 = vpop.f32.mrf.mxu1  ;;  %v1157_v12 = vpop.f32.mrf.mxu3 }
 0x156   : > { %v636_v2 = vadd.f32 %v635_v33, %v4228_v0 }
 0x157   : > { %v1223_v13 = vadd.f32 %v1157_v12, %v944_v60 }
 0x158   : > { %3552 = vmatmul.msk.f32.vlgmr.msra.gmra.mxu1 %vm257_vm2, %v4131_v48 }
 0x159   : > { %v4613_v40 = vadd.f32 %v1435_v28, %v1223_v13  ;;  %3618 = vmatmul.msk.f32.vlgmr.msra.gmra.mxu2 %vm257_vm2, %v4134_v49  ;;  %v1438_v4 = vpop.f32.mrf.mxu0 }
 0x15a   : > { %3684 = vmatmul.msk.f32.vlgmr.msra.gmra.mxu3 %vm257_vm2, %v4037_v26 }
 0x15c   : > { %v881_v47 = vpop.f32.mrf.mxu2  ;;  %3750 = vmatmul.msk.f32.vlgmr.msra.gmra.mxu0 %vm257_vm2, %v4157_v52 }
 0x15d   : > { %v945_v24 = vadd.f32 %v881_v47, %v636_v2  ;;  %v638_v9 = vpop.f32.mrf.mxu1  ;;  %v1160_v20 = vpop.f32.mrf.mxu3  ;;  %v3654_v47 = vld [vmem:[%s3926_s21 + $0x61] sm:$0xff] }
 0x15e   : > { %v639_v49 = vadd.f32 %v638_v9, %v4250_v8 }
 0x15f   : > { %v1224_v36 = vadd.f32 %v1160_v20, %v945_v24 }
 0x160   : > { %3553 = vmatmul.msk.f32.gmra.mxu1 %vm257_vm2, %v4144_v50 }
 0x161   : > { %v4624_v42 = vadd.f32 %v1438_v4, %v1224_v36  ;;  %3619 = vmatmul.msk.f32.gmra.mxu2 %vm257_vm2, %v4147_v51  ;;  %v1441_v48 = vpop.f32.mrf.mxu0 }
 0x162   : > { %3685 = vmatmul.msk.f32.gmra.mxu3 %vm257_vm2, %v4066_v32 }
 0x164   : > { %v884_v26 = vpop.f32.mrf.mxu2  ;;  %3751 = vmatmul.msk.f32.gmra.mxu0 %vm257_vm2, %v4171_v54 }
 0x165   : > { %v946_v0 = vadd.f32 %v884_v26, %v639_v49  ;;  %v641_v7 = vpop.f32.mrf.mxu1  ;;  %v1163_v28 = vpop.f32.mrf.mxu3 }
 0x166   : > { %v642_v51 = vadd.f32 %v641_v7, %v4272_v18 }
 0x167   : > { %v1225_v21 = vadd.f32 %v1163_v28, %v946_v0  ;;  %v5738_v28 = vld [vmem:[#allocation7_spill] sm:$0xff] }
 0x168   : > { %3554 = vmatmul.msk.f32.gmra.mxu1 %vm257_vm2, %v4157_v52 }
 0x169   : > { %v4635_v43 = vadd.f32 %v1441_v48, %v1225_v21  ;;  %3620 = vmatmul.msk.f32.gmra.mxu2 %vm257_vm2, %v4160_v53  ;;  %v1444_v50 = vpop.f32.mrf.mxu0  ;;  %v3655_v48 = vld [vmem:[%s3926_s21 + $0x69] sm:$0xff] }
 0x16a   : > { %3686 = vmatmul.msk.f32.gmra.mxu3 %vm257_vm2, %v4090_v37 }
 0x16c   : > { %v887_v32 = vpop.f32.mrf.mxu2  ;;  %3752 = vmatmul.msk.f32.gmra.mxu0 %vm257_vm2, %v4185_v56 }
 0x16d   : > { %v947_v8 = vadd.f32 %v887_v32, %v642_v51  ;;  %v644_v1 = vpop.f32.mrf.mxu1  ;;  %v1166_v60 = vpop.f32.mrf.mxu3  ;;  %v3656_v32 = vld [vmem:[%s3926_s21 + $0x79] sm:$0xff] }
 0x16e   : > { %v645_v37 = vadd.f32 %v644_v1, %v4294_v22 }
 0x16f   : > { %v1226_v33 = vadd.f32 %v1166_v60, %v947_v8  ;;  %v5740_v60 = vld [vmem:[#allocation25_spill] sm:$0xff] }
 0x170   : > { %3555 = vmatmul.msk.f32.gmra.mxu1 %vm257_vm2, %v4171_v54 }
 0x171   : > { %v4646_v12 = vadd.f32 %v1444_v50, %v1226_v33  ;;  %3621 = vmatmul.msk.f32.gmra.mxu2 %vm257_vm2, %v4174_v55  ;;  %v1447_v52 = vpop.f32.mrf.mxu0 }
 0x172   : > { %3687 = vmatmul.msk.f32.gmra.mxu3 %vm257_vm2, %v4110_v41 }
 0x174   : > { %v890_v53 = vpop.f32.mrf.mxu2  ;;  %3753 = vmatmul.msk.f32.gmra.mxu0 %vm257_vm2, %v4199_v58 }
 0x175   : > { %v948_v18 = vadd.f32 %v890_v53, %v645_v37  ;;  %v647_v13 = vpop.f32.mrf.mxu1  ;;  %v1169_v4 = vpop.f32.mrf.mxu3  ;;  %v5741_v53 = vld [vmem:[#allocation10_spill] sm:$0xff] }
 0x176   : > { %v648_v41 = vadd.f32 %v647_v13, %v4316_v29  ;;  %v5737_v29 = vld [vmem:[#allocation21_spill] sm:$0xff] }
 0x177   : > { %v1227_v2 = vadd.f32 %v1169_v4, %v948_v18 }
 0x178   : > { %3556 = vmatmul.msk.f32.gmra.mxu1 %vm257_vm2, %v4185_v56  ;;  %v5736_v56 = vld [vmem:[#allocation4_spill] sm:$0xff] }
 0x179   : > { %v4658_v54 = vadd.f32 %v1447_v52, %v1227_v2  ;;  %3622 = vmatmul.msk.f32.gmra.mxu2 %vm257_vm2, %v4188_v57  ;;  %v1450_v55 = vpop.f32.mrf.mxu0  ;;  %v3657_v2 = vld [vmem:[%s3926_s21 + $0x81] sm:$0xff] }
 0x17a   : > { %3688 = vmatmul.msk.f32.gmra.mxu3 %vm257_vm2, %v3654_v47 }
 0x17c   : > { %v893_v22 = vpop.f32.mrf.mxu2  ;;  %3754 = vmatmul.msk.f32.gmra.mxu0 %vm257_vm2, %v4215_v61 }
 0x17d   : > { %v949_v24 = vadd.f32 %v893_v22, %v648_v41  ;;  %v650_v9 = vpop.f32.mrf.mxu1  ;;  %v1172_v20 = vpop.f32.mrf.mxu3  ;;  %v5743_v41 = vld [vmem:[#allocation28_spill] sm:$0xff] }
 0x17e   : > { %v651_v26 = vadd.f32 %v650_v9, %v5737_v29 }
 0x17f   : > { %v1228_v36 = vadd.f32 %v1172_v20, %v949_v24  ;;  %v5744_v20 = vld [vmem:[#allocation13_spill] sm:$0xff] }
 0x180   : > { %3557 = vmatmul.msk.f32.gmra.mxu1 %vm257_vm2, %v4199_v58  ;;  %v5739_v58 = vld [vmem:[#allocation5_spill] sm:$0xff] }
 0x181   : > { %v4669_v49 = vadd.f32 %v1450_v55, %v1228_v36  ;;  %3623 = vmatmul.msk.f32.gmra.mxu2 %vm257_vm2, %v5736_v56  ;;  %v1453_v57 = vpop.f32.mrf.mxu0 }
 0x182   : > { %3689 = vmatmul.msk.f32.gmra.mxu3 %vm257_vm2, %v3655_v48 }
 0x184   : > { %v896_v0 = vpop.f32.mrf.mxu2  ;;  %3755 = vmatmul.msk.f32.gmra.mxu0 %vm257_vm2, %v5738_v28 }
 0x185   : > { %v950_v7 = vadd.f32 %v896_v0, %v651_v26  ;;  %v653_v21 = vpop.f32.mrf.mxu1  ;;  %v1175_v50 = vpop.f32.mrf.mxu3  ;;  %v5745_v26 = vld [vmem:[#allocation11_spill] sm:$0xff] }
 0x186   : > { %v654_v33 = vadd.f32 %v653_v21, %v5740_v60  ;;  %v3659_v60 = vld [vmem:[%s3926_s21 + $0x99] sm:$0xff] }
 0x187   : > { %v1229_v51 = vadd.f32 %v1175_v50, %v950_v7  ;;  %v5746_v7 = vld [vmem:[#allocation6_spill] sm:$0xff] }
 0x188   : > { %3558 = vmatmul.msk.f32.gmra.mxu1 %vm257_vm2, %v4215_v61  ;;  %v5742_v61 = vld [vmem:[#allocation8_spill] sm:$0xff] }
 0x189   : > { %v4680_v8 = vadd.f32 %v1453_v57, %v1229_v51  ;;  %3624 = vmatmul.msk.f32.gmra.mxu2 %vm257_vm2, %v5739_v58  ;;  %v1456_v1 = vpop.f32.mrf.mxu0  ;;  %v3658_v57 = vld [vmem:[%s3926_s21 + $0x91] sm:$0xff]  ;;  %v5747_v51 = vld [vmem:[#allocation16_spill] sm:$0xff] }
 0x18a   : > { %3690 = vmatmul.msk.f32.gmra.mxu3 %vm257_vm2, %v3656_v32 }
 0x18c   : > { %v899_v52 = vpop.f32.mrf.mxu2  ;;  %3756 = vmatmul.msk.f32.gmra.mxu0 %vm257_vm2, %v5741_v53 }
 0x18d   : > { %v951_v37 = vadd.f32 %v899_v52, %v654_v33  ;;  %v656_v18 = vpop.f32.mrf.mxu1  ;;  %v1178_v13 = vpop.f32.mrf.mxu3  ;;  %v5748_v52 = vld [vmem:[#allocation14_spill] sm:$0xff] }
 0x18e   : > { %v657_v22 = vadd.f32 %v656_v18, %v5743_v41 }
 0x18f   : > { %v1230_v4 = vadd.f32 %v1178_v13, %v951_v37 }
 0x190   : > { %3559 = vmatmul.msk.f32.gmra.mxu1 %vm257_vm2, %v5738_v28 }
 0x191   : > { %v4691_v47 = vadd.f32 %v1456_v1, %v1230_v4  ;;  %3625 = vmatmul.msk.f32.gmra.mxu2 %vm257_vm2, %v5742_v61  ;;  %v1459_v55 = vpop.f32.mrf.mxu0 }
 0x192   : > { %3691 = vmatmul.msk.f32.gmra.mxu3 %vm257_vm2, %v3657_v2  ;;  %v5750_v2 = vld [vmem:[#allocation19_spill] sm:$0xff] }
 0x194   : > { %v902_v24 = vpop.f32.mrf.mxu2  ;;  %3757 = vmatmul.msk.f32.gmra.mxu0 %vm257_vm2, %v5744_v20 }
 0x195   : > { %v952_v9 = vadd.f32 %v902_v24, %v657_v22  ;;  %v659_v36 = vpop.f32.mrf.mxu1  ;;  %v1181_v48 = vpop.f32.mrf.mxu3  ;;  %v3660_v22 = vld [vmem:[%s3926_s21 + $0xa9] sm:$0xff] }
 0x196   : > { %v660_v28 = vadd.f32 %v659_v36, %v5746_v7  ;;  %v5752_v36 = vld [vmem:[#allocation12_spill] sm:$0xff] }
 0x197   : > { %v1231_v56 = vadd.f32 %v1181_v48, %v952_v9  ;;  %v5751_v9 = vld [vmem:[#allocation17_spill] sm:$0xff] }
 0x198   : > { %3560 = vmatmul.msk.f32.gmra.mxu1 %vm257_vm2, %v5741_v53  ;;  %v5749_v53 = vld [vmem:[#allocation9_spill] sm:$0xff] }
 0x199   : > { %v4702_v29 = vadd.f32 %v1459_v55, %v1231_v56  ;;  %3626 = vmatmul.msk.f32.gmra.mxu2 %vm257_vm2, %v5745_v26  ;;  %v1462_v0 = vpop.f32.mrf.mxu0  ;;  %v5753_v26 = vld [vmem:[#allocation23_spill] sm:$0xff] }
 0x19a   : > { %3692 = vmatmul.msk.f32.gmra.mxu3 %vm257_vm2, %v3658_v57 }
 0x19c   : > { %v905_v21 = vpop.f32.mrf.mxu2  ;;  %3758 = vmatmul.msk.f32.gmra.mxu0 %vm257_vm2, %v5747_v51 }
 0x19d   : > { %v953_v50 = vadd.f32 %v905_v21, %v660_v28  ;;  %v662_v32 = vpop.f32.mrf.mxu1  ;;  %v1184_v58 = vpop.f32.mrf.mxu3  ;;  %v3661_v21 = vld [vmem:[%s3926_s21 + $0xb1] sm:$0xff] }
 0x19e   : > { %v663_v18 = vadd.f32 %v662_v32, %v5749_v53 }
 0x19f   : > { %v1232_v1 = vadd.f32 %v1184_v58, %v953_v50  ;;  %v5755_v58 = vld [vmem:[#allocation15_spill] sm:$0xff] }
 0x1a0   : > { %3561 = vmatmul.msk.f32.gmra.mxu1 %vm257_vm2, %v5744_v20 }
 0x1a1   : > { %v4713_v33 = vadd.f32 %v1462_v0, %v1232_v1  ;;  %3627 = vmatmul.msk.f32.gmra.mxu2 %vm257_vm2, %v5748_v52  ;;  %v1465_v37 = vpop.f32.mrf.mxu0 }
 0x1a2   : > { %3693 = vmatmul.msk.f32.gmra.mxu3 %vm257_vm2, %v3659_v60 }
 0x1a4   : > { %v908_v13 = vpop.f32.mrf.mxu2  ;;  %3759 = vmatmul.msk.f32.gmra.mxu0 %vm257_vm2, %v5750_v2 }
 0x1a5   : > { %v954_v4 = vadd.f32 %v908_v13, %v663_v18  ;;  %v665_v61 = vpop.f32.mrf.mxu1  ;;  %v1187_v55 = vpop.f32.mrf.mxu3 }
 0x1a6   : > { %v666_v48 = vadd.f32 %v665_v61, %v5752_v36  ;;  %v5759_v36 = vld [vmem:[#allocation30_spill] sm:$0xff] }
 0x1a7   : > { %v1233_v41 = vadd.f32 %v1187_v55, %v954_v4  ;;  %v3662_v4 = vld [vmem:[%s3926_s21 + $0xc1] sm:$0xff] }
 0x1a8   : > { %3562 = vmatmul.msk.f32.gmra.mxu1 %vm257_vm2, %v5747_v51  ;;  %v5754_v51 = vld [vmem:[#allocation20_spill] sm:$0xff] }
 0x1a9   : > { %v4724_v24 = vadd.f32 %v1465_v37, %v1233_v41  ;;  %3628 = vmatmul.msk.f32.gmra.mxu2 %vm257_vm2, %v5751_v9  ;;  %v1468_v20 = vpop.f32.mrf.mxu0  ;;  %v5756_v37 = vld [vmem:[#allocation27_spill] sm:$0xff]  ;;  %v5758_v41 = vld [vmem:[#allocation18_spill] sm:$0xff] }
 0x1aa   : > { %3694 = vmatmul.msk.f32.gmra.mxu3 %vm257_vm2, %v3660_v22 }
 0x1ac   : > { %v911_v56 = vpop.f32.mrf.mxu2  ;;  %3760 = vmatmul.msk.f32.gmra.mxu0 %vm257_vm2, %v5753_v26 }
 0x1ad   : > { %v955_v57 = vadd.f32 %v911_v56, %v666_v48  ;;  %v668_v0 = vpop.f32.mrf.mxu1  ;;  %v1190_v7 = vpop.f32.mrf.mxu3 }
 0x1ae   : > { %v669_v1 = vadd.f32 %v668_v0, %v5755_v58  ;;  %v3663_v0 = vld [vmem:[%s3926_s21 + $0xc9] sm:$0xff] }
 0x1af   : > { %v1234_v28 = vadd.f32 %v1190_v7, %v955_v57 }
 0x1b0   : > { %3563 = vmatmul.msk.f32.gmra.mxu1 %vm257_vm2, %v5750_v2  ;;  %v5757_v2 = vld [vmem:[#allocation24_spill] sm:$0xff] }
 0x1b1   : > { %v4735_v50 = vadd.f32 %v1468_v20, %v1234_v28  ;;  %3629 = vmatmul.msk.f32.gmra.mxu2 %vm257_vm2, %v5754_v51  ;;  %v1471_v32 = vpop.f32.mrf.mxu0  ;;  %v5760_v28 = vld [vmem:[#allocation22_spill] sm:$0xff] }
 0x1b2   : > { %3695 = vmatmul.msk.f32.gmra.mxu3 %vm257_vm2, %v3661_v21 }
 0x1b4   : > { %v914_v60 = vpop.f32.mrf.mxu2  ;;  %3761 = vmatmul.msk.f32.gmra.mxu0 %vm257_vm2, %v5756_v37 }
 0x1b5   : > { %v956_v52 = vadd.f32 %v914_v60, %v669_v1  ;;  %v671_v53 = vpop.f32.mrf.mxu1  ;;  %v1193_v18 = vpop.f32.mrf.mxu3 }
 0x1b6   : > { %v672_v22 = vadd.f32 %v671_v53, %v5758_v41 }
 0x1b7   : > { %v1235_v13 = vadd.f32 %v1193_v18, %v956_v52  ;;  %v3664_v52 = vld [vmem:[%s3926_s21 + $0xd9] sm:$0xff] }
 0x1b8   : > { %3564 = vmatmul.msk.f32.gmra.mxu1 %vm257_vm2, %v5753_v26 }
 0x1b9   : > { %v4746_v61 = vadd.f32 %v1471_v32, %v1235_v13  ;;  %3630 = vmatmul.msk.f32.gmra.mxu2 %vm257_vm2, %v5757_v2  ;;  %v1474_v55 = vpop.f32.mrf.mxu0 }
 0x1ba   : > { %3696 = vmatmul.msk.f32.gmra.mxu3 %vm257_vm2, %v3662_v4 }
 0x1bc   : > { %v917_v9 = vpop.f32.mrf.mxu2  ;;  %3762 = vmatmul.msk.f32.gmra.mxu0 %vm257_vm2, %v5759_v36 }
 0x1bd   : > { %v957_v20 = vadd.f32 %v917_v9, %v672_v22  ;;  %v674_v48 = vpop.f32.mrf.mxu1  ;;  %v1196_v56 = vpop.f32.mrf.mxu3  ;;  %v3665_v22 = vld [vmem:[%s3926_s21 + $0xe1] sm:$0xff] }
 0x1be   : > { %v675_v21 = vadd.f32 %v674_v48, %v5760_v28  ;;  %v3666_v28 = vld [vmem:[%s3926_s21 + $0xf1] sm:$0xff] }
 0x1bf   : > { %v1236_v57 = vadd.f32 %v1196_v56, %v957_v20  ;;  %v5762_v20 = vld [vmem:[#allocation29_spill] sm:$0xff] }
 0x1c0   : > { %3565 = vmatmul.msk.f32.gmra.mxu1 %vm257_vm2, %v5756_v37  ;;  %v5761_v37 = vld [vmem:[#allocation26_spill] sm:$0xff] }
 0x1c1   : > { %v4757_v7 = vadd.f32 %v1474_v55, %v1236_v57  ;;  %3631 = vmatmul.msk.f32.gmra.mxu2 %vm257_vm2, %v4372_v6  ;;  %v1477_v26 = vpop.f32.mrf.mxu0 }
 0x1c2   : > { %3697 = vmatmul.msk.f32.gmra.mxu3 %vm257_vm2, %v3663_v0 }
 0x1c4   : > { %v920_v51 = vpop.f32.mrf.mxu2  ;;  %3763 = vmatmul.msk.f32.gmra.mxu0 %vm257_vm2, %v4404_v34 }
 0x1c5   : > { %v958_v32 = vadd.f32 %v920_v51, %v675_v21  ;;  %v677_v58 = vpop.f32.mrf.mxu1  ;;  %v1199_v1 = vpop.f32.mrf.mxu3  ;;  %v5763_v21 = vld [vmem:[#allocation31_spill] sm:$0xff] }
 0x1c6   : > { %v678_v18 = vadd.f32 %v677_v58, %v5761_v37  ;;  %v5764_v37 = vld [vmem:[#allocation32_spill] sm:$0xff] }
 0x1c7   : > { %v1237_v60 = vadd.f32 %v1199_v1, %v958_v32 }
 0x1c8   : > { %3566 = vmatmul.msk.f32.gmra.mxu1 %vm257_vm2, %v5759_v36 }
 0x1c9   : > { %v4768_v53 = vadd.f32 %v1477_v26, %v1237_v60  ;;  %3632 = vmatmul.msk.f32.gmra.mxu2 %vm257_vm2, %v4392_v10  ;;  %v1480_v6 = vpop.f32.mrf.mxu0 }
 0x1ca   : > { %3698 = vmatmul.msk.f32.gmra.mxu3 %vm257_vm2, %v3664_v52 }
 0x1cc   : > { %v923_v13 = vpop.f32.mrf.mxu2  ;;  %3764 = vmatmul.msk.f32.gmra.mxu0 %vm257_vm2, %v4421_v27 }
 0x1cd   : > { %v959_v4 = vadd.f32 %v923_v13, %v678_v18  ;;  %v680_v2 = vpop.f32.mrf.mxu1  ;;  %v1202_v55 = vpop.f32.mrf.mxu3 }
 0x1ce   : > { %v681_v36 = vadd.f32 %v680_v2, %v5762_v20 }
 0x1cf   : > { %v1238_v41 = vadd.f32 %v1202_v55, %v959_v4 }
 0x1d0   : > { %3567 = vmatmul.msk.f32.gmra.mxu1 %vm257_vm2, %v4404_v34 }
 0x1d1   : > { %v4779_v9 = vadd.f32 %v1480_v6, %v1238_v41  ;;  %3633 = vmatmul.msk.f32.gmra.mxu2 %vm257_vm2, %v4407_v59  ;;  %v1483_v10 = vpop.f32.mrf.mxu0 }
 0x1d2   : > { %3699 = vmatmul.msk.f32.gmra.mxu3 %vm257_vm2, %v3665_v22 }
 0x1d4   : > { %v926_v48 = vpop.f32.mrf.mxu2  ;;  %3765 = vmatmul.msk.f32.gmra.mxu0 %vm257_vm2, %v4438_v3 }
 0x1d5   : > { %v960_v56 = vadd.f32 %v926_v48, %v681_v36  ;;  %v1205_v57 = vpop.f32.mrf.mxu3  ;;  %v1668_v0 = vpop.f32.mrf.mxu1  ;;  %v5765_v36 = vld [vmem:[#allocation33_spill] sm:$0xff] }
 0x1d6   : > { %v1764_v51 = vadd.f32 %v1668_v0, %v5763_v21 }
 0x1d7   : > { %v1239_v26 = vadd.f32 %v1205_v57, %v960_v56 }
 0x1d8   : > { %3568 = vmatmul.msk.f32.gmra.mxu1 %vm257_vm2, %v4421_v27  ;;  %v3667_v27 = vld [vmem:[%s3926_s21 + $0xf9] sm:$0xff] }
 0x1d9   : > { %v4790_v34 = vadd.f32 %v1483_v10, %v1239_v26  ;;  %3634 = vmatmul.msk.f32.gmra.mxu2 %vm257_vm2, %v4424_v11  ;;  %v2503_v59 = vpop.f32.mrf.mxu0 }
 0x1da   : > { %3700 = vmatmul.msk.f32.gmra.mxu3 %vm257_vm2, %v3666_v28 }
 0x1dc   : > { %v1947_v32 = vpop.f32.mrf.mxu2  ;;  %3766 = vmatmul.msk.f32.gmra.mxu0 %vm257_vm2, %v4455_v15 }
 0x1dd   : > { %v2043_v58 = vadd.f32 %v1947_v32, %v1764_v51  ;;  %v1671_v1 = vpop.f32.mrf.mxu1  ;;  %v2225_v60 = vpop.f32.mrf.mxu3 }
 0x1de   : > { %v1765_v18 = vadd.f32 %v1671_v1, %v5764_v37 }
 0x1df   : > { %v2321_v52 = vadd.f32 %v2225_v60, %v2043_v58  ;;  %v3669_v58 = vld [vmem:[%s3926_s21 + $0x111] sm:$0xff] }
 0x1e0   : > { %3569 = vmatmul.msk.f32.gmra.mxu1 %vm257_vm2, %v4438_v3  ;;  %v3668_v3 = vld [vmem:[%s3926_s21 + $0x109] sm:$0xff] }
 0x1e1   : > { %v2599_v11 = vadd.f32 %v2503_v59, %v2321_v52  ;;  %3635 = vmatmul.msk.f32.gmra.mxu2 %vm257_vm2, %v4441_v45  ;;  %v2506_v6 = vpop.f32.mrf.mxu0  ;;  %v5766_v52 = vld [vmem:[#allocation34_spill] sm:$0xff] }
 0x1e2   : > { %3701 = vmatmul.msk.f32.gmra.mxu3 %vm257_vm2, %v3667_v27 }
 0x1e3   : > { %2634 = vst.msk [vmem:[%s4804_s19] sm:$0xff] %vm2633_vm3, %v2599_v11  ;;  %v2740_v22 = vmul.f32 %v2599_v11, %v2599_v11  ;;  %v2667_v20 = vsel %vm2633_vm3, %v2599_v11, 0.0 }
 0x1e4   : > { %v1950_v13 = vpop.f32.mrf.mxu2  ;;  %3767 = vmatmul.msk.f32.gmra.mxu0 %vm257_vm2, %v4472_v19 }
 0x1e5   : > { %v2044_v4 = vadd.f32 %v1950_v13, %v1765_v18  ;;  %v1674_v2 = vpop.f32.mrf.mxu1  ;;  %v2228_v55 = vpop.f32.mrf.mxu3 }
 0x1e6   : > { %v1766_v48 = vadd.f32 %v1674_v2, %v5765_v36 }
 0x1e7   : > { %v2322_v41 = vadd.f32 %v2228_v55, %v2044_v4 }
 0x1e8   : > { %3570 = vmatmul.msk.f32.gmra.mxu1 %vm257_vm2, %v4455_v15  ;;  %v2772_v15 = vsel %vm2633_vm3, %v2740_v22, 0.0 }
 0x1e9   : > { %v2600_v10 = vadd.f32 %v2506_v6, %v2322_v41  ;;  %3636 = vmatmul.msk.f32.gmra.mxu2 %vm257_vm2, %v4458_v14  ;;  %v2509_v45 = vpop.f32.mrf.mxu0  ;;  %v3670_v41 = vld [vmem:[%s3926_s21 + $0x121] sm:$0xff] }
 0x1ea   : > { %3702 = vmatmul.msk.f32.gmra.mxu3 %vm257_vm2, %v3668_v3 }
 0x1eb   : > { %2635 = vst.msk [vmem:[%s4804_s19 + $0x8] sm:$0xff] %vm2633_vm3, %v2600_v10  ;;  %v2668_v56 = vsel %vm2633_vm3, %v2600_v10, 0.0  ;;  %v2741_v57 = vmul.f32 %v2600_v10, %v2600_v10  ;;  %v5767_v10 = vld [vmem:[#allocation35_spill] sm:$0xff] }
 0x1ec   : > { %v2669_v0 = vadd.f32 %v2668_v56, %v2667_v20  ;;  %v1953_v26 = vpop.f32.mrf.mxu2  ;;  %3768 = vmatmul.msk.f32.gmra.mxu0 %vm257_vm2, %v4489_v23 }
 0x1ed   : > { %v2773_v14 = vsel %vm2633_vm3, %v2741_v57, 0.0  ;;  %v2045_v28 = vadd.f32 %v1953_v26, %v1766_v48  ;;  %v1677_v21 = vpop.f32.mrf.mxu1  ;;  %v2231_v51 = vpop.f32.mrf.mxu3 }
 0x1ee   : > { %v2774_v59 = vadd.f32 %v2773_v14, %v2772_v15  ;;  %v1767_v27 = vadd.f32 %v1677_v21, %v5766_v52  ;;  %v3671_v14 = vld [vmem:[%s3926_s21 + $0x129] sm:$0xff] }
 0x1ef   : > { %v2323_v32 = vadd.f32 %v2231_v51, %v2045_v28  ;;  %v5768_v21 = vld [vmem:[#allocation36_spill] sm:$0xff] }
 0x1f0   : > { %3571 = vmatmul.msk.f32.gmra.mxu1 %vm257_vm2, %v4472_v19 }
 0x1f1   : > { %v2601_v1 = vadd.f32 %v2509_v45, %v2323_v32  ;;  %3637 = vmatmul.msk.f32.gmra.mxu2 %vm257_vm2, %v4475_v63  ;;  %v2512_v60 = vpop.f32.mrf.mxu0 }
 0x1f2   : > { %3703 = vmatmul.msk.f32.gmra.mxu3 %vm257_vm2, %v3669_v58 }
 0x1f3   : > { %2636 = vst.msk [vmem:[%s4804_s19 + $0x10] sm:$0xff] %vm2633_vm3, %v2601_v1  ;;  %v2670_v11 = vsel %vm2633_vm3, %v2601_v1, 0.0  ;;  %v2742_v6 = vmul.f32 %v2601_v1, %v2601_v1 }
 0x1f4   : > { %v2671_v37 = vadd.f32 %v2670_v11, %v2669_v0  ;;  %v1956_v18 = vpop.f32.mrf.mxu2  ;;  %3769 = vmatmul.msk.f32.gmra.mxu0 %vm257_vm2, %v4506_v30  ;;  %v3540_v11 = vld [vmem:[%s3926_s21 + $0x122] sm:$0xff] }
 0x1f5   : > { %v2775_v13 = vsel %vm2633_vm3, %v2742_v6, 0.0  ;;  %v2046_v19 = vadd.f32 %v1956_v18, %v1767_v27  ;;  %v1680_v4 = vpop.f32.mrf.mxu1  ;;  %v2234_v2 = vpop.f32.mrf.mxu3  ;;  %v3606_v6 = vld [vmem:[%s3926_s21 + $0x138] sm:$0xff] }
 0x1f6   : > { %v2776_v63 = vadd.f32 %v2775_v13, %v2774_v59  ;;  %v1768_v45 = vadd.f32 %v1680_v4, %v5767_v10  ;;  %v3672_v18 = vld [vmem:[%s3926_s21 + $0x139] sm:$0xff] }
 0x1f7   : > { %v2324_v55 = vadd.f32 %v2234_v2, %v2046_v19 }
 0x1f8   : > { %3572 = vmatmul.msk.f32.gmra.mxu1 %vm257_vm2, %v4489_v23 }
 0x1f9   : > { %v2602_v3 = vadd.f32 %v2512_v60, %v2324_v55  ;;  %3638 = vmatmul.msk.f32.gmra.mxu2 %vm257_vm2, %v4492_v62  ;;  %v2515_v22 = vpop.f32.mrf.mxu0 }
 0x1fa   : > { %3704 = vmatmul.msk.f32.gmra.mxu3 %vm257_vm2, %v3670_v41 }
 0x1fb   : > { %2637 = vst.msk [vmem:[%s4804_s19 + $0x18] sm:$0xff] %vm2633_vm3, %v2602_v3  ;;  %v2672_v20 = vsel %vm2633_vm3, %v2602_v3, 0.0  ;;  %v2743_v36 = vmul.f32 %v2602_v3, %v2602_v3 }
 0x1fc   : > { %v2673_v48 = vadd.f32 %v2672_v20, %v2671_v37  ;;  %v1959_v56 = vpop.f32.mrf.mxu2  ;;  %3770 = vmatmul.msk.f32.gmra.mxu0 %vm257_vm2, %v4523_v35 }
 0x1fd   : > { %v2777_v57 = vsel %vm2633_vm3, %v2743_v36, 0.0  ;;  %v2047_v23 = vadd.f32 %v1959_v56, %v1768_v45  ;;  %v1683_v0 = vpop.f32.mrf.mxu1  ;;  %v2237_v26 = vpop.f32.mrf.mxu3  ;;  %v3541_v36 = vld [vmem:[%s3926_s21 + $0x12a] sm:$0xff] }
 0x1fe   : > { %v2778_v62 = vadd.f32 %v2777_v57, %v2776_v63  ;;  %v1769_v51 = vadd.f32 %v1683_v0, %v5768_v21  ;;  %v5769_v63 = vld [vmem:[#allocation37_spill] sm:$0xff]  ;;  %v3673_v57 = vld [vmem:[%s3926_s21 + $0x141] sm:$0xff] }
 0x1ff   : > { %v2325_v15 = vadd.f32 %v2237_v26, %v2047_v23  ;;  %v3739_v0 = vld [vmem:[%s3926_s21 + $0x142] sm:$0xff]  ;;  %v5770_v26 = vld [vmem:[#allocation38_spill] sm:$0xff] }
 0x200   : > { %3573 = vmatmul.msk.f32.gmra.mxu1 %vm257_vm2, %v4506_v30 }
 0x201   : > { %v2603_v28 = vadd.f32 %v2515_v22, %v2325_v15  ;;  %3639 = vmatmul.msk.f32.gmra.mxu2 %vm257_vm2, %v4509_v17  ;;  %v2518_v59 = vpop.f32.mrf.mxu0 }
 0x202   : > { %3705 = vmatmul.msk.f32.gmra.mxu3 %vm257_vm2, %v3671_v14 }
 0x203   : > { %2638 = vst.msk [vmem:[%s4804_s19 + $0x20] sm:$0xff] %vm2633_vm3, %v2603_v28  ;;  %v2674_v35 = vsel %vm2633_vm3, %v2603_v28, 0.0  ;;  %v2744_v32 = vmul.f32 %v2603_v28, %v2603_v28 }
 0x204   : > { %v2675_v58 = vadd.f32 %v2674_v35, %v2673_v48  ;;  %v1962_v1 = vpop.f32.mrf.mxu2  ;;  %3771 = vmatmul.msk.f32.gmra.mxu0 %vm257_vm2, %v4537_v39  ;;  %v3607_v48 = vld [vmem:[%s3926_s21 + $0x140] sm:$0xff] }
 0x205   : > { %v2779_v30 = vsel %vm2633_vm3, %v2744_v32, 0.0  ;;  %v2048_v60 = vadd.f32 %v1962_v1, %v1769_v51  ;;  %v1686_v52 = vpop.f32.mrf.mxu1  ;;  %v2240_v27 = vpop.f32.mrf.mxu3  ;;  %v3542_v1 = vld [vmem:[%s3926_s21 + $0x13a] sm:$0xff] }
 0x206   : > { %v2780_v17 = vadd.f32 %v2779_v30, %v2778_v62  ;;  %v1770_v4 = vadd.f32 %v1686_v52, %v5769_v63  ;;  %v3608_v30 = vld [vmem:[%s3926_s21 + $0x150] sm:$0xff] }
 0x207   : > { %v2326_v37 = vadd.f32 %v2240_v27, %v2048_v60 }
 0x208   : > { %3574 = vmatmul.msk.f32.gmra.mxu1 %vm257_vm2, %v3540_v11  ;;  %v3740_v11 = vld [vmem:[%s3926_s21 + $0x152] sm:$0xff] }
 0x209   : > { %v2604_v13 = vadd.f32 %v2518_v59, %v2326_v37  ;;  %3640 = vmatmul.msk.f32.gmra.mxu2 %vm257_vm2, %v3606_v6  ;;  %v2521_v19 = vpop.f32.mrf.mxu0  ;;  %v5771_v6 = vld [vmem:[#allocation39_spill] sm:$0xff] }
 0x20a   : > { %3706 = vmatmul.msk.f32.gmra.mxu3 %vm257_vm2, %v3672_v18 }
 0x20b   : > { %2639 = vst.msk [vmem:[%s4804_s19 + $0x28] sm:$0xff] %vm2633_vm3, %v2604_v13  ;;  %v2676_v39 = vsel %vm2633_vm3, %v2604_v13, 0.0  ;;  %v2745_v2 = vmul.f32 %v2604_v13, %v2604_v13 }
 0x20c   : > { %v2677_v55 = vadd.f32 %v2676_v39, %v2675_v58  ;;  %v1965_v41 = vpop.f32.mrf.mxu2  ;;  %3772 = vmatmul.msk.f32.gmra.mxu0 %vm257_vm2, %v4551_v5 }
 0x20d   : > { %v2781_v3 = vsel %vm2633_vm3, %v2745_v2, 0.0  ;;  %v2049_v22 = vadd.f32 %v1965_v41, %v1770_v4  ;;  %v1689_v45 = vpop.f32.mrf.mxu1  ;;  %v2243_v20 = vpop.f32.mrf.mxu3 }
 0x20e   : > { %v2782_v10 = vadd.f32 %v2781_v3, %v2780_v17  ;;  %v1771_v15 = vadd.f32 %v1689_v45, %v5770_v26  ;;  %v3674_v17 = vld [vmem:[%s3926_s21 + $0x151] sm:$0xff] }
 0x20f   : > { %v2327_v56 = vadd.f32 %v2243_v20, %v2049_v22  ;;  %v3609_v3 = vld [vmem:[%s3926_s21 + $0x158] sm:$0xff] }
 0x210   : > { %3575 = vmatmul.msk.f32.gmra.mxu1 %vm257_vm2, %v3541_v36  ;;  %v3741_v36 = vld [vmem:[%s3926_s21 + $0x15a] sm:$0xff] }
 0x211   : > { %v2605_v23 = vadd.f32 %v2521_v19, %v2327_v56  ;;  %3641 = vmatmul.msk.f32.gmra.mxu2 %vm257_vm2, %v3607_v48  ;;  %v2524_v62 = vpop.f32.mrf.mxu0 }
 0x212   : > { %3707 = vmatmul.msk.f32.gmra.mxu3 %vm257_vm2, %v3673_v57 }
 0x213   : > { %2640 = vst.msk [vmem:[%s4804_s19 + $0x30] sm:$0xff] %vm2633_vm3, %v2605_v23  ;;  %v2678_v5 = vsel %vm2633_vm3, %v2605_v23, 0.0  ;;  %v2746_v14 = vmul.f32 %v2605_v23, %v2605_v23 }
 0x214   : > { %v2679_v28 = vadd.f32 %v2678_v5, %v2677_v55  ;;  %v1968_v59 = vpop.f32.mrf.mxu2  ;;  %3773 = vmatmul.msk.f32.gmra.mxu0 %vm257_vm2, %v3739_v0 }
 0x215   : > { %v2783_v21 = vsel %vm2633_vm3, %v2746_v14, 0.0  ;;  %v2050_v51 = vadd.f32 %v1968_v59, %v1771_v15  ;;  %v1692_v32 = vpop.f32.mrf.mxu1  ;;  %v2246_v58 = vpop.f32.mrf.mxu3  ;;  %v3676_v59 = vld [vmem:[%s3926_s21 + $0x169] sm:$0xff] }
 0x216   : > { %v2784_v35 = vadd.f32 %v2783_v21, %v2782_v10  ;;  %v1772_v37 = vadd.f32 %v1692_v32, %v5771_v6  ;;  %v3675_v10 = vld [vmem:[%s3926_s21 + $0x159] sm:$0xff] }
 0x217   : > { %v2328_v60 = vadd.f32 %v2246_v58, %v2050_v51 }
 0x218   : > { %3576 = vmatmul.msk.f32.gmra.mxu1 %vm257_vm2, %v3542_v1 }
 0x219   : > { %v2606_v52 = vadd.f32 %v2524_v62, %v2328_v60  ;;  %3642 = vmatmul.msk.f32.gmra.mxu2 %vm257_vm2, %v3608_v30  ;;  %v2527_v27 = vpop.f32.mrf.mxu0 }
 0x21a   : > { %3708 = vmatmul.msk.f32.gmra.mxu3 %vm257_vm2, %v3674_v17 }
 0x21b   : > { %2641 = vst.msk [vmem:[%s4804_s19 + $0x38] sm:$0xff] %vm2633_vm3, %v2606_v52  ;;  %v2680_v18 = vsel %vm2633_vm3, %v2606_v52, 0.0  ;;  %v2747_v13 = vmul.f32 %v2606_v52, %v2606_v52 }
 0x21c   : > { %v2681_v19 = vadd.f32 %v2680_v18, %v2679_v28  ;;  %v1971_v63 = vpop.f32.mrf.mxu2  ;;  %3774 = vmatmul.msk.f32.gmra.mxu0 %vm257_vm2, %v3740_v11  ;;  %v3677_v18 = vld [vmem:[%s3926_s21 + $0x171] sm:$0xff] }
 0x21d   : > { %v2785_v4 = vsel %vm2633_vm3, %v2747_v13, 0.0  ;;  %v2051_v39 = vadd.f32 %v1971_v63, %v1772_v37  ;;  %v1695_v55 = vpop.f32.mrf.mxu1  ;;  %v2249_v41 = vpop.f32.mrf.mxu3  ;;  %v3743_v63 = vld [vmem:[%s3926_s21 + $0x172] sm:$0xff] }
 0x21e   : > { %v2786_v2 = vadd.f32 %v2785_v4, %v2784_v35  ;;  %v1773_v48 = vadd.f32 %v1695_v55, %v4554_v38  ;;  %v3610_v38 = vld [vmem:[%s3926_s21 + $0x168] sm:$0xff] }
 0x21f   : > { %v2329_v22 = vadd.f32 %v2249_v41, %v2051_v39  ;;  %v3742_v35 = vld [vmem:[%s3926_s21 + $0x16a] sm:$0xff] }
 0x220   : > { %3577 = vmatmul.msk.f32.gmra.mxu1 %vm257_vm2, %v3739_v0 }
 0x221   : > { %v2607_v45 = vadd.f32 %v2527_v27, %v2329_v22  ;;  %3643 = vmatmul.msk.f32.gmra.mxu2 %vm257_vm2, %v3609_v3  ;;  %v2530_v20 = vpop.f32.mrf.mxu0 }
 0x222   : > { %3709 = vmatmul.msk.f32.gmra.mxu3 %vm257_vm2, %v3675_v10 }
 0x223   : > { %2642 = vst.msk [vmem:[%s4804_s19 + $0x40] sm:$0xff] %vm2633_vm3, %v2607_v45  ;;  %v2682_v56 = vsel %vm2633_vm3, %v2607_v45, 0.0  ;;  %v2748_v57 = vmul.f32 %v2607_v45, %v2607_v45 }
 0x224   : > { %v2683_v23 = vadd.f32 %v2682_v56, %v2681_v19  ;;  %v1974_v62 = vpop.f32.mrf.mxu2  ;;  %3775 = vmatmul.msk.f32.gmra.mxu0 %vm257_vm2, %v3741_v36 }
 0x225   : > { %v2787_v0 = vsel %vm2633_vm3, %v2748_v57, 0.0  ;;  %v2052_v26 = vadd.f32 %v1974_v62, %v1773_v48  ;;  %v1698_v5 = vpop.f32.mrf.mxu1  ;;  %v2252_v14 = vpop.f32.mrf.mxu3  ;;  %v3678_v48 = vld [vmem:[%s3926_s21 + $0x181] sm:$0xff] }
 0x226   : > { %v2788_v15 = vadd.f32 %v2787_v0, %v2786_v2  ;;  %v1774_v32 = vadd.f32 %v1698_v5, %v4565_v25  ;;  %v3611_v25 = vld [vmem:[%s3926_s21 + $0x170] sm:$0xff] }
 0x227   : > { %v2330_v28 = vadd.f32 %v2252_v14, %v2052_v26 }
 0x228   : > { %3578 = vmatmul.msk.f32.gmra.mxu1 %vm257_vm2, %v3740_v11 }
 0x229   : > { %v2608_v21 = vadd.f32 %v2530_v20, %v2330_v28  ;;  %3644 = vmatmul.msk.f32.gmra.mxu2 %vm257_vm2, %v3610_v38  ;;  %v2533_v51 = vpop.f32.mrf.mxu0 }
 0x22a   : > { %3710 = vmatmul.msk.f32.gmra.mxu3 %vm257_vm2, %v3676_v59 }
 0x22b   : > { %2643 = vst.msk [vmem:[%s4804_s19 + $0x48] sm:$0xff] %vm2633_vm3, %v2608_v21  ;;  %v2684_v58 = vsel %vm2633_vm3, %v2608_v21, 0.0  ;;  %v2749_v1 = vmul.f32 %v2608_v21, %v2608_v21 }
 0x22c   : > { %v2685_v30 = vadd.f32 %v2684_v58, %v2683_v23  ;;  %v1977_v60 = vpop.f32.mrf.mxu2  ;;  %3776 = vmatmul.msk.f32.gmra.mxu0 %vm257_vm2, %v3742_v35  ;;  %v3744_v23 = vld [vmem:[%s3926_s21 + $0x182] sm:$0xff] }
 0x22d   : > { %v2789_v17 = vsel %vm2633_vm3, %v2749_v1, 0.0  ;;  %v2053_v52 = vadd.f32 %v1977_v60, %v1774_v32  ;;  %v1701_v11 = vpop.f32.mrf.mxu1  ;;  %v2255_v6 = vpop.f32.mrf.mxu3  ;;  %v3745_v1 = vld [vmem:[%s3926_s21 + $0x18a] sm:$0xff] }
 0x22e   : > { %v2790_v27 = vadd.f32 %v2789_v17, %v2788_v15  ;;  %v1775_v4 = vadd.f32 %v1701_v11, %v4575_v46  ;;  %v3612_v46 = vld [vmem:[%s3926_s21 + $0x180] sm:$0xff] }
 0x22f   : > { %v2331_v37 = vadd.f32 %v2255_v6, %v2053_v52 }
 0x230   : > { %3579 = vmatmul.msk.f32.gmra.mxu1 %vm257_vm2, %v3741_v36 }
 0x231   : > { %v2609_v13 = vadd.f32 %v2533_v51, %v2331_v37  ;;  %3645 = vmatmul.msk.f32.gmra.mxu2 %vm257_vm2, %v3611_v25  ;;  %v2536_v19 = vpop.f32.mrf.mxu0 }
 0x232   : > { %3711 = vmatmul.msk.f32.gmra.mxu3 %vm257_vm2, %v3677_v18 }
 0x233   : > { %2644 = vst.msk [vmem:[%s4804_s19 + $0x50] sm:$0xff] %vm2633_vm3, %v2609_v13  ;;  %v2686_v39 = vsel %vm2633_vm3, %v2609_v13, 0.0  ;;  %v2750_v2 = vmul.f32 %v2609_v13, %v2609_v13 }
 0x234   : > { %v2687_v55 = vadd.f32 %v2686_v39, %v2685_v30  ;;  %v1980_v41 = vpop.f32.mrf.mxu2  ;;  %3777 = vmatmul.msk.f32.gmra.mxu0 %vm257_vm2, %v3743_v63  ;;  %v3746_v39 = vld [vmem:[%s3926_s21 + $0x19a] sm:$0xff] }
 0x235   : > { %v2791_v3 = vsel %vm2633_vm3, %v2750_v2, 0.0  ;;  %v2054_v22 = vadd.f32 %v1980_v41, %v1775_v4  ;;  %v1704_v45 = vpop.f32.mrf.mxu1  ;;  %v2258_v20 = vpop.f32.mrf.mxu3 }
 0x236   : > { %v2792_v10 = vadd.f32 %v2791_v3, %v2790_v27  ;;  %v1776_v62 = vadd.f32 %v1704_v45, %v4585_v44  ;;  %v3613_v44 = vld [vmem:[%s3926_s21 + $0x188] sm:$0xff] }
 0x237   : > { %v2332_v36 = vadd.f32 %v2258_v20, %v2054_v22 }
 0x238   : > { %3580 = vmatmul.msk.f32.gmra.mxu1 %vm257_vm2, %v3742_v35  ;;  %v3679_v35 = vld [vmem:[%s3926_s21 + $0x189] sm:$0xff] }
 0x239   : > { %v2610_v56 = vadd.f32 %v2536_v19, %v2332_v36  ;;  %3646 = vmatmul.msk.f32.gmra.mxu2 %vm257_vm2, %v3612_v46  ;;  %v2539_v57 = vpop.f32.mrf.mxu0  ;;  %v3680_v19 = vld [vmem:[%s3926_s21 + $0x199] sm:$0xff] }
 0x23a   : > { %3712 = vmatmul.msk.f32.gmra.mxu3 %vm257_vm2, %v3678_v48 }
 0x23b   : > { %2645 = vst.msk [vmem:[%s4804_s19 + $0x58] sm:$0xff] %vm2633_vm3, %v2610_v56  ;;  %v2688_v0 = vsel %vm2633_vm3, %v2610_v56, 0.0  ;;  %v2751_v26 = vmul.f32 %v2610_v56, %v2610_v56  ;;  %v3681_v56 = vld [vmem:[%s3926_s21 + $0x1a1] sm:$0xff] }
 0x23c   : > { %v2689_v15 = vadd.f32 %v2688_v0, %v2687_v55  ;;  %v1983_v5 = vpop.f32.mrf.mxu2  ;;  %3778 = vmatmul.msk.f32.gmra.mxu0 %vm257_vm2, %v3744_v23 }
 0x23d   : > { %v2793_v14 = vsel %vm2633_vm3, %v2751_v26, 0.0  ;;  %v2055_v38 = vadd.f32 %v1983_v5, %v1776_v62  ;;  %v1707_v59 = vpop.f32.mrf.mxu1  ;;  %v2261_v21 = vpop.f32.mrf.mxu3  ;;  %v3747_v62 = vld [vmem:[%s3926_s21 + $0x1a2] sm:$0xff] }
 0x23e   : > { %v2794_v28 = vadd.f32 %v2793_v14, %v2792_v10  ;;  %v1777_v30 = vadd.f32 %v1707_v59, %v4595_v31  ;;  %v3614_v31 = vld [vmem:[%s3926_s21 + $0x198] sm:$0xff] }
 0x23f   : > { %v2333_v51 = vadd.f32 %v2261_v21, %v2055_v38 }
 0x240   : > { %3581 = vmatmul.msk.f32.gmra.mxu1 %vm257_vm2, %v3743_v63 }
 0x241   : > { %v2611_v32 = vadd.f32 %v2539_v57, %v2333_v51  ;;  %3647 = vmatmul.msk.f32.gmra.mxu2 %vm257_vm2, %v3613_v44  ;;  %v2542_v58 = vpop.f32.mrf.mxu0 }
 0x242   : > { %3713 = vmatmul.msk.f32.gmra.mxu3 %vm257_vm2, %v3679_v35 }
 0x243   : > { %2646 = vst.msk [vmem:[%s4804_s19 + $0x60] sm:$0xff] %vm2633_vm3, %v2611_v32  ;;  %v2690_v60 = vsel %vm2633_vm3, %v2611_v32, 0.0  ;;  %v2752_v17 = vmul.f32 %v2611_v32, %v2611_v32 }
 0x244   : > { %v2691_v52 = vadd.f32 %v2690_v60, %v2689_v15  ;;  %v1986_v27 = vpop.f32.mrf.mxu2  ;;  %3779 = vmatmul.msk.f32.gmra.mxu0 %vm257_vm2, %v3745_v1 }
 0x245   : > { %v2795_v11 = vsel %vm2633_vm3, %v2752_v17, 0.0  ;;  %v2056_v6 = vadd.f32 %v1986_v27, %v1777_v30  ;;  %v1710_v37 = vpop.f32.mrf.mxu1  ;;  %v2264_v18 = vpop.f32.mrf.mxu3 }
 0x246   : > { %v2796_v25 = vadd.f32 %v2795_v11, %v2794_v28  ;;  %v1778_v2 = vadd.f32 %v1710_v37, %v4605_v16  ;;  %v3615_v16 = vld [vmem:[%s3926_s21 + $0x1a0] sm:$0xff]  ;;  %s3881_s21 = smov (!%p3783_p5), 112  }
 0x247   : > { %v2334_v13 = vadd.f32 %v2264_v18, %v2056_v6 }
 0x248   : > { %3582 = vmatmul.msk.f32.gmra.mxu1 %vm257_vm2, %v3744_v23 }
 0x249   : > { %v2612_v63 = vadd.f32 %v2542_v58, %v2334_v13  ;;  %3648 = vmatmul.msk.f32.gmra.mxu2 %vm257_vm2, %v3614_v31  ;;  %v2545_v4 = vpop.f32.mrf.mxu0 }
 0x24a   : > { %3714 = vmatmul.msk.f32.gmra.mxu3 %vm257_vm2, %v3680_v19 }
 0x24b   : > { %2647 = vst.msk [vmem:[%s4804_s19 + $0x68] sm:$0xff] %vm2633_vm3, %v2612_v63  ;;  %v2692_v55 = vsel %vm2633_vm3, %v2612_v63, 0.0  ;;  %v2753_v41 = vmul.f32 %v2612_v63, %v2612_v63 }
 0x24c   : > { %v2693_v3 = vadd.f32 %v2692_v55, %v2691_v52  ;;  %v1989_v22 = vpop.f32.mrf.mxu2  ;;  %3780 = vmatmul.msk.f32.gmra.mxu0 %vm257_vm2, %v3746_v39 }
 0x24d   : > { %v2797_v10 = vsel %vm2633_vm3, %v2753_v41, 0.0  ;;  %v2057_v45 = vadd.f32 %v1989_v22, %v1778_v2  ;;  %v1713_v46 = vpop.f32.mrf.mxu1  ;;  %v2267_v36 = vpop.f32.mrf.mxu3 }
 0x24e   : > { %v2798_v20 = vadd.f32 %v2797_v10, %v2796_v25  ;;  %v1779_v0 = vadd.f32 %v1713_v46, %v4613_v40 }
 0x24f   : > { %v2335_v48 = vadd.f32 %v2267_v36, %v2057_v45 }
 0x250   : > { %3583 = vmatmul.msk.f32.gmra.mxu1 %vm257_vm2, %v3745_v1 }
 0x251   : > { %v2613_v57 = vadd.f32 %v2545_v4, %v2335_v48  ;;  %3649 = vmatmul.msk.f32.gmra.mxu2 %vm257_vm2, %v3615_v16  ;;  %v2548_v23 = vpop.f32.mrf.mxu0 }
 0x252   : > { %3715 = vmatmul.msk.f32.gmra.mxu3 %vm257_vm2, %v3681_v56 }
 0x253   : > { %2648 = vst.msk [vmem:[%s4804_s19 + $0x70] sm:$0xff] %vm2633_vm3, %v2613_v57  ;;  %v2694_v26 = vsel %vm2633_vm3, %v2613_v57, 0.0  ;;  %v2754_v15 = vmul.f32 %v2613_v57, %v2613_v57 }
 0x254   : > { %v2695_v5 = vadd.f32 %v2694_v26, %v2693_v3  ;;  %v1992_v14 = vpop.f32.mrf.mxu2  ;;  %3781 = vmatmul.msk.f32.gmra.mxu0 %vm257_vm2, %v3747_v62 }
 0x255   : > { %v2799_v38 = vsel %vm2633_vm3, %v2754_v15, 0.0  ;;  %v2058_v28 = vadd.f32 %v1992_v14, %v1779_v0  ;;  %v1716_v21 = vpop.f32.mrf.mxu1  ;;  %v2270_v44 = vpop.f32.mrf.mxu3 }
 0x256   : > { %v2800_v59 = vadd.f32 %v2799_v38, %v2798_v20  ;;  %v1780_v32 = vadd.f32 %v1716_v21, %v4624_v42 }
 0x257   : > { %v2336_v51 = vadd.f32 %v2270_v44, %v2058_v28 }
 0x259   : > { %v2614_v40 = vadd.f32 %v2548_v23, %v2336_v51  ;;  %v2551_v35 = vpop.f32.mrf.mxu0 }
 0x25b   : > { %2649 = vst.msk [vmem:[%s4804_s19 + $0x78] sm:$0xff] %vm2633_vm3, %v2614_v40  ;;  %v2696_v58 = vsel %vm2633_vm3, %v2614_v40, 0.0  ;;  %v2755_v1 = vmul.f32 %v2614_v40, %v2614_v40 }
 0x25c   : > { %v2697_v30 = vadd.f32 %v2696_v58, %v2695_v5  ;;  %v1995_v60 = vpop.f32.mrf.mxu2 }
 0x25d   : > { %v2801_v17 = vsel %vm2633_vm3, %v2755_v1, 0.0  ;;  %v2059_v52 = vadd.f32 %v1995_v60, %v1780_v32  ;;  %v1719_v11 = vpop.f32.mrf.mxu1  ;;  %v2273_v6 = vpop.f32.mrf.mxu3 }
 0x25e   : > { %v2802_v27 = vadd.f32 %v2801_v17, %v2800_v59  ;;  %v1781_v31 = vadd.f32 %v1719_v11, %v4635_v43 }
 0x25f   : > { %v2337_v25 = vadd.f32 %v2273_v6, %v2059_v52 }
 0x261   : > { %v2615_v37 = vadd.f32 %v2551_v35, %v2337_v25  ;;  %v2554_v18 = vpop.f32.mrf.mxu0 }
 0x263   : > { %2650 = vst.msk [vmem:[%s4804_s19 + $0x80] sm:$0xff] %vm2633_vm3, %v2615_v37  ;;  %v2698_v42 = vsel %vm2633_vm3, %v2615_v37, 0.0  ;;  %v2756_v13 = vmul.f32 %v2615_v37, %v2615_v37 }
 0x264   : > { %v2699_v19 = vadd.f32 %v2698_v42, %v2697_v30  ;;  %v1998_v63 = vpop.f32.mrf.mxu2 }
 0x265   : > { %v2803_v4 = vsel %vm2633_vm3, %v2756_v13, 0.0  ;;  %v2060_v39 = vadd.f32 %v1998_v63, %v1781_v31  ;;  %v1722_v55 = vpop.f32.mrf.mxu1  ;;  %v2276_v41 = vpop.f32.mrf.mxu3 }
 0x266   : > { %v2804_v2 = vadd.f32 %v2803_v4, %v2802_v27  ;;  %v1782_v45 = vadd.f32 %v1722_v55, %v4646_v12 }
 0x267   : > { %v2338_v3 = vadd.f32 %v2276_v41, %v2060_v39 }
 0x269   : > { %v2616_v22 = vadd.f32 %v2554_v18, %v2338_v3  ;;  %v2557_v10 = vpop.f32.mrf.mxu0 }
 0x26b   : > { %2651 = vst.msk [vmem:[%s4804_s19 + $0x88] sm:$0xff] %vm2633_vm3, %v2616_v22  ;;  %v2700_v43 = vsel %vm2633_vm3, %v2616_v22, 0.0  ;;  %v2757_v20 = vmul.f32 %v2616_v22, %v2616_v22 }
 0x26c   : > { %v2701_v46 = vadd.f32 %v2700_v43, %v2699_v19  ;;  %v2001_v36 = vpop.f32.mrf.mxu2 }
 0x26d   : > { %v2805_v16 = vsel %vm2633_vm3, %v2757_v20, 0.0  ;;  %v2061_v48 = vadd.f32 %v2001_v36, %v1782_v45  ;;  %v1725_v57 = vpop.f32.mrf.mxu1  ;;  %v2279_v23 = vpop.f32.mrf.mxu3 }
 0x26e   : > { %v2806_v56 = vadd.f32 %v2805_v16, %v2804_v2  ;;  %v1783_v15 = vadd.f32 %v1725_v57, %v4658_v54 }
 0x26f   : > { %v2339_v62 = vadd.f32 %v2279_v23, %v2061_v48 }
 0x271   : > { %v2617_v0 = vadd.f32 %v2557_v10, %v2339_v62  ;;  %v2560_v26 = vpop.f32.mrf.mxu0 }
 0x273   : > { %2652 = vst.msk [vmem:[%s4804_s19 + $0x90] sm:$0xff] %vm2633_vm3, %v2617_v0  ;;  %v2702_v12 = vsel %vm2633_vm3, %v2617_v0, 0.0  ;;  %v2758_v5 = vmul.f32 %v2617_v0, %v2617_v0 }
 0x274   : > { %v2703_v14 = vadd.f32 %v2702_v12, %v2701_v46  ;;  %v2004_v38 = vpop.f32.mrf.mxu2 }
 0x275   : > { %v2807_v28 = vsel %vm2633_vm3, %v2758_v5, 0.0  ;;  %v2062_v59 = vadd.f32 %v2004_v38, %v1783_v15  ;;  %v1728_v44 = vpop.f32.mrf.mxu1  ;;  %v2282_v51 = vpop.f32.mrf.mxu3 }
 0x276   : > { %v2808_v21 = vadd.f32 %v2807_v28, %v2806_v56  ;;  %v1784_v58 = vadd.f32 %v1728_v44, %v4669_v49 }
 0x277   : > { %v2340_v40 = vadd.f32 %v2282_v51, %v2062_v59 }
 0x279   : > { %v2618_v35 = vadd.f32 %v2560_v26, %v2340_v40  ;;  %v2563_v32 = vpop.f32.mrf.mxu0 }
 0x27b   : > { %2653 = vst.msk [vmem:[%s4804_s19 + $0x98] sm:$0xff] %vm2633_vm3, %v2618_v35  ;;  %v2704_v54 = vsel %vm2633_vm3, %v2618_v35, 0.0  ;;  %v2759_v1 = vmul.f32 %v2618_v35, %v2618_v35 }
 0x27c   : > { %v2705_v30 = vadd.f32 %v2704_v54, %v2703_v14  ;;  %v2007_v60 = vpop.f32.mrf.mxu2 }
 0x27d   : > { %v2809_v17 = vsel %vm2633_vm3, %v2759_v1, 0.0  ;;  %v2063_v52 = vadd.f32 %v2007_v60, %v1784_v58  ;;  %v1731_v11 = vpop.f32.mrf.mxu1  ;;  %v2285_v6 = vpop.f32.mrf.mxu3 }
 0x27e   : > { %v2810_v27 = vadd.f32 %v2809_v17, %v2808_v21  ;;  %v1785_v31 = vadd.f32 %v1731_v11, %v4680_v8 }
 0x27f   : > { %v2341_v25 = vadd.f32 %v2285_v6, %v2063_v52 }
 0x281   : > { %v2619_v37 = vadd.f32 %v2563_v32, %v2341_v25  ;;  %v2566_v18 = vpop.f32.mrf.mxu0 }
 0x283   : > { %2654 = vst.msk [vmem:[%s4804_s19 + $0xa0] sm:$0xff] %vm2633_vm3, %v2619_v37  ;;  %v2706_v49 = vsel %vm2633_vm3, %v2619_v37, 0.0  ;;  %v2760_v42 = vmul.f32 %v2619_v37, %v2619_v37 }
 0x284   : > { %v2707_v13 = vadd.f32 %v2706_v49, %v2705_v30  ;;  %v2010_v19 = vpop.f32.mrf.mxu2 }
 0x285   : > { %v2811_v63 = vsel %vm2633_vm3, %v2760_v42, 0.0  ;;  %v2064_v4 = vadd.f32 %v2010_v19, %v1785_v31  ;;  %v1734_v2 = vpop.f32.mrf.mxu1  ;;  %v2288_v55 = vpop.f32.mrf.mxu3 }
 0x286   : > { %v2812_v39 = vadd.f32 %v2811_v63, %v2810_v27  ;;  %v1786_v10 = vadd.f32 %v1734_v2, %v4691_v47 }
 0x287   : > { %v2342_v41 = vadd.f32 %v2288_v55, %v2064_v4 }
 0x289   : > { %v2620_v3 = vadd.f32 %v2566_v18, %v2342_v41  ;;  %v2569_v22 = vpop.f32.mrf.mxu0 }
 0x28b   : > { %2655 = vst.msk [vmem:[%s4804_s19 + $0xa8] sm:$0xff] %vm2633_vm3, %v2620_v3  ;;  %v2708_v8 = vsel %vm2633_vm3, %v2620_v3, 0.0  ;;  %v2761_v45 = vmul.f32 %v2620_v3, %v2620_v3 }
 0x28c   : > { %v2709_v43 = vadd.f32 %v2708_v8, %v2707_v13  ;;  %v2013_v20 = vpop.f32.mrf.mxu2 }
 0x28d   : > { %v2813_v46 = vsel %vm2633_vm3, %v2761_v45, 0.0  ;;  %v2065_v36 = vadd.f32 %v2013_v20, %v1786_v10  ;;  %v1737_v48 = vpop.f32.mrf.mxu1  ;;  %v2291_v56 = vpop.f32.mrf.mxu3 }
 0x28e   : > { %v2814_v16 = vadd.f32 %v2813_v46, %v2812_v39  ;;  %v1787_v0 = vadd.f32 %v1737_v48, %v4702_v29 }
 0x28f   : > { %v2343_v57 = vadd.f32 %v2291_v56, %v2065_v36 }
 0x291   : > { %v2621_v23 = vadd.f32 %v2569_v22, %v2343_v57  ;;  %v2572_v62 = vpop.f32.mrf.mxu0 }
 0x293   : > { %2656 = vst.msk [vmem:[%s4804_s19 + $0xb0] sm:$0xff] %vm2633_vm3, %v2621_v23  ;;  %v2710_v47 = vsel %vm2633_vm3, %v2621_v23, 0.0  ;;  %v2762_v26 = vmul.f32 %v2621_v23, %v2621_v23 }
 0x294   : > { %v2711_v15 = vadd.f32 %v2710_v47, %v2709_v43  ;;  %v2016_v12 = vpop.f32.mrf.mxu2 }
 0x295   : > { %v2815_v5 = vsel %vm2633_vm3, %v2762_v26, 0.0  ;;  %v2066_v14 = vadd.f32 %v2016_v12, %v1787_v0  ;;  %v1740_v28 = vpop.f32.mrf.mxu1  ;;  %v2294_v59 = vpop.f32.mrf.mxu3 }
 0x296   : > { %v2816_v38 = vadd.f32 %v2815_v5, %v2814_v16  ;;  %v1788_v40 = vadd.f32 %v1740_v28, %v4713_v33 }
 0x297   : > { %v2344_v21 = vadd.f32 %v2294_v59, %v2066_v14 }
 0x299   : > { %v2622_v44 = vadd.f32 %v2572_v62, %v2344_v21  ;;  %v2575_v51 = vpop.f32.mrf.mxu0 }
 0x29b   : > { %2657 = vst.msk [vmem:[%s4804_s19 + $0xb8] sm:$0xff] %vm2633_vm3, %v2622_v44  ;;  %v2712_v29 = vsel %vm2633_vm3, %v2622_v44, 0.0  ;;  %v2763_v35 = vmul.f32 %v2622_v44, %v2622_v44 }
 0x29c   : > { %v2713_v32 = vadd.f32 %v2712_v29, %v2711_v15  ;;  %v2019_v58 = vpop.f32.mrf.mxu2 }
 0x29d   : > { %v2817_v54 = vsel %vm2633_vm3, %v2763_v35, 0.0  ;;  %v2067_v1 = vadd.f32 %v2019_v58, %v1788_v40  ;;  %v1743_v60 = vpop.f32.mrf.mxu1  ;;  %v2297_v17 = vpop.f32.mrf.mxu3 }
 0x29e   : > { %v2818_v30 = vadd.f32 %v2817_v54, %v2816_v38  ;;  %v1789_v6 = vadd.f32 %v1743_v60, %v4724_v24 }
 0x29f   : > { %v2345_v52 = vadd.f32 %v2297_v17, %v2067_v1 }
 0x2a1   : > { %v2623_v27 = vadd.f32 %v2575_v51, %v2345_v52  ;;  %v2578_v11 = vpop.f32.mrf.mxu0 }
 0x2a3   : > { %2658 = vst.msk [vmem:[%s4804_s19 + $0xc0] sm:$0xff] %vm2633_vm3, %v2623_v27  ;;  %v2714_v33 = vsel %vm2633_vm3, %v2623_v27, 0.0  ;;  %v2764_v25 = vmul.f32 %v2623_v27, %v2623_v27 }
 0x2a4   : > { %v2715_v37 = vadd.f32 %v2714_v33, %v2713_v32  ;;  %v2022_v18 = vpop.f32.mrf.mxu2 }
 0x2a5   : > { %v2819_v31 = vsel %vm2633_vm3, %v2764_v25, 0.0  ;;  %v2068_v49 = vadd.f32 %v2022_v18, %v1789_v6  ;;  %v1746_v13 = vpop.f32.mrf.mxu1  ;;  %v2300_v19 = vpop.f32.mrf.mxu3 }
 0x2a6   : > { %v2820_v42 = vadd.f32 %v2819_v31, %v2818_v30  ;;  %v1790_v2 = vadd.f32 %v1746_v13, %v4735_v50 }
 0x2a7   : > { %v2346_v63 = vadd.f32 %v2300_v19, %v2068_v49 }
 0x2a9   : > { %v2624_v4 = vadd.f32 %v2578_v11, %v2346_v63  ;;  %v2581_v39 = vpop.f32.mrf.mxu0 }
 0x2ab   : > { %2659 = vst.msk [vmem:[%s4804_s19 + $0xc8] sm:$0xff] %vm2633_vm3, %v2624_v4  ;;  %v2716_v24 = vsel %vm2633_vm3, %v2624_v4, 0.0  ;;  %v2765_v55 = vmul.f32 %v2624_v4, %v2624_v4 }
 0x2ac   : > { %v2717_v41 = vadd.f32 %v2716_v24, %v2715_v37  ;;  %v2025_v3 = vpop.f32.mrf.mxu2 }
 0x2ad   : > { %v2821_v22 = vsel %vm2633_vm3, %v2765_v55, 0.0  ;;  %v2069_v10 = vadd.f32 %v2025_v3, %v1790_v2  ;;  %v1749_v45 = vpop.f32.mrf.mxu1  ;;  %v2303_v43 = vpop.f32.mrf.mxu3 }
 0x2ae   : > { %v2822_v8 = vadd.f32 %v2821_v22, %v2820_v42  ;;  %v1791_v16 = vadd.f32 %v1749_v45, %v4746_v61 }
 0x2af   : > { %v2347_v20 = vadd.f32 %v2303_v43, %v2069_v10 }
 0x2b1   : > { %v2625_v46 = vadd.f32 %v2581_v39, %v2347_v20  ;;  %v2584_v36 = vpop.f32.mrf.mxu0 }
 0x2b3   : > { %2660 = vst.msk [vmem:[%s4804_s19 + $0xd0] sm:$0xff] %vm2633_vm3, %v2625_v46  ;;  %v2718_v50 = vsel %vm2633_vm3, %v2625_v46, 0.0  ;;  %v2766_v48 = vmul.f32 %v2625_v46, %v2625_v46 }
 0x2b4   : > { %v2719_v56 = vadd.f32 %v2718_v50, %v2717_v41  ;;  %v2028_v57 = vpop.f32.mrf.mxu2 }
 0x2b5   : > { %v2823_v23 = vsel %vm2633_vm3, %v2766_v48, 0.0  ;;  %v2070_v62 = vadd.f32 %v2028_v57, %v1791_v16  ;;  %v1752_v47 = vpop.f32.mrf.mxu1  ;;  %v2306_v26 = vpop.f32.mrf.mxu3 }
 0x2b6   : > { %v2824_v0 = vadd.f32 %v2823_v23, %v2822_v8  ;;  %v1792_v14 = vadd.f32 %v1752_v47, %v4757_v7 }
 0x2b7   : > { %v2348_v15 = vadd.f32 %v2306_v26, %v2070_v62 }
 0x2b9   : > { %v2626_v12 = vadd.f32 %v2584_v36, %v2348_v15  ;;  %v2587_v5 = vpop.f32.mrf.mxu0 }
 0x2bb   : > { %2661 = vst.msk [vmem:[%s4804_s19 + $0xd8] sm:$0xff] %vm2633_vm3, %v2626_v12  ;;  %v2720_v61 = vsel %vm2633_vm3, %v2626_v12, 0.0  ;;  %v2767_v38 = vmul.f32 %v2626_v12, %v2626_v12 }
 0x2bc   : > { %v2721_v28 = vadd.f32 %v2720_v61, %v2719_v56  ;;  %v2031_v59 = vpop.f32.mrf.mxu2 }
 0x2bd   : > { %v2825_v21 = vsel %vm2633_vm3, %v2767_v38, 0.0  ;;  %v2071_v44 = vadd.f32 %v2031_v59, %v1792_v14  ;;  %v1755_v40 = vpop.f32.mrf.mxu1  ;;  %v2309_v29 = vpop.f32.mrf.mxu3  ;;  %v2666_v14 = vld [vmem:[#allocation2] sm:$0x1] }
 0x2be   : > { %v2826_v51 = vadd.f32 %v2825_v21, %v2824_v0  ;;  %v1793_v54 = vadd.f32 %v1755_v40, %v4768_v53 }
 0x2bf   : > { %v2349_v35 = vadd.f32 %v2309_v29, %v2071_v44 }
 0x2c1   : > { %v2627_v32 = vadd.f32 %v2587_v5, %v2349_v35  ;;  %v2590_v58 = vpop.f32.mrf.mxu0 }
 0x2c3   : > { %2662 = vst.msk [vmem:[%s4804_s19 + $0xe0] sm:$0xff] %vm2633_vm3, %v2627_v32  ;;  %v2722_v7 = vsel %vm2633_vm3, %v2627_v32, 0.0  ;;  %v2768_v1 = vmul.f32 %v2627_v32, %v2627_v32 }
 0x2c4   : > { %v2723_v30 = vadd.f32 %v2722_v7, %v2721_v28  ;;  %v2034_v60 = vpop.f32.mrf.mxu2  ;;  %v2739_v28 = vld [vmem:[#allocation3] sm:$0x1] }
 0x2c5   : > { %v2827_v17 = vsel %vm2633_vm3, %v2768_v1, 0.0  ;;  %v2072_v52 = vadd.f32 %v2034_v60, %v1793_v54  ;;  %v1758_v11 = vpop.f32.mrf.mxu1  ;;  %v2312_v6 = vpop.f32.mrf.mxu3 }
 0x2c6   : > { %v2828_v27 = vadd.f32 %v2827_v17, %v2826_v51  ;;  %v1794_v37 = vadd.f32 %v1758_v11, %v4779_v9 }
 0x2c7   : > { %v2350_v33 = vadd.f32 %v2312_v6, %v2072_v52 }
 0x2c9   : > { %v2628_v25 = vadd.f32 %v2590_v58, %v2350_v33  ;;  %v2593_v42 = vpop.f32.mrf.mxu0 }
 0x2cb   : > { %2663 = vst.msk [vmem:[%s4804_s19 + $0xe8] sm:$0xff] %vm2633_vm3, %v2628_v25  ;;  %v2724_v53 = vsel %vm2633_vm3, %v2628_v25, 0.0  ;;  %v2769_v18 = vmul.f32 %v2628_v25, %v2628_v25 }
 0x2cc   : > { %v2725_v31 = vadd.f32 %v2724_v53, %v2723_v30  ;;  %v2037_v49 = vpop.f32.mrf.mxu2 }
 0x2cd   : > { %v2829_v13 = vsel %vm2633_vm3, %v2769_v18, 0.0  ;;  %v2073_v19 = vadd.f32 %v2037_v49, %v1794_v37  ;;  %v2315_v4 = vpop.f32.mrf.mxu3  ;;  %v1761_v2 = vpop.f32.mrf.mxu1 }
 0x2ce   : > { %v2830_v63 = vadd.f32 %v2829_v13, %v2828_v27  ;;  %v1795_v55 = vadd.f32 %v1761_v2, %v4790_v34 }
 0x2cf   : > { %v2351_v39 = vadd.f32 %v2315_v4, %v2073_v19 }
 0x2d1   : > { %v2629_v24 = vadd.f32 %v2593_v42, %v2351_v39  ;;  %v2596_v20 = vpop.f32.mrf.mxu0 }
 0x2d3   : > { %2664 = vst.msk [vmem:[%s4804_s19 + $0xf0] sm:$0xff] %vm2633_vm3, %v2629_v24  ;;  %v2726_v9 = vsel %vm2633_vm3, %v2629_v24, 0.0  ;;  %v2770_v41 = vmul.f32 %v2629_v24, %v2629_v24 }
 0x2d4   : > { %v2727_v3 = vadd.f32 %v2726_v9, %v2725_v31  ;;  %v2040_v22 = vpop.f32.mrf.mxu2 }
 0x2d5   : > { %v2831_v10 = vsel %vm2633_vm3, %v2770_v41, 0.0  ;;  %v2074_v8 = vadd.f32 %v2040_v22, %v1795_v55  ;;  %v2318_v43 = vpop.f32.mrf.mxu3 }
 0x2d6   : > { %v2832_v45 = vadd.f32 %v2831_v10, %v2830_v63 }
 0x2d7   : > { %v2352_v46 = vadd.f32 %v2318_v43, %v2074_v8 }
 0x2d9   : > { %v2630_v36 = vadd.f32 %v2596_v20, %v2352_v46 }
 0x2db   : > { %2665 = vst.msk [vmem:[%s4804_s19 + $0xf8] sm:$0xff] %vm2633_vm3, %v2630_v36  ;;  %v2728_v16 = vsel %vm2633_vm3, %v2630_v36, 0.0  ;;  %v2771_v34 = vmul.f32 %v2630_v36, %v2630_v36 }
 0x2dc   : > { %v2729_v50 = vadd.f32 %v2728_v16, %v2727_v3 }
 0x2dd   : > { %v2833_v48 = vsel %vm2633_vm3, %v2771_v34, 0.0 }
 0x2de   : > { %v2730_v56 = vrot.slane %v2729_v50, 4  ;;  %v2834_v57 = vadd.f32 %v2833_v48, %v2832_v45 }
 0x2e0   : > { %v2731_v23 = vadd.f32 %v2730_v56, %v2729_v50  ;;  %v2835_v62 = vrot.slane %v2834_v57, 4 }
 0x2e2   : > { %v2732_v0 = vrot.slane %v2731_v23, 2  ;;  %v2836_v47 = vadd.f32 %v2835_v62, %v2834_v57 }
 0x2e4   : > { %v2733_v26 = vadd.f32 %v2732_v0, %v2731_v23  ;;  %v2837_v15 = vrot.slane %v2836_v47, 2 }
 0x2e6   : > { %v2734_v12 = vrot.slane %v2733_v26, 1  ;;  %v2838_v5 = vadd.f32 %v2837_v15, %v2836_v47 }
 0x2e8   : > { %v2735_v61 = vadd.f32 %v2734_v12, %v2733_v26  ;;  %v2839_v38 = vrot.slane %v2838_v5, 1 }
 0x2ea   : > { %v2736_v59 = vadd.f32 %v2735_v61, %v2666_v14  ;;  %v2840_v21 = vadd.f32 %v2839_v38, %v2838_v5  ;;  %2846 = sbr.rel (%p3783_p5) target bundleno = 1110 (0x456), region = 44 }
 0x2ec   : > { %2738 = vst.msk [vmem:[#allocation2] sm:$0x1] %vm2737_vm4, %v2736_v59  ;;  %v2841_v44 = vadd.f32 %v2840_v21, %v2739_v28 }
 0x2ee   : > { %2842 = vst.msk [vmem:[#allocation3] sm:$0x1] %vm2737_vm4, %v2841_v44 }
 0x2ef   : > { %v2879_v13 = vld [vmem:[%s5673_s2] sm:$0x1]  ;;  %vm2906_vm8 = vcmask 64512   ;;  %vm2908_vm9 = vcmask 130048   ;;  %vm2910_vm10 = vcmask 195584   ;;  %v2927_v56 = vld [vmem:[%s5675_s4 + $0x8] sm:$0xff] }
 0x2f0   : > { %v2892_v24 = vld [vmem:[%s5674_s3] sm:$0x1]  ;;  %v2928_v57 = vld [vmem:[%s5675_s4 + $0x10] sm:$0xff]  ;;  %v2929_v23 = vld [vmem:[%s5675_s4 + $0x18] sm:$0xff] }
 0x2f1   : > { %v2926_v48 = vld [vmem:[%s5675_s4] sm:$0xff]  ;;  %v2931_v47 = vld [vmem:[%s5675_s4 + $0x28] sm:$0xff]  ;;  %v2932_v5 = vld [vmem:[%s5675_s4 + $0x30] sm:$0xff] }
 0x2f2   : > { %v2930_v0 = vld [vmem:[%s5675_s4 + $0x20] sm:$0xff]  ;;  %v2933_v61 = vld [vmem:[%s5675_s4 + $0x38] sm:$0xff] }
 0x2f3   : > { %v2847_v51 = vld [vmem:[#allocation2] sm:$0x1] }
 0x2f4   : > { %2850 = vrot.lane.b32.xlu0 %v2847_v51, %s3880_s20  ;;  %v2934_v38 = vld [vmem:[%s5675_s4 + $0x40] sm:$0xff] }
 0x2f5   : > { %v2848_v40 = vld [vmem:[#allocation3] sm:$0x1] }
 0x2f6   : > { %2863 = vrot.lane.b32.xlu1 %v2848_v40, %s3880_s20  ;;  %2867 = vrot.lane.b32.xlu2 %v2848_v40, %s3881_s21 }
 0x2fc   : > { %2854 = vrot.lane.b32.xlu0 %v2847_v51, %s3881_s21 }
 0x2fe   : > { %2858 = vrot.lane.b32.xlu1 %v2847_v51, %s3882_s22  ;;  %2871 = vrot.lane.b32.xlu2 %v2848_v40, %s3882_s22 }
 0x350   : > { %v2868_v29 = vpop.permute.xlu2 %2867 }
 0x358   : > { %v2872_v7 = vpop.permute.xlu2 %2871 }
 0x366   : > { %v2851_v35 = vpop.permute.xlu0 %2850 }
 0x367   : > { %v2853_v54 = vadd.f32 %v2851_v35, %v2847_v51 }
 0x368   : > { %v2864_v32 = vpop.permute.xlu1 %2863 }
 0x369   : > { %v2866_v58 = vadd.f32 %v2864_v32, %v2848_v40 }
 0x36b   : > { %v2870_v1 = vadd.f32 %v2868_v29, %v2866_v58  ;;  %v2935_v29 = vld [vmem:[%s5675_s4 + $0x48] sm:$0xff]  ;;  %v2936_v58 = vld [vmem:[%s5675_s4 + $0x50] sm:$0xff] }
 0x36d   : > { %v2874_v52 = vadd.f32 %v2872_v7, %v2870_v1 }
 0x36e   : > { %v2855_v30 = vpop.permute.xlu0 %2854 }
 0x36f   : > { %v2857_v17 = vadd.f32 %v2855_v30, %v2853_v54  ;;  %v2876_v6 = vmul.f32 0.00048828125, %v2874_v52  ;;  %v2937_v30 = vld [vmem:[%s5675_s4 + $0x58] sm:$0xff] }
 0x370   : > { %v2859_v60 = vpop.permute.xlu1 %2858 }
 0x371   : > { %v2861_v27 = vadd.f32 %v2859_v60, %v2857_v17 }
 0x373   : > { %v2875_v11 = vmul.f32 0.00048828125, %v2861_v27 }
 0x375   : > { %v2877_v33 = vmul.f32 %v2875_v11, %v2875_v11 }
 0x377   : > { %v2878_v25 = vsub.f32 %v2876_v6, %v2877_v33 }
 0x379   : > { %v2880_v37 = vadd.f32 1e-05, %v2878_v25 }
 0x37b   : > { %3869 = vrsqrt.f32 %v2880_v37  ;;  %vm2887_vm6 = vweird.f32 %v2880_v37 }
 0x381   : > { %v3870_v53 = vpop.eup %3869 }
 0x382   : > { %v2882_v18 = vmul.f32 %v3870_v53, %v2880_v37  ;;  %vm2888_vm5 = vweird.f32 %v3870_v53  ;;  %v2939_v37 = vld [vmem:[%s5675_s4 + $0x68] sm:$0xff] }
 0x383   : > { %vm2889_vm7 = vmor %vm2887_vm6, %vm2888_vm5 }
 0x384   : > { %v2883_v31 = vmul.f32 %v3870_v53, %v2882_v18 }
 0x386   : > { %v2884_v49 = vmul.f32 0.5, %v2883_v31 }
 0x388   : > { %v2885_v42 = vsub.f32 1.5, %v2884_v49  ;;  %v2940_v49 = vld [vmem:[%s5675_s4 + $0x70] sm:$0xff] }
 0x38a   : > { %v2886_v19 = vmul.f32 %v3870_v53, %v2885_v42 }
 0x38c   : > { %v2890_v63 = vsel %vm2889_vm7, %v3870_v53, %v2886_v19 }
 0x38d   : > { %v2891_v4 = vmul.f32 %v2890_v63, %v2879_v13  ;;  %v2941_v63 = vld [vmem:[%s5675_s4 + $0x78] sm:$0xff] }
 0x38f   : > { %v2893_v39 = vmul.f32 %v2891_v4, %v2875_v11  ;;  %v2896_v2 = vperm.slane %v2891_v4, 0  ;;  %v2938_v11 = vld [vmem:[%s5675_s4 + $0x60] sm:$0xff] }
 0x391   : > { %2903 = vrot.lane.b32.xlu2 %v2896_v2, %s3883_s26  ;;  %2900 = vrot.lane.b32.xlu1 %v2896_v2, %s3884_s27  ;;  %v2894_v55 = vsub.f32 %v2892_v24, %v2893_v39  ;;  %v2942_v24 = vld [vmem:[%s5675_s4 + $0x80] sm:$0xff] }
 0x392   : > { %2897 = vrot.lane.b32.xlu0 %v2896_v2, %s3885_s28 }
 0x393   : > { %v2913_v9 = vperm.slane %v2894_v55, 0 }
 0x399   : > { %2920 = vrot.lane.b32.xlu2 %v2913_v9, %s3883_s26  ;;  %2917 = vrot.lane.b32.xlu1 %v2913_v9, %s3884_s27 }
 0x39a   : > { %2914 = vrot.lane.b32.xlu0 %v2913_v9, %s3885_s28 }
 0x3eb   : > { %v2904_v22 = vpop.permute.xlu2 %2903 }
 0x3f3   : > { %v2921_v36 = vpop.permute.xlu2 %2920 }
 0x403   : > { %v2901_v3 = vpop.permute.xlu1 %2900 }
 0x404   : > { %v2898_v41 = vpop.permute.xlu0 %2897 }
 0x405   : > { %v2907_v10 = vsel %vm2906_vm8, %v2891_v4, %v2898_v41 }
 0x406   : > { %v2909_v8 = vsel %vm2908_vm9, %v2907_v10, %v2901_v3  ;;  %v2943_v3 = vld [vmem:[%s5675_s4 + $0x88] sm:$0xff] }
 0x407   : > { %v2911_v20 = vsel %vm2910_vm10, %v2909_v8, %v2904_v22 }
 0x408   : > { %v5085_v50 = vperm.slane %v2911_v20, 0 }
 0x40a   : > { %v2959_v26 = vmul.f32 %v5085_v50, %v2926_v48  ;;  %v2960_v15 = vmul.f32 %v5085_v50, %v2927_v56  ;;  %v2961_v12 = vmul.f32 %v5085_v50, %v2928_v57  ;;  %v2962_v14 = vmul.f32 %v5085_v50, %v2929_v23  ;;  %v2946_v56 = vld [vmem:[%s5675_s4 + $0xa0] sm:$0xff] }
 0x40b   : > { %v2918_v43 = vpop.permute.xlu1 %2917  ;;  %v2963_v28 = vmul.f32 %v5085_v50, %v2930_v0  ;;  %v2964_v51 = vmul.f32 %v5085_v50, %v2931_v47  ;;  %v2965_v35 = vmul.f32 %v5085_v50, %v2932_v5  ;;  %v2966_v54 = vmul.f32 %v5085_v50, %v2933_v61  ;;  %v2947_v47 = vld [vmem:[%s5675_s4 + $0xa8] sm:$0xff] }
 0x40c   : > { %v2915_v45 = vpop.permute.xlu0 %2914  ;;  %v2967_v7 = vmul.f32 %v5085_v50, %v2934_v38  ;;  %v2968_v6 = vmul.f32 %v5085_v50, %v2935_v29  ;;  %v2969_v53 = vmul.f32 %v5085_v50, %v2936_v58  ;;  %v2970_v42 = vmul.f32 %v5085_v50, %v2937_v30 }
 0x40d   : > { %v2923_v46 = vsel %vm2906_vm8, %v2894_v55, %v2915_v45  ;;  %v2971_v4 = vmul.f32 %v5085_v50, %v2938_v11  ;;  %v2972_v55 = vmul.f32 %v5085_v50, %v2939_v37  ;;  %v2973_v22 = vmul.f32 %v5085_v50, %v2940_v49  ;;  %v2944_v45 = vld [vmem:[%s5675_s4 + $0x90] sm:$0xff] }
 0x40e   : > { %v2924_v16 = vsel %vm2908_vm9, %v2923_v46, %v2918_v43  ;;  %v2974_v43 = vmul.f32 %v5085_v50, %v2941_v63  ;;  %v2976_v57 = vmul.f32 %v5085_v50, %v2943_v3  ;;  %v2980_v29 = vmul.f32 %v5085_v50, %v2947_v47 }
 0x40f   : > { %v2925_v34 = vsel %vm2910_vm10, %v2924_v16, %v2921_v36  ;;  %v2945_v36 = vld [vmem:[%s5675_s4 + $0x98] sm:$0xff]  ;;  %v2975_v16 = vmul.f32 %v5085_v50, %v2942_v24 }
 0x410   : > { %v5099_v62 = vperm.slane %v2925_v34, 0  ;;  %v2978_v61 = vmul.f32 %v5085_v50, %v2945_v36 }
 0x412   : > { %v2992_v59 = vadd.f32 %v5099_v62, %v2959_v26  ;;  %v2993_v21 = vadd.f32 %v5099_v62, %v2960_v15  ;;  %v2994_v44 = vadd.f32 %v5099_v62, %v2961_v12  ;;  %v2995_v40 = vadd.f32 %v5099_v62, %v2962_v14  ;;  %v3815_v26 = vld [vmem:[%s5675_s4 + $0x1f8] sm:$0xff]  ;;  %v2948_v14 = vld [vmem:[%s5675_s4 + $0xb0] sm:$0xff] }
 0x413   : > { %v2996_v32 = vadd.f32 %v5099_v62, %v2963_v28  ;;  %v2997_v1 = vadd.f32 %v5099_v62, %v2964_v51  ;;  %v2998_v60 = vadd.f32 %v5099_v62, %v2965_v35  ;;  %v2999_v33 = vadd.f32 %v5099_v62, %v2966_v54  ;;  %v2951_v54 = vld [vmem:[%s5675_s4 + $0xc8] sm:$0xff] }
 0x414   : > { %v3024_v17 = vmax.f32 %v2992_v59, 0.0  ;;  %v3025_v52 = vmax.f32 %v2993_v21, 0.0  ;;  %v3026_v27 = vmax.f32 %v2994_v44, 0.0  ;;  %v3027_v25 = vmax.f32 %v2995_v40, 0.0  ;;  %v2949_v59 = vld [vmem:[%s5675_s4 + $0xb8] sm:$0xff]  ;;  %v2950_v40 = vld [vmem:[%s5675_s4 + $0xc0] sm:$0xff] }
 0x415   : > { %v3000_v18 = vadd.f32 %v5099_v62, %v2967_v7  ;;  %v3028_v31 = vmax.f32 %v2996_v32, 0.0  ;;  %v3001_v13 = vadd.f32 %v5099_v62, %v2968_v6  ;;  %v3029_v19 = vmax.f32 %v2997_v1, 0.0  ;;  %v2953_v6 = vld [vmem:[%s5675_s4 + $0xd8] sm:$0xff] }
 0x416   : > { %3056 = vst.msk [vmem:[%s5675_s4] sm:$0xff] %vm2633_vm3, %v3024_v17  ;;  %v3002_v39 = vadd.f32 %v5099_v62, %v2969_v53  ;;  %v3030_v2 = vmax.f32 %v2998_v60, 0.0  ;;  %v3003_v9 = vadd.f32 %v5099_v62, %v2970_v42  ;;  %v3031_v41 = vmax.f32 %v2999_v33, 0.0  ;;  %v2952_v60 = vld [vmem:[%s5675_s4 + $0xd0] sm:$0xff]  ;;  %v2954_v53 = vld [vmem:[%s5675_s4 + $0xe0] sm:$0xff]  ;;  %v2955_v42 = vld [vmem:[%s5675_s4 + $0xe8] sm:$0xff] }
 0x417   : > { %3057 = vst.msk [vmem:[%s5675_s4 + $0x8] sm:$0xff] %vm2633_vm3, %v3025_v52  ;;  %v3004_v10 = vadd.f32 %v5099_v62, %v2971_v4  ;;  %v3032_v8 = vmax.f32 %v3000_v18, 0.0  ;;  %v3005_v20 = vadd.f32 %v5099_v62, %v2972_v55  ;;  %v3033_v46 = vmax.f32 %v3001_v13, 0.0  ;;  %v2956_v4 = vld [vmem:[%s5675_s4 + $0xf0] sm:$0xff]  ;;  %v2957_v55 = vld [vmem:[%s5675_s4 + $0xf8] sm:$0xff] }
 0x418   : > { %3058 = vst.msk [vmem:[%s5675_s4 + $0x10] sm:$0xff] %vm2633_vm3, %v3026_v27  ;;  %v3006_v34 = vadd.f32 %v5099_v62, %v2973_v22  ;;  %v3034_v48 = vmax.f32 %v3002_v39, 0.0  ;;  %v3007_v23 = vadd.f32 %v5099_v62, %v2974_v43  ;;  %v3035_v0 = vmax.f32 %v3003_v9, 0.0  ;;  %v3784_v22 = vld [vmem:[%s5675_s4 + $0x100] sm:$0xff]  ;;  %v3785_v43 = vld [vmem:[%s5675_s4 + $0x108] sm:$0xff] }
 0x419   : > { %3059 = vst.msk [vmem:[%s5675_s4 + $0x18] sm:$0xff] %vm2633_vm3, %v3027_v25  ;;  %v2977_v15 = vmul.f32 %v5085_v50, %v2944_v45  ;;  %v3008_v12 = vadd.f32 %v5099_v62, %v2975_v16  ;;  %v3036_v5 = vmax.f32 %v3004_v10, 0.0  ;;  %v3009_v38 = vadd.f32 %v5099_v62, %v2976_v57  ;;  %v3786_v16 = vld [vmem:[%s5675_s4 + $0x110] sm:$0xff]  ;;  %v3787_v57 = vld [vmem:[%s5675_s4 + $0x118] sm:$0xff] }
 0x41a   : > { %3060 = vst.msk [vmem:[%s5675_s4 + $0x20] sm:$0xff] %vm2633_vm3, %v3028_v31  ;;  %v3037_v28 = vmax.f32 %v3005_v20, 0.0  ;;  %v2979_v21 = vmul.f32 %v5085_v50, %v2946_v56  ;;  %v3038_v51 = vmax.f32 %v3006_v34, 0.0  ;;  %v3152_v35 = vmul.f32 %v3815_v26, %v5085_v50  ;;  %v3788_v26 = vld [vmem:[%s5675_s4 + $0x120] sm:$0xff] }
 0x41b   : > { %3061 = vst.msk [vmem:[%s5675_s4 + $0x28] sm:$0xff] %vm2633_vm3, %v3029_v19  ;;  %v3010_v44 = vadd.f32 %v5099_v62, %v2977_v15  ;;  %v3011_v32 = vadd.f32 %v5099_v62, %v2978_v61  ;;  %v3039_v58 = vmax.f32 %v3007_v23, 0.0  ;;  %v2981_v7 = vmul.f32 %v5085_v50, %v2948_v14  ;;  %v3789_v14 = vld [vmem:[%s5675_s4 + $0x128] sm:$0xff] }
 0x41c   : > { %3062 = vst.msk [vmem:[%s5675_s4 + $0x30] sm:$0xff] %vm2633_vm3, %v3030_v2  ;;  %v3012_v1 = vadd.f32 %v5099_v62, %v2979_v21  ;;  %v3040_v30 = vmax.f32 %v3008_v12, 0.0  ;;  %v2982_v17 = vmul.f32 %v5085_v50, %v2949_v59  ;;  %v3013_v52 = vadd.f32 %v5099_v62, %v2980_v29  ;;  %v3790_v59 = vld [vmem:[%s5675_s4 + $0x130] sm:$0xff] }
 0x41d   : > { %3063 = vst.msk [vmem:[%s5675_s4 + $0x38] sm:$0xff] %vm2633_vm3, %v3031_v41  ;;  %v3041_v27 = vmax.f32 %v3009_v38, 0.0  ;;  %v5277_v11 = vadd.f32 %v3152_v35, %v5099_v62  ;;  %v2983_v33 = vmul.f32 %v5085_v50, %v2950_v40  ;;  %v3014_v25 = vadd.f32 %v5099_v62, %v2981_v7  ;;  %v3791_v40 = vld [vmem:[%s5675_s4 + $0x138] sm:$0xff] }
 0x41e   : > { %3064 = vst.msk [vmem:[%s5675_s4 + $0x40] sm:$0xff] %vm2633_vm3, %v3032_v8  ;;  %v3042_v37 = vmax.f32 %v3010_v44, 0.0  ;;  %v2984_v18 = vmul.f32 %v5085_v50, %v2951_v54  ;;  %v3015_v31 = vadd.f32 %v5099_v62, %v2982_v17  ;;  %v3043_v49 = vmax.f32 %v3011_v32, 0.0 }
 0x41f   : > { %3065 = vst.msk [vmem:[%s5675_s4 + $0x48] sm:$0xff] %vm2633_vm3, %v3033_v46  ;;  %v2985_v13 = vmul.f32 %v5085_v50, %v2952_v60  ;;  %v3016_v19 = vadd.f32 %v5099_v62, %v2983_v33  ;;  %v3044_v63 = vmax.f32 %v3012_v1, 0.0  ;;  %v2986_v39 = vmul.f32 %v5085_v50, %v2953_v6 }
 0x420   : > { %3066 = vst.msk [vmem:[%s5675_s4 + $0x50] sm:$0xff] %vm2633_vm3, %v3034_v48  ;;  %v3017_v2 = vadd.f32 %v5099_v62, %v2984_v18  ;;  %v3045_v24 = vmax.f32 %v3013_v52, 0.0  ;;  %v2987_v9 = vmul.f32 %v5085_v50, %v2954_v53  ;;  %v3046_v3 = vmax.f32 %v3014_v25, 0.0 }
 0x421   : > { %3067 = vst.msk [vmem:[%s5675_s4 + $0x58] sm:$0xff] %vm2633_vm3, %v3035_v0  ;;  %v3018_v41 = vadd.f32 %v5099_v62, %v2985_v13  ;;  %v2988_v10 = vmul.f32 %v5085_v50, %v2955_v42  ;;  %v3019_v8 = vadd.f32 %v5099_v62, %v2986_v39  ;;  %v3047_v45 = vmax.f32 %v3015_v31, 0.0 }
 0x422   : > { %3068 = vst.msk [vmem:[%s5675_s4 + $0x60] sm:$0xff] %vm2633_vm3, %v3036_v5  ;;  %v2989_v20 = vmul.f32 %v5085_v50, %v2956_v4  ;;  %v3020_v46 = vadd.f32 %v5099_v62, %v2987_v9  ;;  %v3048_v36 = vmax.f32 %v3016_v19, 0.0  ;;  %v2990_v34 = vmul.f32 %v5085_v50, %v2957_v55 }
 0x423   : > { %3069 = vst.msk [vmem:[%s5675_s4 + $0x68] sm:$0xff] %vm2633_vm3, %v3037_v28  ;;  %v3021_v48 = vadd.f32 %v5099_v62, %v2988_v10  ;;  %v3049_v56 = vmax.f32 %v3017_v2, 0.0  ;;  %v3121_v23 = vmul.f32 %v3784_v22, %v5085_v50  ;;  %v3050_v47 = vmax.f32 %v3018_v41, 0.0 }
 0x424   : > { %3070 = vst.msk [vmem:[%s5675_s4 + $0x70] sm:$0xff] %vm2633_vm3, %v3038_v51  ;;  %v3022_v0 = vadd.f32 %v5099_v62, %v2989_v20  ;;  %v3122_v15 = vmul.f32 %v3785_v43, %v5085_v50  ;;  %v3023_v12 = vadd.f32 %v5099_v62, %v2990_v34  ;;  %v3051_v5 = vmax.f32 %v3019_v8, 0.0 }
 0x425   : > { %3071 = vst.msk [vmem:[%s5675_s4 + $0x78] sm:$0xff] %vm2633_vm3, %v3039_v58  ;;  %v3123_v61 = vmul.f32 %v3786_v16, %v5085_v50  ;;  %v3052_v38 = vmax.f32 %v3020_v46, 0.0  ;;  %v3153_v28 = vadd.f32 %v3121_v23, %v5099_v62  ;;  %v3124_v21 = vmul.f32 %v3787_v57, %v5085_v50  ;;  %v3792_v58 = vld [vmem:[%s5675_s4 + $0x140] sm:$0xff] }
 0x426   : > { %3072 = vst.msk [vmem:[%s5675_s4 + $0x80] sm:$0xff] %vm2633_vm3, %v3040_v30  ;;  %v3053_v44 = vmax.f32 %v3021_v48, 0.0  ;;  %v3154_v51 = vadd.f32 %v3122_v15, %v5099_v62  ;;  %v3125_v29 = vmul.f32 %v3788_v26, %v5085_v50  ;;  %v3054_v35 = vmax.f32 %v3022_v0, 0.0  ;;  %v3793_v30 = vld [vmem:[%s5675_s4 + $0x148] sm:$0xff] }
 0x427   : > { %3073 = vst.msk [vmem:[%s5675_s4 + $0x88] sm:$0xff] %vm2633_vm3, %v3041_v27  ;;  %v3155_v32 = vadd.f32 %v3123_v61, %v5099_v62  ;;  %v3126_v54 = vmul.f32 %v3789_v14, %v5085_v50  ;;  %v3055_v7 = vmax.f32 %v3023_v12, 0.0  ;;  %v3156_v1 = vadd.f32 %v3124_v21, %v5099_v62  ;;  %v3794_v27 = vld [vmem:[%s5675_s4 + $0x150] sm:$0xff] }
 0x428   : > { %3074 = vst.msk [vmem:[%s5675_s4 + $0x90] sm:$0xff] %vm2633_vm3, %v3042_v37  ;;  %v3127_v60 = vmul.f32 %v3790_v59, %v5085_v50  ;;  %v3157_v17 = vadd.f32 %v3125_v29, %v5099_v62  ;;  %v3185_v52 = vmax.f32 %v3153_v28, 0.0  ;;  %v3128_v6 = vmul.f32 %v3791_v40, %v5085_v50  ;;  %v3795_v37 = vld [vmem:[%s5675_s4 + $0x158] sm:$0xff]  ;;  %v3805_v28 = vld [vmem:[%s5675_s4 + $0x1a8] sm:$0xff] }
 0x429   : > { %3075 = vst.msk [vmem:[%s5675_s4 + $0x98] sm:$0xff] %vm2633_vm3, %v3043_v49  ;;  %v3158_v33 = vadd.f32 %v3126_v54, %v5099_v62  ;;  %v3186_v25 = vmax.f32 %v3154_v51, 0.0  ;;  %v3129_v53 = vmul.f32 %v3792_v58, %v5085_v50  ;;  %v3187_v31 = vmax.f32 %v3155_v32, 0.0  ;;  %v3796_v49 = vld [vmem:[%s5675_s4 + $0x160] sm:$0xff]  ;;  %v3806_v51 = vld [vmem:[%s5675_s4 + $0x1b0] sm:$0xff]  ;;  %v3807_v32 = vld [vmem:[%s5675_s4 + $0x1b8] sm:$0xff] }
 0x42a   : > { %3076 = vst.msk [vmem:[%s5675_s4 + $0xa0] sm:$0xff] %vm2633_vm3, %v3044_v63  ;;  %v3159_v18 = vadd.f32 %v3127_v60, %v5099_v62  ;;  %v3130_v42 = vmul.f32 %v3793_v30, %v5085_v50  ;;  %v3160_v13 = vadd.f32 %v3128_v6, %v5099_v62  ;;  %v3188_v19 = vmax.f32 %v3156_v1, 0.0  ;;  %v3797_v63 = vld [vmem:[%s5675_s4 + $0x168] sm:$0xff]  ;;  %v3808_v1 = vld [vmem:[%s5675_s4 + $0x1c0] sm:$0xff] }
 0x42b   : > { %3077 = vst.msk [vmem:[%s5675_s4 + $0xa8] sm:$0xff] %vm2633_vm3, %v3045_v24  ;;  %v3131_v4 = vmul.f32 %v3794_v27, %v5085_v50  ;;  %v3161_v39 = vadd.f32 %v3129_v53, %v5099_v62  ;;  %v3189_v2 = vmax.f32 %v3157_v17, 0.0  ;;  %v3798_v24 = vld [vmem:[%s5675_s4 + $0x170] sm:$0xff]  ;;  %v3132_v55 = vmul.f32 %v3795_v37, %v5085_v50 }
 0x42c   : > { %3078 = vst.msk [vmem:[%s5675_s4 + $0xb0] sm:$0xff] %vm2633_vm3, %v3046_v3  ;;  %v3162_v9 = vadd.f32 %v3130_v42, %v5099_v62  ;;  %v3190_v41 = vmax.f32 %v3158_v33, 0.0  ;;  %v3799_v3 = vld [vmem:[%s5675_s4 + $0x178] sm:$0xff]  ;;  %v3133_v22 = vmul.f32 %v3796_v49, %v5085_v50  ;;  %v3191_v8 = vmax.f32 %v3159_v18, 0.0 }
 0x42d   : > { %3079 = vst.msk [vmem:[%s5675_s4 + $0xb8] sm:$0xff] %vm2633_vm3, %v3047_v45  ;;  %v3163_v10 = vadd.f32 %v3131_v4, %v5099_v62  ;;  %v3800_v45 = vld [vmem:[%s5675_s4 + $0x180] sm:$0xff]  ;;  %v3134_v43 = vmul.f32 %v3797_v63, %v5085_v50  ;;  %v3164_v20 = vadd.f32 %v3132_v55, %v5099_v62  ;;  %v3192_v46 = vmax.f32 %v3160_v13, 0.0 }
 0x42e   : > { %3080 = vst.msk [vmem:[%s5675_s4 + $0xc0] sm:$0xff] %vm2633_vm3, %v3048_v36  ;;  %v3801_v36 = vld [vmem:[%s5675_s4 + $0x188] sm:$0xff]  ;;  %v3135_v16 = vmul.f32 %v3798_v24, %v5085_v50  ;;  %v3165_v34 = vadd.f32 %v3133_v22, %v5099_v62  ;;  %v3193_v48 = vmax.f32 %v3161_v39, 0.0  ;;  %v3136_v57 = vmul.f32 %v3799_v3, %v5085_v50 }
 0x42f   : > { %3081 = vst.msk [vmem:[%s5675_s4 + $0xc8] sm:$0xff] %vm2633_vm3, %v3049_v56  ;;  %v3802_v56 = vld [vmem:[%s5675_s4 + $0x190] sm:$0xff]  ;;  %v3166_v23 = vadd.f32 %v3134_v43, %v5099_v62  ;;  %v3194_v0 = vmax.f32 %v3162_v9, 0.0  ;;  %v3137_v26 = vmul.f32 %v3800_v45, %v5085_v50  ;;  %v3195_v12 = vmax.f32 %v3163_v10, 0.0 }
 0x430   : > { %3082 = vst.msk [vmem:[%s5675_s4 + $0xd0] sm:$0xff] %vm2633_vm3, %v3050_v47  ;;  %v3803_v47 = vld [vmem:[%s5675_s4 + $0x198] sm:$0xff]  ;;  %v3167_v15 = vadd.f32 %v3135_v16, %v5099_v62  ;;  %v3138_v14 = vmul.f32 %v3801_v36, %v5085_v50  ;;  %v3168_v61 = vadd.f32 %v3136_v57, %v5099_v62  ;;  %v3139_v59 = vmul.f32 %v3802_v56, %v5085_v50 }
 0x431   : > { %3083 = vst.msk [vmem:[%s5675_s4 + $0xd8] sm:$0xff] %vm2633_vm3, %v3051_v5  ;;  %v3804_v5 = vld [vmem:[%s5675_s4 + $0x1a0] sm:$0xff]  ;;  %v3169_v21 = vadd.f32 %v3137_v26, %v5099_v62  ;;  %v3140_v40 = vmul.f32 %v3803_v47, %v5085_v50  ;;  %v3142_v30 = vmul.f32 %v3805_v28, %v5085_v50  ;;  %v3143_v27 = vmul.f32 %v3806_v51, %v5085_v50 }
 0x432   : > { %3084 = vst.msk [vmem:[%s5675_s4 + $0xe0] sm:$0xff] %vm2633_vm3, %v3052_v38  ;;  %v3196_v38 = vmax.f32 %v3164_v20, 0.0  ;;  %v3170_v29 = vadd.f32 %v3138_v14, %v5099_v62  ;;  %v3141_v58 = vmul.f32 %v3804_v5, %v5085_v50  ;;  %v3171_v54 = vadd.f32 %v3139_v59, %v5099_v62 }
 0x433   : > { %3085 = vst.msk [vmem:[%s5675_s4 + $0xe8] sm:$0xff] %vm2633_vm3, %v3053_v44  ;;  %v3197_v44 = vmax.f32 %v3165_v34, 0.0  ;;  %v3172_v60 = vadd.f32 %v3140_v40, %v5099_v62  ;;  %v3200_v17 = vmax.f32 %v3168_v61, 0.0  ;;  %v3201_v33 = vmax.f32 %v3169_v21, 0.0 }
 0x434   : > { %3086 = vst.msk [vmem:[%s5675_s4 + $0xf0] sm:$0xff] %vm2633_vm3, %v3054_v35  ;;  %v3198_v35 = vmax.f32 %v3166_v23, 0.0  ;;  %v3173_v6 = vadd.f32 %v3141_v58, %v5099_v62  ;;  %v3144_v37 = vmul.f32 %v3807_v32, %v5085_v50  ;;  %v3174_v53 = vadd.f32 %v3142_v30, %v5099_v62 }
 0x435   : > { %3087 = vst.msk [vmem:[%s5675_s4 + $0xf8] sm:$0xff] %vm2633_vm3, %v3055_v7  ;;  %v3199_v7 = vmax.f32 %v3167_v15, 0.0  ;;  %v3202_v18 = vmax.f32 %v3170_v29, 0.0  ;;  %v3145_v49 = vmul.f32 %v3808_v1, %v5085_v50  ;;  %v3175_v42 = vadd.f32 %v3143_v27, %v5099_v62 }
 0x436   : > { %3816 = vst.msk [vmem:[%s5675_s4 + $0x100] sm:$0xff] %vm2633_vm3, %v3185_v52  ;;  %v3809_v52 = vld [vmem:[%s5675_s4 + $0x1c8] sm:$0xff]  ;;  %v3203_v13 = vmax.f32 %v3171_v54, 0.0  ;;  %v3176_v4 = vadd.f32 %v3144_v37, %v5099_v62  ;;  %v3204_v39 = vmax.f32 %v3172_v60, 0.0  ;;  %v3205_v9 = vmax.f32 %v3173_v6, 0.0 }
 0x437   : > { %3817 = vst.msk [vmem:[%s5675_s4 + $0x108] sm:$0xff] %vm2633_vm3, %v3186_v25  ;;  %v3810_v25 = vld [vmem:[%s5675_s4 + $0x1d0] sm:$0xff]  ;;  %v3146_v63 = vmul.f32 %v3809_v52, %v5085_v50  ;;  %v3177_v55 = vadd.f32 %v3145_v49, %v5099_v62  ;;  %v3206_v10 = vmax.f32 %v3174_v53, 0.0  ;;  %v3207_v43 = vmax.f32 %v3175_v42, 0.0 }
 0x438   : > { %3818 = vst.msk [vmem:[%s5675_s4 + $0x110] sm:$0xff] %vm2633_vm3, %v3187_v31  ;;  %v3811_v31 = vld [vmem:[%s5675_s4 + $0x1d8] sm:$0xff]  ;;  %v3147_v24 = vmul.f32 %v3810_v25, %v5085_v50  ;;  %v3208_v36 = vmax.f32 %v3176_v4, 0.0  ;;  %v3216_v15 = vmax.f32 %v5277_v11, 0.0 }
 0x439   : > { %3819 = vst.msk [vmem:[%s5675_s4 + $0x118] sm:$0xff] %vm2633_vm3, %v3188_v19  ;;  %v3812_v19 = vld [vmem:[%s5675_s4 + $0x1e0] sm:$0xff]  ;;  %v3148_v3 = vmul.f32 %v3811_v31, %v5085_v50  ;;  %v3178_v22 = vadd.f32 %v3146_v63, %v5099_v62 }
 0x43a   : > { %3820 = vst.msk [vmem:[%s5675_s4 + $0x120] sm:$0xff] %vm2633_vm3, %v3189_v2  ;;  %v3813_v2 = vld [vmem:[%s5675_s4 + $0x1e8] sm:$0xff]  ;;  %v3179_v45 = vadd.f32 %v3147_v24, %v5099_v62 }
 0x43b   : > { %3821 = vst.msk [vmem:[%s5675_s4 + $0x128] sm:$0xff] %vm2633_vm3, %v3190_v41  ;;  %v3814_v41 = vld [vmem:[%s5675_s4 + $0x1f0] sm:$0xff]  ;;  %v3150_v20 = vmul.f32 %v3813_v2, %v5085_v50  ;;  %v3210_v57 = vmax.f32 %v3178_v22, 0.0 }
 0x43c   : > { %3822 = vst.msk [vmem:[%s5675_s4 + $0x130] sm:$0xff] %vm2633_vm3, %v3191_v8  ;;  %v3149_v8 = vmul.f32 %v3812_v19, %v5085_v50  ;;  %v3151_v16 = vmul.f32 %v3814_v41, %v5085_v50 }
 0x43d   : > { %3823 = vst.msk [vmem:[%s5675_s4 + $0x138] sm:$0xff] %vm2633_vm3, %v3192_v46  ;;  %v3180_v46 = vadd.f32 %v3148_v3, %v5099_v62  ;;  %v3182_v56 = vadd.f32 %v3150_v20, %v5099_v62 }
 0x43e   : > { %3824 = vst.msk [vmem:[%s5675_s4 + $0x140] sm:$0xff] %vm2633_vm3, %v3193_v48  ;;  %v3181_v34 = vadd.f32 %v3149_v8, %v5099_v62  ;;  %v3209_v48 = vmax.f32 %v3177_v55, 0.0  ;;  %v3183_v23 = vadd.f32 %v3151_v16, %v5099_v62 }
 0x43f   : > { %3825 = vst.msk [vmem:[%s5675_s4 + $0x148] sm:$0xff] %vm2633_vm3, %v3194_v0  ;;  %v3211_v0 = vmax.f32 %v3179_v45, 0.0  ;;  %v3212_v50 = vmax.f32 %v3180_v46, 0.0  ;;  %v3214_v26 = vmax.f32 %v3182_v56, 0.0 }
 0x440   : > { %3826 = vst.msk [vmem:[%s5675_s4 + $0x150] sm:$0xff] %vm2633_vm3, %v3195_v12  ;;  %v3213_v47 = vmax.f32 %v3181_v34, 0.0  ;;  %v3215_v62 = vmax.f32 %v3183_v23, 0.0 }
 0x441   : > { %3827 = vst.msk [vmem:[%s5675_s4 + $0x158] sm:$0xff] %vm2633_vm3, %v3196_v38 }
 0x442   : > { %3828 = vst.msk [vmem:[%s5675_s4 + $0x160] sm:$0xff] %vm2633_vm3, %v3197_v44 }
 0x443   : > { %3829 = vst.msk [vmem:[%s5675_s4 + $0x168] sm:$0xff] %vm2633_vm3, %v3198_v35 }
 0x444   : > { %3830 = vst.msk [vmem:[%s5675_s4 + $0x170] sm:$0xff] %vm2633_vm3, %v3199_v7 }
 0x445   : > { %3831 = vst.msk [vmem:[%s5675_s4 + $0x178] sm:$0xff] %vm2633_vm3, %v3200_v17 }
 0x446   : > { %3832 = vst.msk [vmem:[%s5675_s4 + $0x180] sm:$0xff] %vm2633_vm3, %v3201_v33 }
 0x447   : > { %3833 = vst.msk [vmem:[%s5675_s4 + $0x188] sm:$0xff] %vm2633_vm3, %v3202_v18 }
 0x448   : > { %3834 = vst.msk [vmem:[%s5675_s4 + $0x190] sm:$0xff] %vm2633_vm3, %v3203_v13 }
 0x449   : > { %3835 = vst.msk [vmem:[%s5675_s4 + $0x198] sm:$0xff] %vm2633_vm3, %v3204_v39 }
 0x44a   : > { %3836 = vst.msk [vmem:[%s5675_s4 + $0x1a0] sm:$0xff] %vm2633_vm3, %v3205_v9 }
 0x44b   : > { %3837 = vst.msk [vmem:[%s5675_s4 + $0x1a8] sm:$0xff] %vm2633_vm3, %v3206_v10 }
 0x44c   : > { %3838 = vst.msk [vmem:[%s5675_s4 + $0x1b0] sm:$0xff] %vm2633_vm3, %v3207_v43 }
 0x44d   : > { %3839 = vst.msk [vmem:[%s5675_s4 + $0x1b8] sm:$0xff] %vm2633_vm3, %v3208_v36 }
 0x44e   : > { %3840 = vst.msk [vmem:[%s5675_s4 + $0x1c0] sm:$0xff] %vm2633_vm3, %v3209_v48 }
 0x44f   : > { %3841 = vst.msk [vmem:[%s5675_s4 + $0x1c8] sm:$0xff] %vm2633_vm3, %v3210_v57 }
 0x450   : > { %3842 = vst.msk [vmem:[%s5675_s4 + $0x1d0] sm:$0xff] %vm2633_vm3, %v3211_v0 }
 0x451   : > { %3843 = vst.msk [vmem:[%s5675_s4 + $0x1d8] sm:$0xff] %vm2633_vm3, %v3212_v50 }
 0x452   : > { %3844 = vst.msk [vmem:[%s5675_s4 + $0x1e0] sm:$0xff] %vm2633_vm3, %v3213_v47 }
 0x453   : > { %3845 = vst.msk [vmem:[%s5675_s4 + $0x1e8] sm:$0xff] %vm2633_vm3, %v3214_v26 }
 0x454   : > { %3846 = vst.msk [vmem:[%s5675_s4 + $0x1f0] sm:$0xff] %vm2633_vm3, %v3215_v62 }
 0x455   : > { %3847 = vst.msk [vmem:[%s5675_s4 + $0x1f8] sm:$0xff] %vm2633_vm3, %v3216_v15 }
 0x456 PF: > { %s14_s15 = sadd.s32 1, %s3877_s15  }
 0x457   : > { %p11_p6 = scmp.ge.s32.totalorder %s14_s15, 4  }
 0x459   :  { %13 = sbr.rel (!%p11_p6) target bundleno = 1 (0x1), region = 82 }

</bundles_post_ra>
